<compile_context>
chip_gen: v6e
topology: v6e:2x2x1
jax: 0.10.0
libtpu: 0.0.40
codegen_flags: <defaults>
</compile_context>

<pallas_src>
import functools
import math

import jax
import jax.numpy as jnp
import numpy as np
from jax.experimental import pallas as pl
from jax.experimental.pallas import tpu as pltpu

WP = 8  # padded per-branch width (sublane alignment)


# --------------------------------------------------------------------------- #
# Kernel
# --------------------------------------------------------------------------- #
def make_agmstb_kernel(H, W, nums, scale, Bb):
    HW = H * W
    N = Bb * HW
    wp = WP
    # tap order t = (dy+1)*3 + (dx+1); must match host-side weight/mask packing
    shifts = [dy * W + dx for dy in (-1, 0, 1) for dx in (-1, 0, 1)]

    def kernel(x_ref, mask_ref, w1_ref, b1_ref, wbr_ref, bbr_ref,
               w3_ref, b3_ref, pool_ref, fc1w_ref, fc1b_ref,
               fc2w_ref, fc2b_ref, o_ref):
        x = x_ref[0]                                          # (Cin, Bb*HW) bf16

        # hoist the per-tap boundary-mask sublane broadcasts (reused by every
        # branch; center tap d==0 is all ones and skips the multiply entirely)
        mask = mask_ref[...]                                  # (9, N) f32
        masks = [None if d == 0
                 else jnp.broadcast_to(mask[t:t + 1, :], (wp, N))
                 for t, d in enumerate(shifts)]

        # ---- conv1 (1x1, BN scale folded into w1) + bias + relu -------------
        out1 = jnp.dot(w1_ref[...], x, preferred_element_type=jnp.float32)
        out1 = jnp.maximum(out1 + b1_ref[...], 0.0)           # (c_mid_p, N) f32

        # ---- hierarchical 3x3 branches (Res2Net split/accumulate) -----------
        # Each branch: build the 9 shifted copies of sp (pltpu.roll along the
        # lane/spatial axis), zero out-of-image taps with the precomputed mask,
        # and contract all 9 taps in ONE K = 9*wp matmul.  Rolls wrapping across
        # image boundaries are harmless: those taps are exactly the masked ones.
        pieces = []
        sp = None
        for i in range(nums):
            chunk = out1[i * wp:(i + 1) * wp, :]              # 8-row aligned
            sp_in = chunk if i == 0 else sp + chunk           # (wp, N) f32
            taps = [sp_in if d == 0
                    else pltpu.roll(sp_in, (-d) % N, axis=1) * masks[t]
                    for t, d in enumerate(shifts)]
            stacked = jnp.concatenate(taps, axis=0)           # (9*wp, N) f32
            acc = jnp.dot(wbr_ref[i], stacked.astype(jnp.bfloat16),
                          preferred_element_type=jnp.float32)
            sp = jnp.maximum(acc + bbr_ref[i], 0.0)           # (wp, N)
            pieces.append(sp)
        if scale != 1:
            # last split passes through unprocessed (torch.cat with spx[-1])
            pieces.append(out1[nums * wp:, :])
        out2 = jnp.concatenate(pieces, axis=0)                # (c_mid_p, N) f32

        # ---- SE gate, computed PER IMAGE --------------------------------------
        # global avg pool via a block-diagonal pooling matmul -> (c_mid_p, Bb)
        y = jnp.dot(out2.astype(jnp.bfloat16), pool_ref[...],
                    preferred_element_type=jnp.float32)
        h1 = jnp.dot(fc1w_ref[...], y.astype(jnp.bfloat16),
                     preferred_element_type=jnp.float32)
        h1 = jnp.maximum(h1 + fc1b_ref[...], 0.0)             # (c_hid_p, Bb)
        z = jnp.dot(fc2w_ref[...], h1.astype(jnp.bfloat16),
                    preferred_element_type=jnp.float32) + fc2b_ref[...]
        gate = pl.reciprocal(1.0 + jnp.exp(-z), approx=True)  # sigmoid via EUP

        # broadcast each image's gate column over its HW lanes (f32, exact path)
        gated = [out2[:, k * HW:(k + 1) * HW] * gate[:, k:k + 1]
                 for k in range(Bb)]
        out2g = gated[0] if Bb == 1 else jnp.concatenate(gated, axis=1)

        # ---- conv3 (1x1, BN folded) + bias + residual + relu ----------------
        out3 = jnp.dot(w3_ref[...], out2g.astype(jnp.bfloat16),
                       preferred_element_type=jnp.float32)
        o_ref[0] = jnp.maximum(out3 + b3_ref[...] + x.astype(jnp.float32),
                               0.0).astype(o_ref.dtype)

    return kernel


# --------------------------------------------------------------------------- #
# Host-side constants (boundary mask + per-image pooling matrix)
# --------------------------------------------------------------------------- #
@functools.lru_cache(maxsize=None)
def _mask_and_pool(H, W, Bb):
    HW = H * W
    hh = np.arange(H).reshape(H, 1)
    ww = np.arange(W).reshape(1, W)
    rows = []
    for dy in (-1, 0, 1):
        for dx in (-1, 0, 1):
            valid = ((hh + dy >= 0) & (hh + dy < H) &
                     (ww + dx >= 0) & (ww + dx < W)).astype(np.float32)
            rows.append(np.tile(valid.reshape(1, HW), (1, Bb)))
    mask = jnp.asarray(np.concatenate(rows, axis=0))          # (9, Bb*HW) f32
    pool = np.zeros((Bb * HW, Bb), np.float32)                # block-diag mean
    for k in range(Bb):
        pool[k * HW:(k + 1) * HW, k] = 1.0 / HW
    return mask, jnp.asarray(pool, jnp.bfloat16)


def _pick_batch_block(B, batch_block):
    bb = 1
    for d in range(1, min(B, batch_block) + 1):
        if B % d == 0:
            bb = d
    return bb


# --------------------------------------------------------------------------- #
# Wrapper
# --------------------------------------------------------------------------- #
def agmstb_forward(x_nchw, kparams, cfg, *, batch_block=8):
    """batch_block: max images folded into one grid step.  VMEM scales with it;
    on v7x (64 MiB physical) use roughly half the value you would on v6e/v5e,
    and keep B/Bb >= 2 (ideally even) so both v7x TensorCores get work."""
    B, Cin, H, W = x_nchw.shape
    HW = H * W
    c_out, c_mid_p, c_hid_p = cfg["c_out"], cfg["c_mid_p"], cfg["c_hid_p"]
    nums = cfg["nums"]
    Bb = _pick_batch_block(B, batch_block)
    nb = B // Bb
    N = Bb * HW

    # Fold Bb images into the lane axis: (nb, Cin, Bb*HW), bf16 (halves input DMA).
    x = (x_nchw.reshape(nb, Bb, Cin, HW)
         .transpose(0, 2, 1, 3)
         .reshape(nb, Cin, N)
         .astype(jnp.bfloat16))

    mask, pool = _mask_and_pool(H, W, Bb)
    plist = [mask, kparams["w1"], kparams["b1"], kparams["wbr"], kparams["bbr"],
             kparams["w3"], kparams["b3"], pool, kparams["fc1w"],
             kparams["fc1b"], kparams["fc2w"], kparams["fc2b"]]

    kernel = make_agmstb_kernel(H, W, nums, cfg["scale"], Bb)

    def full_spec(a):
        nd = a.ndim
        return pl.BlockSpec(a.shape, lambda b, _nd=nd: (0,) * _nd)

    param_bytes = sum(int(np.prod(p.shape)) * p.dtype.itemsize for p in plist)
    cost = pl.CostEstimate(
        flops=int(2 * B * HW * (c_mid_p * Cin + nums * 9 * WP * WP
                                + c_out * c_mid_p + c_mid_p * Bb)
                  + 4 * B * c_hid_p * c_mid_p),
        transcendentals=int(B * c_mid_p),
        bytes_accessed=int(B * Cin * HW * 2 + B * c_out * HW * 4 + param_bytes))

    out = pl.pallas_call(
        kernel,
        out_shape=jax.ShapeDtypeStruct((nb, c_out, N), jnp.float32),
        grid_spec=pltpu.PrefetchScalarGridSpec(
            num_scalar_prefetch=0,
            grid=(nb,),
            in_specs=[pl.BlockSpec((1, Cin, N), lambda b: (b, 0, 0))]
                     + [full_spec(a) for a in plist],
            out_specs=pl.BlockSpec((1, c_out, N), lambda b: (b, 0, 0)),
        ),
        compiler_params=pltpu.CompilerParams(
            dimension_semantics=("parallel",),      # v7x megacore; no-op v5e/v6e
            vmem_limit_bytes=32 * 1024 * 1024),
        cost_estimate=cost,
    )(x, *plist)

    # unfold lanes back to NCHW
    return (out.reshape(nb, c_out, Bb, HW)
            .transpose(0, 2, 1, 3)
            .reshape(B, c_out, H, W))


# --------------------------------------------------------------------------- #
# Parameter construction (raw torch-layout params, eval-mode BN)
# --------------------------------------------------------------------------- #
def init_params(key, ratio, inplanes, planes, reduced_dim=32, scale=8,
                expansion=8, eps=1e-5):
    width = int(math.floor(planes * (reduced_dim / 64.0)))
    c_mid = width * scale
    c_out = planes * expansion
    nums = 1 if scale == 1 else scale - 1
    c_hid = c_mid // ratio
    ks = jax.random.split(key, 10)

    def bn_fold(k, c):
        kg, kb, km, kv = jax.random.split(k, 4)
        gamma = jax.random.normal(kg, (c,)) * 0.1 + 1.0
        beta = jax.random.normal(kb, (c,)) * 0.1
        mean = jax.random.normal(km, (c,)) * 0.1
        var = jax.random.uniform(kv, (c,), minval=0.5, maxval=1.5)
        s = gamma / jnp.sqrt(var + eps)
        b = beta - mean * s
        return s.astype(jnp.float32), b.astype(jnp.float32)

    w1 = (jax.random.normal(ks[0], (c_mid, inplanes)) * 0.1).astype(jnp.float32)
    s1, b1 = bn_fold(ks[1], c_mid)

    wbr = (jax.random.normal(ks[2], (nums, width, width, 3, 3)) * 0.1
           ).astype(jnp.float32)                           # torch OIHW per branch
    bn_keys = jax.random.split(ks[3], nums)
    sbr_l, bbr_l = [], []
    for i in range(nums):
        s_i, b_i = bn_fold(bn_keys[i], width)
        sbr_l.append(s_i)
        bbr_l.append(b_i)
    sbr = jnp.stack(sbr_l)
    bbr = jnp.stack(bbr_l)

    w3 = (jax.random.normal(ks[4], (c_out, c_mid)) * 0.1).astype(jnp.float32)
    s3, b3 = bn_fold(ks[5], c_out)

    fc1w = (jax.random.normal(ks[6], (c_hid, c_mid)) * 0.2).astype(jnp.float32)
    fc1b = (jax.random.normal(ks[7], (c_hid,)) * 0.1).astype(jnp.float32)
    fc2w = (jax.random.normal(ks[8], (c_mid, c_hid)) * 0.2).astype(jnp.float32)
    fc2b = (jax.random.normal(ks[9], (c_mid,)) * 0.1).astype(jnp.float32)

    raw = dict(w1=w1, s1=s1, b1=b1, wbr=wbr, sbr=sbr, bbr=bbr,
               w3=w3, s3=s3, b3=b3, fc1w=fc1w, fc1b=fc1b, fc2w=fc2w, fc2b=fc2b)
    cfg = dict(width=width, scale=scale, nums=nums, c_mid=c_mid,
               c_out=c_out, c_hid=c_hid)
    return raw, cfg


def prep_kernel_params(raw, cfg):
    """Fold BN into weights, pad per-branch width to WP=8 sublanes (all pad
    weights/biases strictly zero so padded channels stay exactly zero through
    the gate and conv3), pack 3x3 weights for the fused 9-tap matmul, bf16-cast
    all matmul weights."""
    width, nums, scale = cfg["width"], cfg["nums"], cfg["scale"]
    c_mid, c_out, c_hid = cfg["c_mid"], cfg["c_out"], cfg["c_hid"]
    wp = WP
    c_mid_p = wp * scale
    c_hid_p = max(wp, ((c_hid + wp - 1) // wp) * wp)

    # channel j = split*width + c  ->  padded row/col  split*wp + c
    ch_map = np.array([(j // width) * wp + (j % width) for j in range(c_mid)])

    w1p = np.zeros((c_mid_p, np.asarray(raw["w1"]).shape[1]), np.float32)
    w1p[ch_map, :] = np.asarray(raw["w1"] * raw["s1"][:, None])
    b1p = np.zeros((c_mid_p, 1), np.float32)
    b1p[ch_map, 0] = np.asarray(raw["b1"])

    # 3x3 weights (nums, O, I, ky, kx) -> (nums, wp, 9*wp), tap-major K, BN folded
    wbr_raw = np.asarray(raw["wbr"])
    sbr = np.asarray(raw["sbr"])
    wbrp = np.zeros((nums, wp, 9 * wp), np.float32)
    for i in range(nums):
        for t in range(9):
            ky, kx = divmod(t, 3)
            wbrp[i, :width, t * wp:t * wp + width] = \
                wbr_raw[i, :, :, ky, kx] * sbr[i][:, None]
    bbrp = np.zeros((nums, wp, 1), np.float32)
    bbrp[:, :width, 0] = np.asarray(raw["bbr"])

    w3p = np.zeros((c_out, c_mid_p), np.float32)
    w3p[:, ch_map] = np.asarray(raw["w3"] * raw["s3"][:, None])
    b3p = np.asarray(raw["b3"]).reshape(c_out, 1).astype(np.float32)

    fc1wp = np.zeros((c_hid_p, c_mid_p), np.float32)
    fc1wp[np.ix_(np.arange(c_hid), ch_map)] = np.asarray(raw["fc1w"])
    fc1bp = np.zeros((c_hid_p, 1), np.float32)
    fc1bp[:c_hid, 0] = np.asarray(raw["fc1b"])
    fc2wp = np.zeros((c_mid_p, c_hid_p), np.float32)
    fc2wp[np.ix_(ch_map, np.arange(c_hid))] = np.asarray(raw["fc2w"])
    fc2bp = np.zeros((c_mid_p, 1), np.float32)
    fc2bp[ch_map, 0] = np.asarray(raw["fc2b"])

    kparams = dict(
        w1=jnp.asarray(w1p, jnp.bfloat16), b1=jnp.asarray(b1p),
        wbr=jnp.asarray(wbrp, jnp.bfloat16), bbr=jnp.asarray(bbrp),
        w3=jnp.asarray(w3p, jnp.bfloat16), b3=jnp.asarray(b3p),
        fc1w=jnp.asarray(fc1wp, jnp.bfloat16), fc1b=jnp.asarray(fc1bp),
        fc2w=jnp.asarray(fc2wp, jnp.bfloat16), fc2b=jnp.asarray(fc2bp))
    cfg2 = dict(cfg, c_mid_p=c_mid_p, c_hid_p=c_hid_p)
    return kparams, cfg2


# --------------------------------------------------------------------------- #
# Pure-JAX f32 reference (eval-mode BN), NCHW
# --------------------------------------------------------------------------- #
def agmstb_ref(x, raw, cfg):
    width, scale, nums = cfg["width"], cfg["scale"], cfg["nums"]

    def bn(v, s, b):
        return v * s[None, :, None, None] + b[None, :, None, None]

    out = jnp.einsum("oc,bchw->bohw", raw["w1"], x)
    out = jnp.maximum(bn(out, raw["s1"], raw["b1"]), 0.0)
    sp = None
    outs = []
    for i in range(nums):
        chunk = out[:, i * width:(i + 1) * width]
        sp = chunk if i == 0 else sp + chunk
        sp = jax.lax.conv_general_dilated(
            sp, raw["wbr"][i], window_strides=(1, 1), padding="SAME",
            dimension_numbers=("NCHW", "OIHW", "NCHW"))
        sp = jnp.maximum(bn(sp, raw["sbr"][i], raw["bbr"][i]), 0.0)
        outs.append(sp)
    if scale != 1:
        outs.append(out[:, nums * width:])
    out2 = jnp.concatenate(outs, axis=1)
    y = jnp.mean(out2, axis=(2, 3))
    h1 = jnp.maximum(y @ raw["fc1w"].T + raw["fc1b"], 0.0)
    gate = jax.nn.sigmoid(h1 @ raw["fc2w"].T + raw["fc2b"])
    out2 = out2 * gate[:, :, None, None]
    out3 = jnp.einsum("oc,bchw->bohw", raw["w3"], out2)
    out3 = bn(out3, raw["s3"], raw["b3"])
    return jnp.maximum(out3 + x, 0.0)


if __name__ == "__main__":
    key = jax.random.PRNGKey(0)
    kx, kp = jax.random.split(key)

    # AGMSTB(ratio=4, inplanes=32, planes=4) -> width=2, scale=8, expansion=8,
    # so c_mid = 16, c_out = 32 == inplanes (residual add valid), stride=1.
    ratio, inplanes, planes = 4, 32, 4
    B, H, W = 2, 16, 16

    raw, cfg = init_params(kp, ratio, inplanes, planes)
    kparams, cfg = prep_kernel_params(raw, cfg)
    x = jax.random.normal(kx, (B, inplanes, H, W), dtype=jnp.float32)

    out = agmstb_forward(x, kparams, cfg)
    out = jax.block_until_ready(out)

    ref = agmstb_ref(x, raw, cfg)
    err = float(np.max(np.abs(np.asarray(out) - np.asarray(ref))))
    # tolerance covers bf16 matmul operands, bf16 input/residual and the
    # approx-reciprocal sigmoid in-kernel
    if not np.allclose(np.asarray(out), np.asarray(ref), rtol=3e-2, atol=4e-2):
        raise AssertionError(
            f"Pallas kernel output mismatch vs JAX reference (max abs err {err:.4f})")
    print("KERNEL_OK")
</pallas_src>

<mosaic_0001>
module attributes {stable_mosaic.version = 11 : i64} {
  func.func @kernel(%arg0: i32, %arg1: memref<1x32x512xbf16, #tpu.memory_space<vmem>>, %arg2: memref<9x512xf32, #tpu.memory_space<vmem>>, %arg3: memref<64x32xbf16, #tpu.memory_space<vmem>>, %arg4: memref<64x1xf32, #tpu.memory_space<vmem>>, %arg5: memref<7x8x72xbf16, #tpu.memory_space<vmem>>, %arg6: memref<7x8x1xf32, #tpu.memory_space<vmem>>, %arg7: memref<32x64xbf16, #tpu.memory_space<vmem>>, %arg8: memref<32x1xf32, #tpu.memory_space<vmem>>, %arg9: memref<512x2xbf16, #tpu.memory_space<vmem>>, %arg10: memref<8x64xbf16, #tpu.memory_space<vmem>>, %arg11: memref<8x1xf32, #tpu.memory_space<vmem>>, %arg12: memref<64x8xbf16, #tpu.memory_space<vmem>>, %arg13: memref<64x1xf32, #tpu.memory_space<vmem>>, %arg14: memref<1x32x512xf32, #tpu.memory_space<vmem>>) attributes {dimension_semantics = [#tpu.dimension_semantics<parallel>], iteration_bounds = array<i64: 1>, scalar_prefetch = 0 : i64, scratch_operands = 0 : i64, tpu.core_type = #tpu.core_type<tc>, window_params = [{transform_indices = @transform_0, window_bounds = array<i64: 1, 32, 512>}, {pipeline_mode = #tpu.pipeline_mode<synchronous>, transform_indices = @transform_1, window_bounds = array<i64: 9, 512>}, {pipeline_mode = #tpu.pipeline_mode<synchronous>, transform_indices = @transform_2, window_bounds = array<i64: 64, 32>}, {pipeline_mode = #tpu.pipeline_mode<synchronous>, transform_indices = @transform_3, window_bounds = array<i64: 64, 1>}, {pipeline_mode = #tpu.pipeline_mode<synchronous>, transform_indices = @transform_4, window_bounds = array<i64: 7, 8, 72>}, {pipeline_mode = #tpu.pipeline_mode<synchronous>, transform_indices = @transform_5, window_bounds = array<i64: 7, 8, 1>}, {pipeline_mode = #tpu.pipeline_mode<synchronous>, transform_indices = @transform_6, window_bounds = array<i64: 32, 64>}, {pipeline_mode = #tpu.pipeline_mode<synchronous>, transform_indices = @transform_7, window_bounds = array<i64: 32, 1>}, {pipeline_mode = #tpu.pipeline_mode<synchronous>, transform_indices = @transform_8, window_bounds = array<i64: 512, 2>}, {pipeline_mode = #tpu.pipeline_mode<synchronous>, transform_indices = @transform_9, window_bounds = array<i64: 8, 64>}, {pipeline_mode = #tpu.pipeline_mode<synchronous>, transform_indices = @transform_10, window_bounds = array<i64: 8, 1>}, {pipeline_mode = #tpu.pipeline_mode<synchronous>, transform_indices = @transform_11, window_bounds = array<i64: 64, 8>}, {pipeline_mode = #tpu.pipeline_mode<synchronous>, transform_indices = @transform_12, window_bounds = array<i64: 64, 1>}, {transform_indices = @transform_13, window_bounds = array<i64: 1, 32, 512>}]} {
    %c0 = arith.constant 0 : index
    %c0_0 = arith.constant 0 : index
    %c0_1 = arith.constant 0 : index
    %0 = vector.load %arg1[%c0, %c0_0, %c0_1] : memref<1x32x512xbf16, #tpu.memory_space<vmem>>, vector<1x32x512xbf16>
    %1 = vector.shape_cast %0 : vector<1x32x512xbf16> to vector<32x512xbf16>
    %c0_2 = arith.constant 0 : index
    %c0_3 = arith.constant 0 : index
    %2 = vector.load %arg2[%c0_2, %c0_3] : memref<9x512xf32, #tpu.memory_space<vmem>>, vector<9x512xf32>
    %3 = vector.extract_strided_slice %2 {offsets = [0, 0], sizes = [1, 512], strides = [1, 1]} : vector<9x512xf32> to vector<1x512xf32>
    %4 = vector.shape_cast %3 : vector<1x512xf32> to vector<1x512xf32>
    %5 = vector.broadcast %4 : vector<1x512xf32> to vector<8x512xf32>
    %6 = vector.extract_strided_slice %2 {offsets = [1, 0], sizes = [1, 512], strides = [1, 1]} : vector<9x512xf32> to vector<1x512xf32>
    %7 = vector.shape_cast %6 : vector<1x512xf32> to vector<1x512xf32>
    %8 = vector.broadcast %7 : vector<1x512xf32> to vector<8x512xf32>
    %9 = vector.extract_strided_slice %2 {offsets = [2, 0], sizes = [1, 512], strides = [1, 1]} : vector<9x512xf32> to vector<1x512xf32>
    %10 = vector.shape_cast %9 : vector<1x512xf32> to vector<1x512xf32>
    %11 = vector.broadcast %10 : vector<1x512xf32> to vector<8x512xf32>
    %12 = vector.extract_strided_slice %2 {offsets = [3, 0], sizes = [1, 512], strides = [1, 1]} : vector<9x512xf32> to vector<1x512xf32>
    %13 = vector.shape_cast %12 : vector<1x512xf32> to vector<1x512xf32>
    %14 = vector.broadcast %13 : vector<1x512xf32> to vector<8x512xf32>
    %15 = vector.extract_strided_slice %2 {offsets = [5, 0], sizes = [1, 512], strides = [1, 1]} : vector<9x512xf32> to vector<1x512xf32>
    %16 = vector.shape_cast %15 : vector<1x512xf32> to vector<1x512xf32>
    %17 = vector.broadcast %16 : vector<1x512xf32> to vector<8x512xf32>
    %18 = vector.extract_strided_slice %2 {offsets = [6, 0], sizes = [1, 512], strides = [1, 1]} : vector<9x512xf32> to vector<1x512xf32>
    %19 = vector.shape_cast %18 : vector<1x512xf32> to vector<1x512xf32>
    %20 = vector.broadcast %19 : vector<1x512xf32> to vector<8x512xf32>
    %21 = vector.extract_strided_slice %2 {offsets = [7, 0], sizes = [1, 512], strides = [1, 1]} : vector<9x512xf32> to vector<1x512xf32>
    %22 = vector.shape_cast %21 : vector<1x512xf32> to vector<1x512xf32>
    %23 = vector.broadcast %22 : vector<1x512xf32> to vector<8x512xf32>
    %24 = vector.extract_strided_slice %2 {offsets = [8, 0], sizes = [1, 512], strides = [1, 1]} : vector<9x512xf32> to vector<1x512xf32>
    %25 = vector.shape_cast %24 : vector<1x512xf32> to vector<1x512xf32>
    %26 = vector.broadcast %25 : vector<1x512xf32> to vector<8x512xf32>
    %c0_4 = arith.constant 0 : index
    %c0_5 = arith.constant 0 : index
    %27 = vector.load %arg3[%c0_4, %c0_5] : memref<64x32xbf16, #tpu.memory_space<vmem>>, vector<64x32xbf16>
    %cst = arith.constant dense<0.000000e+00> : vector<64x512xf32>
    %28 = tpu.matmul %27, %1, %cst {dimension_numbers = #tpu.dot_dimension_numbers<[1], [0], [0], [1], [0, 0, 1, 1], [], []>} : vector<64x32xbf16>, vector<32x512xbf16>, vector<64x512xf32> -> vector<64x512xf32>
    %c0_6 = arith.constant 0 : index
    %c0_7 = arith.constant 0 : index
    %29 = vector.load %arg4[%c0_6, %c0_7] : memref<64x1xf32, #tpu.memory_space<vmem>>, vector<64x1xf32>
    %30 = vector.broadcast %29 : vector<64x1xf32> to vector<64x512xf32>
    %31 = arith.addf %28, %30 : vector<64x512xf32>
    %cst_8 = arith.constant 0.000000e+00 : f32
    %32 = vector.broadcast %cst_8 : f32 to vector<64x512xf32>
    %33 = arith.maximumf %31, %32 : vector<64x512xf32>
    %34 = vector.extract_strided_slice %33 {offsets = [0, 0], sizes = [8, 512], strides = [1, 1]} : vector<64x512xf32> to vector<8x512xf32>
    %c17_i32 = arith.constant 17 : i32
    %35 = tpu.dynamic_rotate %34 by %c17_i32 dim 1 : vector<8x512xf32>, i32 -> vector<8x512xf32>
    %36 = arith.mulf %35, %5 : vector<8x512xf32>
    %c16_i32 = arith.constant 16 : i32
    %37 = tpu.dynamic_rotate %34 by %c16_i32 dim 1 : vector<8x512xf32>, i32 -> vector<8x512xf32>
    %38 = arith.mulf %37, %8 : vector<8x512xf32>
    %c15_i32 = arith.constant 15 : i32
    %39 = tpu.dynamic_rotate %34 by %c15_i32 dim 1 : vector<8x512xf32>, i32 -> vector<8x512xf32>
    %40 = arith.mulf %39, %11 : vector<8x512xf32>
    %c1_i32 = arith.constant 1 : i32
    %41 = tpu.dynamic_rotate %34 by %c1_i32 dim 1 : vector<8x512xf32>, i32 -> vector<8x512xf32>
    %42 = arith.mulf %41, %14 : vector<8x512xf32>
    %c511_i32 = arith.constant 511 : i32
    %43 = tpu.dynamic_rotate %34 by %c511_i32 dim 1 : vector<8x512xf32>, i32 -> vector<8x512xf32>
    %44 = arith.mulf %43, %17 : vector<8x512xf32>
    %c497_i32 = arith.constant 497 : i32
    %45 = tpu.dynamic_rotate %34 by %c497_i32 dim 1 : vector<8x512xf32>, i32 -> vector<8x512xf32>
    %46 = arith.mulf %45, %20 : vector<8x512xf32>
    %c496_i32 = arith.constant 496 : i32
    %47 = tpu.dynamic_rotate %34 by %c496_i32 dim 1 : vector<8x512xf32>, i32 -> vector<8x512xf32>
    %48 = arith.mulf %47, %23 : vector<8x512xf32>
    %c495_i32 = arith.constant 495 : i32
    %49 = tpu.dynamic_rotate %34 by %c495_i32 dim 1 : vector<8x512xf32>, i32 -> vector<8x512xf32>
    %50 = arith.mulf %49, %26 : vector<8x512xf32>
    %51 = tpu.concatenate %36, %38, %40, %42, %34, %44, %46, %48, %50 in 0 : vector<8x512xf32>, vector<8x512xf32>, vector<8x512xf32>, vector<8x512xf32>, vector<8x512xf32>, vector<8x512xf32>, vector<8x512xf32>, vector<8x512xf32>, vector<8x512xf32> -> vector<72x512xf32>
    %c0_9 = arith.constant 0 : index
    %c0_10 = arith.constant 0 : index
    %c0_11 = arith.constant 0 : index
    %52 = vector.load %arg5[%c0_9, %c0_10, %c0_11] : memref<7x8x72xbf16, #tpu.memory_space<vmem>>, vector<1x8x72xbf16>
    %53 = vector.shape_cast %52 : vector<1x8x72xbf16> to vector<8x72xbf16>
    %54 = arith.truncf %51 : vector<72x512xf32> to vector<72x512xbf16>
    %cst_12 = arith.constant dense<0.000000e+00> : vector<8x512xf32>
    %55 = tpu.matmul %53, %54, %cst_12 {dimension_numbers = #tpu.dot_dimension_numbers<[1], [0], [0], [1], [0, 0, 1, 1], [], []>} : vector<8x72xbf16>, vector<72x512xbf16>, vector<8x512xf32> -> vector<8x512xf32>
    %c0_13 = arith.constant 0 : index
    %c0_14 = arith.constant 0 : index
    %c0_15 = arith.constant 0 : index
    %56 = vector.load %arg6[%c0_13, %c0_14, %c0_15] : memref<7x8x1xf32, #tpu.memory_space<vmem>>, vector<1x8x1xf32>
    %57 = vector.shape_cast %56 : vector<1x8x1xf32> to vector<8x1xf32>
    %58 = vector.broadcast %57 : vector<8x1xf32> to vector<8x512xf32>
    %59 = arith.addf %55, %58 : vector<8x512xf32>
    %cst_16 = arith.constant 0.000000e+00 : f32
    %60 = vector.broadcast %cst_16 : f32 to vector<8x512xf32>
    %61 = arith.maximumf %59, %60 : vector<8x512xf32>
    %62 = vector.extract_strided_slice %33 {offsets = [8, 0], sizes = [8, 512], strides = [1, 1]} : vector<64x512xf32> to vector<8x512xf32>
    %63 = arith.addf %61, %62 : vector<8x512xf32>
    %c17_i32_17 = arith.constant 17 : i32
    %64 = tpu.dynamic_rotate %63 by %c17_i32_17 dim 1 : vector<8x512xf32>, i32 -> vector<8x512xf32>
    %65 = arith.mulf %64, %5 : vector<8x512xf32>
    %c16_i32_18 = arith.constant 16 : i32
    %66 = tpu.dynamic_rotate %63 by %c16_i32_18 dim 1 : vector<8x512xf32>, i32 -> vector<8x512xf32>
    %67 = arith.mulf %66, %8 : vector<8x512xf32>
    %c15_i32_19 = arith.constant 15 : i32
    %68 = tpu.dynamic_rotate %63 by %c15_i32_19 dim 1 : vector<8x512xf32>, i32 -> vector<8x512xf32>
    %69 = arith.mulf %68, %11 : vector<8x512xf32>
    %c1_i32_20 = arith.constant 1 : i32
    %70 = tpu.dynamic_rotate %63 by %c1_i32_20 dim 1 : vector<8x512xf32>, i32 -> vector<8x512xf32>
    %71 = arith.mulf %70, %14 : vector<8x512xf32>
    %c511_i32_21 = arith.constant 511 : i32
    %72 = tpu.dynamic_rotate %63 by %c511_i32_21 dim 1 : vector<8x512xf32>, i32 -> vector<8x512xf32>
    %73 = arith.mulf %72, %17 : vector<8x512xf32>
    %c497_i32_22 = arith.constant 497 : i32
    %74 = tpu.dynamic_rotate %63 by %c497_i32_22 dim 1 : vector<8x512xf32>, i32 -> vector<8x512xf32>
    %75 = arith.mulf %74, %20 : vector<8x512xf32>
    %c496_i32_23 = arith.constant 496 : i32
    %76 = tpu.dynamic_rotate %63 by %c496_i32_23 dim 1 : vector<8x512xf32>, i32 -> vector<8x512xf32>
    %77 = arith.mulf %76, %23 : vector<8x512xf32>
    %c495_i32_24 = arith.constant 495 : i32
    %78 = tpu.dynamic_rotate %63 by %c495_i32_24 dim 1 : vector<8x512xf32>, i32 -> vector<8x512xf32>
    %79 = arith.mulf %78, %26 : vector<8x512xf32>
    %80 = tpu.concatenate %65, %67, %69, %71, %63, %73, %75, %77, %79 in 0 : vector<8x512xf32>, vector<8x512xf32>, vector<8x512xf32>, vector<8x512xf32>, vector<8x512xf32>, vector<8x512xf32>, vector<8x512xf32>, vector<8x512xf32>, vector<8x512xf32> -> vector<72x512xf32>
    %c1 = arith.constant 1 : index
    %c0_25 = arith.constant 0 : index
    %c0_26 = arith.constant 0 : index
    %81 = vector.load %arg5[%c1, %c0_25, %c0_26] : memref<7x8x72xbf16, #tpu.memory_space<vmem>>, vector<1x8x72xbf16>
    %82 = vector.shape_cast %81 : vector<1x8x72xbf16> to vector<8x72xbf16>
    %83 = arith.truncf %80 : vector<72x512xf32> to vector<72x512xbf16>
    %cst_27 = arith.constant dense<0.000000e+00> : vector<8x512xf32>
    %84 = tpu.matmul %82, %83, %cst_27 {dimension_numbers = #tpu.dot_dimension_numbers<[1], [0], [0], [1], [0, 0, 1, 1], [], []>} : vector<8x72xbf16>, vector<72x512xbf16>, vector<8x512xf32> -> vector<8x512xf32>
    %c1_28 = arith.constant 1 : index
    %c0_29 = arith.constant 0 : index
    %c0_30 = arith.constant 0 : index
    %85 = vector.load %arg6[%c1_28, %c0_29, %c0_30] : memref<7x8x1xf32, #tpu.memory_space<vmem>>, vector<1x8x1xf32>
    %86 = vector.shape_cast %85 : vector<1x8x1xf32> to vector<8x1xf32>
    %87 = vector.broadcast %86 : vector<8x1xf32> to vector<8x512xf32>
    %88 = arith.addf %84, %87 : vector<8x512xf32>
    %cst_31 = arith.constant 0.000000e+00 : f32
    %89 = vector.broadcast %cst_31 : f32 to vector<8x512xf32>
    %90 = arith.maximumf %88, %89 : vector<8x512xf32>
    %91 = vector.extract_strided_slice %33 {offsets = [16, 0], sizes = [8, 512], strides = [1, 1]} : vector<64x512xf32> to vector<8x512xf32>
    %92 = arith.addf %90, %91 : vector<8x512xf32>
    %c17_i32_32 = arith.constant 17 : i32
    %93 = tpu.dynamic_rotate %92 by %c17_i32_32 dim 1 : vector<8x512xf32>, i32 -> vector<8x512xf32>
    %94 = arith.mulf %93, %5 : vector<8x512xf32>
    %c16_i32_33 = arith.constant 16 : i32
    %95 = tpu.dynamic_rotate %92 by %c16_i32_33 dim 1 : vector<8x512xf32>, i32 -> vector<8x512xf32>
    %96 = arith.mulf %95, %8 : vector<8x512xf32>
    %c15_i32_34 = arith.constant 15 : i32
    %97 = tpu.dynamic_rotate %92 by %c15_i32_34 dim 1 : vector<8x512xf32>, i32 -> vector<8x512xf32>
    %98 = arith.mulf %97, %11 : vector<8x512xf32>
    %c1_i32_35 = arith.constant 1 : i32
    %99 = tpu.dynamic_rotate %92 by %c1_i32_35 dim 1 : vector<8x512xf32>, i32 -> vector<8x512xf32>
    %100 = arith.mulf %99, %14 : vector<8x512xf32>
    %c511_i32_36 = arith.constant 511 : i32
    %101 = tpu.dynamic_rotate %92 by %c511_i32_36 dim 1 : vector<8x512xf32>, i32 -> vector<8x512xf32>
    %102 = arith.mulf %101, %17 : vector<8x512xf32>
    %c497_i32_37 = arith.constant 497 : i32
    %103 = tpu.dynamic_rotate %92 by %c497_i32_37 dim 1 : vector<8x512xf32>, i32 -> vector<8x512xf32>
    %104 = arith.mulf %103, %20 : vector<8x512xf32>
    %c496_i32_38 = arith.constant 496 : i32
    %105 = tpu.dynamic_rotate %92 by %c496_i32_38 dim 1 : vector<8x512xf32>, i32 -> vector<8x512xf32>
    %106 = arith.mulf %105, %23 : vector<8x512xf32>
    %c495_i32_39 = arith.constant 495 : i32
    %107 = tpu.dynamic_rotate %92 by %c495_i32_39 dim 1 : vector<8x512xf32>, i32 -> vector<8x512xf32>
    %108 = arith.mulf %107, %26 : vector<8x512xf32>
    %109 = tpu.concatenate %94, %96, %98, %100, %92, %102, %104, %106, %108 in 0 : vector<8x512xf32>, vector<8x512xf32>, vector<8x512xf32>, vector<8x512xf32>, vector<8x512xf32>, vector<8x512xf32>, vector<8x512xf32>, vector<8x512xf32>, vector<8x512xf32> -> vector<72x512xf32>
    %c2 = arith.constant 2 : index
    %c0_40 = arith.constant 0 : index
    %c0_41 = arith.constant 0 : index
    %110 = vector.load %arg5[%c2, %c0_40, %c0_41] : memref<7x8x72xbf16, #tpu.memory_space<vmem>>, vector<1x8x72xbf16>
    %111 = vector.shape_cast %110 : vector<1x8x72xbf16> to vector<8x72xbf16>
    %112 = arith.truncf %109 : vector<72x512xf32> to vector<72x512xbf16>
    %cst_42 = arith.constant dense<0.000000e+00> : vector<8x512xf32>
    %113 = tpu.matmul %111, %112, %cst_42 {dimension_numbers = #tpu.dot_dimension_numbers<[1], [0], [0], [1], [0, 0, 1, 1], [], []>} : vector<8x72xbf16>, vector<72x512xbf16>, vector<8x512xf32> -> vector<8x512xf32>
    %c2_43 = arith.constant 2 : index
    %c0_44 = arith.constant 0 : index
    %c0_45 = arith.constant 0 : index
    %114 = vector.load %arg6[%c2_43, %c0_44, %c0_45] : memref<7x8x1xf32, #tpu.memory_space<vmem>>, vector<1x8x1xf32>
    %115 = vector.shape_cast %114 : vector<1x8x1xf32> to vector<8x1xf32>
    %116 = vector.broadcast %115 : vector<8x1xf32> to vector<8x512xf32>
    %117 = arith.addf %113, %116 : vector<8x512xf32>
    %cst_46 = arith.constant 0.000000e+00 : f32
    %118 = vector.broadcast %cst_46 : f32 to vector<8x512xf32>
    %119 = arith.maximumf %117, %118 : vector<8x512xf32>
    %120 = vector.extract_strided_slice %33 {offsets = [24, 0], sizes = [8, 512], strides = [1, 1]} : vector<64x512xf32> to vector<8x512xf32>
    %121 = arith.addf %119, %120 : vector<8x512xf32>
    %c17_i32_47 = arith.constant 17 : i32
    %122 = tpu.dynamic_rotate %121 by %c17_i32_47 dim 1 : vector<8x512xf32>, i32 -> vector<8x512xf32>
    %123 = arith.mulf %122, %5 : vector<8x512xf32>
    %c16_i32_48 = arith.constant 16 : i32
    %124 = tpu.dynamic_rotate %121 by %c16_i32_48 dim 1 : vector<8x512xf32>, i32 -> vector<8x512xf32>
    %125 = arith.mulf %124, %8 : vector<8x512xf32>
    %c15_i32_49 = arith.constant 15 : i32
    %126 = tpu.dynamic_rotate %121 by %c15_i32_49 dim 1 : vector<8x512xf32>, i32 -> vector<8x512xf32>
    %127 = arith.mulf %126, %11 : vector<8x512xf32>
    %c1_i32_50 = arith.constant 1 : i32
    %128 = tpu.dynamic_rotate %121 by %c1_i32_50 dim 1 : vector<8x512xf32>, i32 -> vector<8x512xf32>
    %129 = arith.mulf %128, %14 : vector<8x512xf32>
    %c511_i32_51 = arith.constant 511 : i32
    %130 = tpu.dynamic_rotate %121 by %c511_i32_51 dim 1 : vector<8x512xf32>, i32 -> vector<8x512xf32>
    %131 = arith.mulf %130, %17 : vector<8x512xf32>
    %c497_i32_52 = arith.constant 497 : i32
    %132 = tpu.dynamic_rotate %121 by %c497_i32_52 dim 1 : vector<8x512xf32>, i32 -> vector<8x512xf32>
    %133 = arith.mulf %132, %20 : vector<8x512xf32>
    %c496_i32_53 = arith.constant 496 : i32
    %134 = tpu.dynamic_rotate %121 by %c496_i32_53 dim 1 : vector<8x512xf32>, i32 -> vector<8x512xf32>
    %135 = arith.mulf %134, %23 : vector<8x512xf32>
    %c495_i32_54 = arith.constant 495 : i32
    %136 = tpu.dynamic_rotate %121 by %c495_i32_54 dim 1 : vector<8x512xf32>, i32 -> vector<8x512xf32>
    %137 = arith.mulf %136, %26 : vector<8x512xf32>
    %138 = tpu.concatenate %123, %125, %127, %129, %121, %131, %133, %135, %137 in 0 : vector<8x512xf32>, vector<8x512xf32>, vector<8x512xf32>, vector<8x512xf32>, vector<8x512xf32>, vector<8x512xf32>, vector<8x512xf32>, vector<8x512xf32>, vector<8x512xf32> -> vector<72x512xf32>
    %c3 = arith.constant 3 : index
    %c0_55 = arith.constant 0 : index
    %c0_56 = arith.constant 0 : index
    %139 = vector.load %arg5[%c3, %c0_55, %c0_56] : memref<7x8x72xbf16, #tpu.memory_space<vmem>>, vector<1x8x72xbf16>
    %140 = vector.shape_cast %139 : vector<1x8x72xbf16> to vector<8x72xbf16>
    %141 = arith.truncf %138 : vector<72x512xf32> to vector<72x512xbf16>
    %cst_57 = arith.constant dense<0.000000e+00> : vector<8x512xf32>
    %142 = tpu.matmul %140, %141, %cst_57 {dimension_numbers = #tpu.dot_dimension_numbers<[1], [0], [0], [1], [0, 0, 1, 1], [], []>} : vector<8x72xbf16>, vector<72x512xbf16>, vector<8x512xf32> -> vector<8x512xf32>
    %c3_58 = arith.constant 3 : index
    %c0_59 = arith.constant 0 : index
    %c0_60 = arith.constant 0 : index
    %143 = vector.load %arg6[%c3_58, %c0_59, %c0_60] : memref<7x8x1xf32, #tpu.memory_space<vmem>>, vector<1x8x1xf32>
    %144 = vector.shape_cast %143 : vector<1x8x1xf32> to vector<8x1xf32>
    %145 = vector.broadcast %144 : vector<8x1xf32> to vector<8x512xf32>
    %146 = arith.addf %142, %145 : vector<8x512xf32>
    %cst_61 = arith.constant 0.000000e+00 : f32
    %147 = vector.broadcast %cst_61 : f32 to vector<8x512xf32>
    %148 = arith.maximumf %146, %147 : vector<8x512xf32>
    %149 = vector.extract_strided_slice %33 {offsets = [32, 0], sizes = [8, 512], strides = [1, 1]} : vector<64x512xf32> to vector<8x512xf32>
    %150 = arith.addf %148, %149 : vector<8x512xf32>
    %c17_i32_62 = arith.constant 17 : i32
    %151 = tpu.dynamic_rotate %150 by %c17_i32_62 dim 1 : vector<8x512xf32>, i32 -> vector<8x512xf32>
    %152 = arith.mulf %151, %5 : vector<8x512xf32>
    %c16_i32_63 = arith.constant 16 : i32
    %153 = tpu.dynamic_rotate %150 by %c16_i32_63 dim 1 : vector<8x512xf32>, i32 -> vector<8x512xf32>
    %154 = arith.mulf %153, %8 : vector<8x512xf32>
    %c15_i32_64 = arith.constant 15 : i32
    %155 = tpu.dynamic_rotate %150 by %c15_i32_64 dim 1 : vector<8x512xf32>, i32 -> vector<8x512xf32>
    %156 = arith.mulf %155, %11 : vector<8x512xf32>
    %c1_i32_65 = arith.constant 1 : i32
    %157 = tpu.dynamic_rotate %150 by %c1_i32_65 dim 1 : vector<8x512xf32>, i32 -> vector<8x512xf32>
    %158 = arith.mulf %157, %14 : vector<8x512xf32>
    %c511_i32_66 = arith.constant 511 : i32
    %159 = tpu.dynamic_rotate %150 by %c511_i32_66 dim 1 : vector<8x512xf32>, i32 -> vector<8x512xf32>
    %160 = arith.mulf %159, %17 : vector<8x512xf32>
    %c497_i32_67 = arith.constant 497 : i32
    %161 = tpu.dynamic_rotate %150 by %c497_i32_67 dim 1 : vector<8x512xf32>, i32 -> vector<8x512xf32>
    %162 = arith.mulf %161, %20 : vector<8x512xf32>
    %c496_i32_68 = arith.constant 496 : i32
    %163 = tpu.dynamic_rotate %150 by %c496_i32_68 dim 1 : vector<8x512xf32>, i32 -> vector<8x512xf32>
    %164 = arith.mulf %163, %23 : vector<8x512xf32>
    %c495_i32_69 = arith.constant 495 : i32
    %165 = tpu.dynamic_rotate %150 by %c495_i32_69 dim 1 : vector<8x512xf32>, i32 -> vector<8x512xf32>
    %166 = arith.mulf %165, %26 : vector<8x512xf32>
    %167 = tpu.concatenate %152, %154, %156, %158, %150, %160, %162, %164, %166 in 0 : vector<8x512xf32>, vector<8x512xf32>, vector<8x512xf32>, vector<8x512xf32>, vector<8x512xf32>, vector<8x512xf32>, vector<8x512xf32>, vector<8x512xf32>, vector<8x512xf32> -> vector<72x512xf32>
    %c4 = arith.constant 4 : index
    %c0_70 = arith.constant 0 : index
    %c0_71 = arith.constant 0 : index
    %168 = vector.load %arg5[%c4, %c0_70, %c0_71] : memref<7x8x72xbf16, #tpu.memory_space<vmem>>, vector<1x8x72xbf16>
    %169 = vector.shape_cast %168 : vector<1x8x72xbf16> to vector<8x72xbf16>
    %170 = arith.truncf %167 : vector<72x512xf32> to vector<72x512xbf16>
    %cst_72 = arith.constant dense<0.000000e+00> : vector<8x512xf32>
    %171 = tpu.matmul %169, %170, %cst_72 {dimension_numbers = #tpu.dot_dimension_numbers<[1], [0], [0], [1], [0, 0, 1, 1], [], []>} : vector<8x72xbf16>, vector<72x512xbf16>, vector<8x512xf32> -> vector<8x512xf32>
    %c4_73 = arith.constant 4 : index
    %c0_74 = arith.constant 0 : index
    %c0_75 = arith.constant 0 : index
    %172 = vector.load %arg6[%c4_73, %c0_74, %c0_75] : memref<7x8x1xf32, #tpu.memory_space<vmem>>, vector<1x8x1xf32>
    %173 = vector.shape_cast %172 : vector<1x8x1xf32> to vector<8x1xf32>
    %174 = vector.broadcast %173 : vector<8x1xf32> to vector<8x512xf32>
    %175 = arith.addf %171, %174 : vector<8x512xf32>
    %cst_76 = arith.constant 0.000000e+00 : f32
    %176 = vector.broadcast %cst_76 : f32 to vector<8x512xf32>
    %177 = arith.maximumf %175, %176 : vector<8x512xf32>
    %178 = vector.extract_strided_slice %33 {offsets = [40, 0], sizes = [8, 512], strides = [1, 1]} : vector<64x512xf32> to vector<8x512xf32>
    %179 = arith.addf %177, %178 : vector<8x512xf32>
    %c17_i32_77 = arith.constant 17 : i32
    %180 = tpu.dynamic_rotate %179 by %c17_i32_77 dim 1 : vector<8x512xf32>, i32 -> vector<8x512xf32>
    %181 = arith.mulf %180, %5 : vector<8x512xf32>
    %c16_i32_78 = arith.constant 16 : i32
    %182 = tpu.dynamic_rotate %179 by %c16_i32_78 dim 1 : vector<8x512xf32>, i32 -> vector<8x512xf32>
    %183 = arith.mulf %182, %8 : vector<8x512xf32>
    %c15_i32_79 = arith.constant 15 : i32
    %184 = tpu.dynamic_rotate %179 by %c15_i32_79 dim 1 : vector<8x512xf32>, i32 -> vector<8x512xf32>
    %185 = arith.mulf %184, %11 : vector<8x512xf32>
    %c1_i32_80 = arith.constant 1 : i32
    %186 = tpu.dynamic_rotate %179 by %c1_i32_80 dim 1 : vector<8x512xf32>, i32 -> vector<8x512xf32>
    %187 = arith.mulf %186, %14 : vector<8x512xf32>
    %c511_i32_81 = arith.constant 511 : i32
    %188 = tpu.dynamic_rotate %179 by %c511_i32_81 dim 1 : vector<8x512xf32>, i32 -> vector<8x512xf32>
    %189 = arith.mulf %188, %17 : vector<8x512xf32>
    %c497_i32_82 = arith.constant 497 : i32
    %190 = tpu.dynamic_rotate %179 by %c497_i32_82 dim 1 : vector<8x512xf32>, i32 -> vector<8x512xf32>
    %191 = arith.mulf %190, %20 : vector<8x512xf32>
    %c496_i32_83 = arith.constant 496 : i32
    %192 = tpu.dynamic_rotate %179 by %c496_i32_83 dim 1 : vector<8x512xf32>, i32 -> vector<8x512xf32>
    %193 = arith.mulf %192, %23 : vector<8x512xf32>
    %c495_i32_84 = arith.constant 495 : i32
    %194 = tpu.dynamic_rotate %179 by %c495_i32_84 dim 1 : vector<8x512xf32>, i32 -> vector<8x512xf32>
    %195 = arith.mulf %194, %26 : vector<8x512xf32>
    %196 = tpu.concatenate %181, %183, %185, %187, %179, %189, %191, %193, %195 in 0 : vector<8x512xf32>, vector<8x512xf32>, vector<8x512xf32>, vector<8x512xf32>, vector<8x512xf32>, vector<8x512xf32>, vector<8x512xf32>, vector<8x512xf32>, vector<8x512xf32> -> vector<72x512xf32>
    %c5 = arith.constant 5 : index
    %c0_85 = arith.constant 0 : index
    %c0_86 = arith.constant 0 : index
    %197 = vector.load %arg5[%c5, %c0_85, %c0_86] : memref<7x8x72xbf16, #tpu.memory_space<vmem>>, vector<1x8x72xbf16>
    %198 = vector.shape_cast %197 : vector<1x8x72xbf16> to vector<8x72xbf16>
    %199 = arith.truncf %196 : vector<72x512xf32> to vector<72x512xbf16>
    %cst_87 = arith.constant dense<0.000000e+00> : vector<8x512xf32>
    %200 = tpu.matmul %198, %199, %cst_87 {dimension_numbers = #tpu.dot_dimension_numbers<[1], [0], [0], [1], [0, 0, 1, 1], [], []>} : vector<8x72xbf16>, vector<72x512xbf16>, vector<8x512xf32> -> vector<8x512xf32>
    %c5_88 = arith.constant 5 : index
    %c0_89 = arith.constant 0 : index
    %c0_90 = arith.constant 0 : index
    %201 = vector.load %arg6[%c5_88, %c0_89, %c0_90] : memref<7x8x1xf32, #tpu.memory_space<vmem>>, vector<1x8x1xf32>
    %202 = vector.shape_cast %201 : vector<1x8x1xf32> to vector<8x1xf32>
    %203 = vector.broadcast %202 : vector<8x1xf32> to vector<8x512xf32>
    %204 = arith.addf %200, %203 : vector<8x512xf32>
    %cst_91 = arith.constant 0.000000e+00 : f32
    %205 = vector.broadcast %cst_91 : f32 to vector<8x512xf32>
    %206 = arith.maximumf %204, %205 : vector<8x512xf32>
    %207 = vector.extract_strided_slice %33 {offsets = [48, 0], sizes = [8, 512], strides = [1, 1]} : vector<64x512xf32> to vector<8x512xf32>
    %208 = arith.addf %206, %207 : vector<8x512xf32>
    %c17_i32_92 = arith.constant 17 : i32
    %209 = tpu.dynamic_rotate %208 by %c17_i32_92 dim 1 : vector<8x512xf32>, i32 -> vector<8x512xf32>
    %210 = arith.mulf %209, %5 : vector<8x512xf32>
    %c16_i32_93 = arith.constant 16 : i32
    %211 = tpu.dynamic_rotate %208 by %c16_i32_93 dim 1 : vector<8x512xf32>, i32 -> vector<8x512xf32>
    %212 = arith.mulf %211, %8 : vector<8x512xf32>
    %c15_i32_94 = arith.constant 15 : i32
    %213 = tpu.dynamic_rotate %208 by %c15_i32_94 dim 1 : vector<8x512xf32>, i32 -> vector<8x512xf32>
    %214 = arith.mulf %213, %11 : vector<8x512xf32>
    %c1_i32_95 = arith.constant 1 : i32
    %215 = tpu.dynamic_rotate %208 by %c1_i32_95 dim 1 : vector<8x512xf32>, i32 -> vector<8x512xf32>
    %216 = arith.mulf %215, %14 : vector<8x512xf32>
    %c511_i32_96 = arith.constant 511 : i32
    %217 = tpu.dynamic_rotate %208 by %c511_i32_96 dim 1 : vector<8x512xf32>, i32 -> vector<8x512xf32>
    %218 = arith.mulf %217, %17 : vector<8x512xf32>
    %c497_i32_97 = arith.constant 497 : i32
    %219 = tpu.dynamic_rotate %208 by %c497_i32_97 dim 1 : vector<8x512xf32>, i32 -> vector<8x512xf32>
    %220 = arith.mulf %219, %20 : vector<8x512xf32>
    %c496_i32_98 = arith.constant 496 : i32
    %221 = tpu.dynamic_rotate %208 by %c496_i32_98 dim 1 : vector<8x512xf32>, i32 -> vector<8x512xf32>
    %222 = arith.mulf %221, %23 : vector<8x512xf32>
    %c495_i32_99 = arith.constant 495 : i32
    %223 = tpu.dynamic_rotate %208 by %c495_i32_99 dim 1 : vector<8x512xf32>, i32 -> vector<8x512xf32>
    %224 = arith.mulf %223, %26 : vector<8x512xf32>
    %225 = tpu.concatenate %210, %212, %214, %216, %208, %218, %220, %222, %224 in 0 : vector<8x512xf32>, vector<8x512xf32>, vector<8x512xf32>, vector<8x512xf32>, vector<8x512xf32>, vector<8x512xf32>, vector<8x512xf32>, vector<8x512xf32>, vector<8x512xf32> -> vector<72x512xf32>
    %c6 = arith.constant 6 : index
    %c0_100 = arith.constant 0 : index
    %c0_101 = arith.constant 0 : index
    %226 = vector.load %arg5[%c6, %c0_100, %c0_101] : memref<7x8x72xbf16, #tpu.memory_space<vmem>>, vector<1x8x72xbf16>
    %227 = vector.shape_cast %226 : vector<1x8x72xbf16> to vector<8x72xbf16>
    %228 = arith.truncf %225 : vector<72x512xf32> to vector<72x512xbf16>
    %cst_102 = arith.constant dense<0.000000e+00> : vector<8x512xf32>
    %229 = tpu.matmul %227, %228, %cst_102 {dimension_numbers = #tpu.dot_dimension_numbers<[1], [0], [0], [1], [0, 0, 1, 1], [], []>} : vector<8x72xbf16>, vector<72x512xbf16>, vector<8x512xf32> -> vector<8x512xf32>
    %c6_103 = arith.constant 6 : index
    %c0_104 = arith.constant 0 : index
    %c0_105 = arith.constant 0 : index
    %230 = vector.load %arg6[%c6_103, %c0_104, %c0_105] : memref<7x8x1xf32, #tpu.memory_space<vmem>>, vector<1x8x1xf32>
    %231 = vector.shape_cast %230 : vector<1x8x1xf32> to vector<8x1xf32>
    %232 = vector.broadcast %231 : vector<8x1xf32> to vector<8x512xf32>
    %233 = arith.addf %229, %232 : vector<8x512xf32>
    %cst_106 = arith.constant 0.000000e+00 : f32
    %234 = vector.broadcast %cst_106 : f32 to vector<8x512xf32>
    %235 = arith.maximumf %233, %234 : vector<8x512xf32>
    %236 = vector.extract_strided_slice %33 {offsets = [56, 0], sizes = [8, 512], strides = [1, 1]} : vector<64x512xf32> to vector<8x512xf32>
    %237 = tpu.concatenate %61, %90, %119, %148, %177, %206, %235, %236 in 0 : vector<8x512xf32>, vector<8x512xf32>, vector<8x512xf32>, vector<8x512xf32>, vector<8x512xf32>, vector<8x512xf32>, vector<8x512xf32>, vector<8x512xf32> -> vector<64x512xf32>
    %238 = arith.truncf %237 : vector<64x512xf32> to vector<64x512xbf16>
    %c0_107 = arith.constant 0 : index
    %c0_108 = arith.constant 0 : index
    %239 = vector.load %arg9[%c0_107, %c0_108] : memref<512x2xbf16, #tpu.memory_space<vmem>>, vector<512x2xbf16>
    %cst_109 = arith.constant dense<0.000000e+00> : vector<64x2xf32>
    %240 = tpu.matmul %238, %239, %cst_109 {dimension_numbers = #tpu.dot_dimension_numbers<[1], [0], [0], [1], [0, 0, 1, 1], [], []>} : vector<64x512xbf16>, vector<512x2xbf16>, vector<64x2xf32> -> vector<64x2xf32>
    %c0_110 = arith.constant 0 : index
    %c0_111 = arith.constant 0 : index
    %241 = vector.load %arg10[%c0_110, %c0_111] : memref<8x64xbf16, #tpu.memory_space<vmem>>, vector<8x64xbf16>
    %242 = arith.truncf %240 : vector<64x2xf32> to vector<64x2xbf16>
    %cst_112 = arith.constant dense<0.000000e+00> : vector<8x2xf32>
    %243 = tpu.matmul %241, %242, %cst_112 {dimension_numbers = #tpu.dot_dimension_numbers<[1], [0], [0], [1], [0, 0, 1, 1], [], []>} : vector<8x64xbf16>, vector<64x2xbf16>, vector<8x2xf32> -> vector<8x2xf32>
    %c0_113 = arith.constant 0 : index
    %c0_114 = arith.constant 0 : index
    %244 = vector.load %arg11[%c0_113, %c0_114] : memref<8x1xf32, #tpu.memory_space<vmem>>, vector<8x1xf32>
    %245 = vector.broadcast %244 : vector<8x1xf32> to vector<8x2xf32>
    %246 = arith.addf %243, %245 : vector<8x2xf32>
    %cst_115 = arith.constant 0.000000e+00 : f32
    %247 = vector.broadcast %cst_115 : f32 to vector<8x2xf32>
    %248 = arith.maximumf %246, %247 : vector<8x2xf32>
    %c0_116 = arith.constant 0 : index
    %c0_117 = arith.constant 0 : index
    %249 = vector.load %arg12[%c0_116, %c0_117] : memref<64x8xbf16, #tpu.memory_space<vmem>>, vector<64x8xbf16>
    %250 = arith.truncf %248 : vector<8x2xf32> to vector<8x2xbf16>
    %cst_118 = arith.constant dense<0.000000e+00> : vector<64x2xf32>
    %251 = tpu.matmul %249, %250, %cst_118 {dimension_numbers = #tpu.dot_dimension_numbers<[1], [0], [0], [1], [0, 0, 1, 1], [], []>} : vector<64x8xbf16>, vector<8x2xbf16>, vector<64x2xf32> -> vector<64x2xf32>
    %c0_119 = arith.constant 0 : index
    %c0_120 = arith.constant 0 : index
    %252 = vector.load %arg13[%c0_119, %c0_120] : memref<64x1xf32, #tpu.memory_space<vmem>>, vector<64x1xf32>
    %253 = vector.broadcast %252 : vector<64x1xf32> to vector<64x2xf32>
    %254 = arith.addf %251, %253 : vector<64x2xf32>
    %cst_121 = arith.constant 0.000000e+00 : f32
    %255 = vector.broadcast %cst_121 : f32 to vector<64x2xf32>
    %256 = arith.subf %255, %254 : vector<64x2xf32>
    %257 = math.exp %256 : vector<64x2xf32>
    %cst_122 = arith.constant 1.000000e+00 : f32
    %258 = vector.broadcast %cst_122 : f32 to vector<64x2xf32>
    %259 = arith.addf %258, %257 : vector<64x2xf32>
    %260 = tpu.reciprocal %259 {approx = true} : vector<64x2xf32> -> vector<64x2xf32>
    %261 = vector.extract_strided_slice %237 {offsets = [0, 0], sizes = [64, 256], strides = [1, 1]} : vector<64x512xf32> to vector<64x256xf32>
    %262 = vector.extract_strided_slice %260 {offsets = [0, 0], sizes = [64, 1], strides = [1, 1]} : vector<64x2xf32> to vector<64x1xf32>
    %263 = vector.broadcast %262 : vector<64x1xf32> to vector<64x256xf32>
    %264 = arith.mulf %261, %263 : vector<64x256xf32>
    %265 = vector.extract_strided_slice %237 {offsets = [0, 256], sizes = [64, 256], strides = [1, 1]} : vector<64x512xf32> to vector<64x256xf32>
    %266 = vector.extract_strided_slice %260 {offsets = [0, 1], sizes = [64, 1], strides = [1, 1]} : vector<64x2xf32> to vector<64x1xf32>
    %267 = vector.broadcast %266 : vector<64x1xf32> to vector<64x256xf32>
    %268 = arith.mulf %265, %267 : vector<64x256xf32>
    %269 = tpu.concatenate %264, %268 in 1 : vector<64x256xf32>, vector<64x256xf32> -> vector<64x512xf32>
    %c0_123 = arith.constant 0 : index
    %c0_124 = arith.constant 0 : index
    %270 = vector.load %arg7[%c0_123, %c0_124] : memref<32x64xbf16, #tpu.memory_space<vmem>>, vector<32x64xbf16>
    %271 = arith.truncf %269 : vector<64x512xf32> to vector<64x512xbf16>
    %cst_125 = arith.constant dense<0.000000e+00> : vector<32x512xf32>
    %272 = tpu.matmul %270, %271, %cst_125 {dimension_numbers = #tpu.dot_dimension_numbers<[1], [0], [0], [1], [0, 0, 1, 1], [], []>} : vector<32x64xbf16>, vector<64x512xbf16>, vector<32x512xf32> -> vector<32x512xf32>
    %c0_126 = arith.constant 0 : index
    %c0_127 = arith.constant 0 : index
    %273 = vector.load %arg8[%c0_126, %c0_127] : memref<32x1xf32, #tpu.memory_space<vmem>>, vector<32x1xf32>
    %274 = vector.broadcast %273 : vector<32x1xf32> to vector<32x512xf32>
    %275 = arith.addf %272, %274 : vector<32x512xf32>
    %276 = arith.extf %1 : vector<32x512xbf16> to vector<32x512xf32>
    %277 = arith.addf %275, %276 : vector<32x512xf32>
    %cst_128 = arith.constant 0.000000e+00 : f32
    %278 = vector.broadcast %cst_128 : f32 to vector<32x512xf32>
    %279 = arith.maximumf %277, %278 : vector<32x512xf32>
    %c0_129 = arith.constant 0 : index
    %c0_130 = arith.constant 0 : index
    %c0_131 = arith.constant 0 : index
    %280 = vector.load %arg14[%c0_129, %c0_130, %c0_131] : memref<1x32x512xf32, #tpu.memory_space<vmem>>, vector<1x32x512xf32>
    %281 = vector.shape_cast %280 : vector<1x32x512xf32> to vector<32x512xf32>
    %282 = vector.shape_cast %279 : vector<32x512xf32> to vector<1x32x512xf32>
    tpu.vector_store %arg14[%c0_129, %c0_130, %c0_131], %282 {strides = array<i32>} : memref<1x32x512xf32, #tpu.memory_space<vmem>>, vector<1x32x512xf32>,
    return
  }
  func.func @transform_0(%arg0: i32) -> (i32, i32, i32) {
    %c0_i32 = arith.constant 0 : i32
    %c0_i32_0 = arith.constant 0 : i32
    %c0_i32_1 = arith.constant 0 : i32
    return %arg0, %c0_i32, %c0_i32_0 : i32, i32, i32
  }
  func.func @transform_1(%arg0: i32) -> (i32, i32) {
    %c0_i32 = arith.constant 0 : i32
    %c0_i32_0 = arith.constant 0 : i32
    %c0_i32_1 = arith.constant 0 : i32
    return %c0_i32, %c0_i32_0 : i32, i32
  }
  func.func @transform_2(%arg0: i32) -> (i32, i32) {
    %c0_i32 = arith.constant 0 : i32
    %c0_i32_0 = arith.constant 0 : i32
    %c0_i32_1 = arith.constant 0 : i32
    return %c0_i32, %c0_i32_0 : i32, i32
  }
  func.func @transform_3(%arg0: i32) -> (i32, i32) {
    %c0_i32 = arith.constant 0 : i32
    %c0_i32_0 = arith.constant 0 : i32
    %c0_i32_1 = arith.constant 0 : i32
    return %c0_i32, %c0_i32_0 : i32, i32
  }
  func.func @transform_4(%arg0: i32) -> (i32, i32, i32) {
    %c0_i32 = arith.constant 0 : i32
    %c0_i32_0 = arith.constant 0 : i32
    %c0_i32_1 = arith.constant 0 : i32
    %c0_i32_2 = arith.constant 0 : i32
    return %c0_i32, %c0_i32_0, %c0_i32_1 : i32, i32, i32
  }
  func.func @transform_5(%arg0: i32) -> (i32, i32, i32) {
    %c0_i32 = arith.constant 0 : i32
    %c0_i32_0 = arith.constant 0 : i32
    %c0_i32_1 = arith.constant 0 : i32
    %c0_i32_2 = arith.constant 0 : i32
    return %c0_i32, %c0_i32_0, %c0_i32_1 : i32, i32, i32
  }
  func.func @transform_6(%arg0: i32) -> (i32, i32) {
    %c0_i32 = arith.constant 0 : i32
    %c0_i32_0 = arith.constant 0 : i32
    %c0_i32_1 = arith.constant 0 : i32
    return %c0_i32, %c0_i32_0 : i32, i32
  }
  func.func @transform_7(%arg0: i32) -> (i32, i32) {
    %c0_i32 = arith.constant 0 : i32
    %c0_i32_0 = arith.constant 0 : i32
    %c0_i32_1 = arith.constant 0 : i32
    return %c0_i32, %c0_i32_0 : i32, i32
  }
  func.func @transform_8(%arg0: i32) -> (i32, i32) {
    %c0_i32 = arith.constant 0 : i32
    %c0_i32_0 = arith.constant 0 : i32
    %c0_i32_1 = arith.constant 0 : i32
    return %c0_i32, %c0_i32_0 : i32, i32
  }
  func.func @transform_9(%arg0: i32) -> (i32, i32) {
    %c0_i32 = arith.constant 0 : i32
    %c0_i32_0 = arith.constant 0 : i32
    %c0_i32_1 = arith.constant 0 : i32
    return %c0_i32, %c0_i32_0 : i32, i32
  }
  func.func @transform_10(%arg0: i32) -> (i32, i32) {
    %c0_i32 = arith.constant 0 : i32
    %c0_i32_0 = arith.constant 0 : i32
    %c0_i32_1 = arith.constant 0 : i32
    return %c0_i32, %c0_i32_0 : i32, i32
  }
  func.func @transform_11(%arg0: i32) -> (i32, i32) {
    %c0_i32 = arith.constant 0 : i32
    %c0_i32_0 = arith.constant 0 : i32
    %c0_i32_1 = arith.constant 0 : i32
    return %c0_i32, %c0_i32_0 : i32, i32
  }
  func.func @transform_12(%arg0: i32) -> (i32, i32) {
    %c0_i32 = arith.constant 0 : i32
    %c0_i32_0 = arith.constant 0 : i32
    %c0_i32_1 = arith.constant 0 : i32
    return %c0_i32, %c0_i32_0 : i32, i32
  }
  func.func @transform_13(%arg0: i32) -> (i32, i32, i32) {
    %c0_i32 = arith.constant 0 : i32
    %c0_i32_0 = arith.constant 0 : i32
    %c0_i32_1 = arith.constant 0 : i32
    return %arg0, %c0_i32, %c0_i32_0 : i32, i32, i32
  }
}

</mosaic_0001>

<bundles_post_ra>
// kernel: tpu_custom_call.1
= control target key start
LH: loop header
LB: loop body
LE: loop exit
PB: predicated region body
PF: predicated region fallthrough
CT: control target
= control target key end

     0   :  { %v5905_v8 = vmov 0   ;;  %vm306_vm0 = vcmask 261120   ;;  %s5891_s0 = inlined_call_operand.vmem [shape: bf16[1,32,512], index: 0, kind: input, shape index: {}]   ;;  %s5892_s1 = inlined_call_operand.vmem [shape: f32[9,512], index: 1, kind: input, shape index: {}]   ;;  %s5893_s2 = inlined_call_operand.vmem [shape: bf16[64,32], index: 2, kind: input, shape index: {}]   ;;  %s5894_s3 = inlined_call_operand.vmem [shape: f32[64,1], index: 3, kind: input, shape index: {}]   ;;  %s5895_s4 = inlined_call_operand.vmem [shape: bf16[7,8,72], index: 4, kind: input, shape index: {}]   ;;  %s5896_s5 = inlined_call_operand.vmem [shape: f32[7,8,1], index: 5, kind: input, shape index: {}]   ;;  %s5897_s6 = inlined_call_operand.vmem [shape: bf16[32,64], index: 6, kind: input, shape index: {}]   ;;  %s5898_s7 = inlined_call_operand.vmem [shape: f32[32,1], index: 7, kind: input, shape index: {}]   ;;  %s5899_s8 = inlined_call_operand.vmem [shape: bf16[512,2], index: 8, kind: input, shape index: {}]   ;;  %s5900_s9 = inlined_call_operand.vmem [shape: bf16[8,64], index: 9, kind: input, shape index: {}]   ;;  %s5901_s10 = inlined_call_operand.vmem [shape: f32[8,1], index: 10, kind: input, shape index: {}]   ;;  %s5902_s11 = inlined_call_operand.vmem [shape: bf16[64,8], index: 11, kind: input, shape index: {}]   ;;  %s5903_s12 = inlined_call_operand.vmem [shape: f32[64,1], index: 12, kind: input, shape index: {}]   ;;  %s5904_s13 = inlined_call_operand.hbm [shape: f32[1,32,512], index: 13, kind: output, shape index: {}]  }
   0x1   :  { %v50_v0 = vld [vmem:[%s5891_s0 + $0x20] sm:$0xff]  ;;  %v52_v1 = vld [vmem:[%s5891_s0 + $0x30] sm:$0xff]  ;;  %v51_v2 = vld [vmem:[%s5891_s0 + $0x28] sm:$0xff]  ;;  %351 = vmatprep.mubr.bf16.mxu0 %v5905_v8  ;;  %424 = vmatprep.mubr.bf16.mxu1 %v5905_v8 }
   0x2   :  { %v3356_v3 = vcombine.high %v50_v0, %v52_v1  ;;  %v53_v4 = vld [vmem:[%s5891_s0 + $0x38] sm:$0xff]  ;;  %v3355_v5 = vcombine.low %v50_v0, %v52_v1  ;;  %v46_v6 = vld [vmem:[%s5891_s0] sm:$0xff]  ;;  %v48_v7 = vld [vmem:[%s5891_s0 + $0x10] sm:$0xff]  ;;  %3582 = vset.pattern.permute.xlu0 %v5905_v8  ;;  %3583 = vset.pattern.permute.xlu1 %v5905_v8 }
   0x3   :  { %v3358_v9 = vcombine.high %v51_v2, %v53_v4  ;;  %v3357_v10 = vcombine.low %v51_v2, %v53_v4  ;;  %v3352_v11 = vcombine.high %v46_v6, %v48_v7  ;;  %v47_v12 = vld [vmem:[%s5891_s0 + $0x8] sm:$0xff]  ;;  %v49_v13 = vld [vmem:[%s5891_s0 + $0x18] sm:$0xff]  ;;  %v198_v15 = vld [vmem:[%s5894_s3] sm:$0xff]  ;;  %v3351_v16 = vcombine.low %v46_v6, %v48_v7 }
   0x4   :  { %331 = vmatprep.subr.bf16.mxu0 %v3356_v3  ;;  %v3354_v14 = vcombine.high %v47_v12, %v49_v13  ;;  %v3353_v17 = vcombine.low %v47_v12, %v49_v13  ;;  %v3602_v18 = vld [vmem:[%s5893_s2] sm:$0xff]   ;;  %208 = vperm.xlu0 %3582, %v198_v15  }
   0x5   :  { %404 = vmatprep.subr.bf16.mxu1 %v3358_v9  ;;  %332 = vmatpush1.bf16.msra.mxu0 %v3355_v5 }
   0x6   :  { %405 = vmatpush1.bf16.msra.mxu1 %v3357_v10  ;;  %333 = vmatprep.subr.bf16.mxu0 %v3352_v11 }
   0x7   :  { %406 = vmatprep.subr.bf16.mxu1 %v3354_v14 }
   0x9   :  { %334 = vmatpush1.bf16.msra.mxu0 %v3351_v16 }
   0xa   :  { %407 = vmatpush1.bf16.msra.mxu1 %v3353_v17 }
   0xc   :  { %3359 = vmatmul.mubr.msk.bf16.vlgmr.msra.gmra.mxu0 %vm306_vm0, %v3602_v18 }
   0xd   :  { %3363 = vmatmul.mubr.msk.bf16.vlgmr.msra.gmra.mxu1 %vm306_vm0, %v3602_v18  ;;  %361 = vmatprep.mubr.bf16.mxu0 %v5905_v8 }
   0xe   :  { %434 = vmatprep.mubr.bf16.mxu1 %v5905_v8 }
   0xf   :  { %18 = vsyncpa [#allocation3], 0  ;;  %s3715_s28 = smov 111   ;;  %s3716_s29 = smov 113   ;;  %v3603_v32 = vld [vmem:[%s5893_s2 + $0x8] sm:$0xff]   ;;  %v3604_v33 = vld [vmem:[%s5893_s2 + $0x10] sm:$0xff]   ;;  %v62_v37 = vlaneseq }
  0x10   :  { %s3717_s30 = smov 112   ;;  %s3718_s14 = smov 127   ;;  %v3605_v34 = vld [vmem:[%s5893_s2 + $0x18] sm:$0xff]   ;;  %v656_v35 = vld [vmem:[%s5896_s5] sm:$0xff]  ;;  %v199_v36 = vld [vmem:[%s5894_s3 + $0x8] sm:$0xff]  ;;  %vm666_vm2 = vcmask 1043456  }
  0x11   :  { %s3719_s17 = smov 15   ;;  %s3720_s20 = smov 1   ;;  %v3936_v38 = vand.u32 127, %v62_v37  ;;  %v3946_v41 = vld [vmem:[%s5892_s1 + $0x30] ss:$0 sm:$0xff]  ;;  %v3969_v54 = vshrl.u32 %v62_v37, 7 }
  0x12   :  { %s3721_s23 = smov 17   ;;  %s3722_s2 = smov 16   ;;  %v3951_v42 = vld [vmem:[%s5892_s1 + $0x38] ss:$0 sm:$0xff]  ;;  %v3976_v57 = vld [vmem:[%s5892_s1 + $0x10] sm:$0xff]  ;;  %vm662_vm10 = vcmask 588800  }
  0x13   :  { %vm626_vm1 = vcmp.lt.s32.totalorder %v3936_v38, 111  ;;  %v3981_v58 = vld [vmem:[%s5892_s1 + $0x18] sm:$0xff]  ;;  %v144_v59 = vsub.s32 6, %v3969_v54  ;;  %v160_v60 = vsub.s32 7, %v3969_v54  ;;  %vm592_vm3 = vcmp.lt.s32.totalorder %v3936_v38, 113  ;;  %s3726_s25 = smov [#allocation2]  }
  0x14   :  { %3360 = vmatmul.mubr.msk.bf16.gmra.mxu0 %vm306_vm0, %v3603_v32  ;;  %vm609_vm4 = vcmp.lt.s32.totalorder %v3936_v38, 112  ;;  %v4019_v15 = vsub.s32 5, %v3969_v54  ;;  %vm575_vm5 = vcmp.lt.s32.totalorder %v3936_v38, 127  ;;  %v4050_v37 = vsub.s32 3, %v3969_v54 }
  0x15   :  { %3364 = vmatmul.mubr.msk.bf16.gmra.mxu1 %vm306_vm0, %v3603_v32  ;;  %371 = vmatprep.mubr.bf16.mxu0 %v5905_v8  ;;  %v3989_v63 = vrot.slane %v3976_v57, %v144_v59  ;;  %v3992_v0 = vrot.slane %v3981_v58, %v144_v59  ;;  %v3995_v1 = vrot.slane %v3976_v57, %v160_v60  ;;  %vm558_vm6 = vcmp.lt.s32.totalorder %v3936_v38, 1 }
  0x16   :  { %444 = vmatprep.mubr.bf16.mxu1 %v5905_v8  ;;  %v3998_v2 = vrot.slane %v3981_v58, %v160_v60  ;;  %vm541_vm7 = vcmp.lt.s32.totalorder %v3936_v38, 15  ;;  %vm507_vm8 = vcmp.lt.s32.totalorder %v3936_v38, 17  ;;  %vm524_vm9 = vcmp.lt.s32.totalorder %v3936_v38, 16  ;;  %v3608_v38 = vld [vmem:[%s5899_s8 + $0xf8] sm:$0xff]  }
  0x17   :  { %vm3724_vm11 = vmmov 0   ;;  %vm2750_vm12 = vcmask 523264   ;;  %vm2872_vm13 = vcmask 64512  }
  0x1c   :  { %3361 = vmatmul.mubr.msk.bf16.gmra.mxu0 %vm306_vm0, %v3604_v33 }
  0x1d   :  { %3365 = vmatmul.mubr.msk.bf16.gmra.mxu1 %vm306_vm0, %v3604_v33  ;;  %381 = vmatprep.mubr.bf16.mxu0 %v5905_v8 }
  0x1e   :  { %454 = vmatprep.mubr.bf16.mxu1 %v5905_v8 }
  0x24   :  { %3362 = vmatmul.mubr.msk.bf16.gmra.mxu0 %vm306_vm0, %v3605_v34 }
  0x25   :  { %3366 = vmatmul.mubr.msk.bf16.gmra.mxu1 %vm306_vm0, %v3605_v34  ;;  %711 = vmatprep.mubr.bf16.mxu0 %v5905_v8 }
  0x26   :  { %752 = vmatprep.mubr.bf16.mxu1 %v5905_v8 }
  0x7f   :  { %v209_v19 = vpop.permute.xlu0 %208 }
  0xcc   :  { %v353_v20 = vpop.f32.mrf.mxu0 }
  0xcd   :  { %v354_v21 = vadd.f32 %v353_v20, %v209_v19  ;;  %v426_v22 = vpop.f32.mrf.mxu1  ;;  %v4029_v20 = vrot.slane %v3981_v58, %v4019_v15 }
  0xce   :  { %v427_v23 = vadd.f32 %v426_v22, %v209_v19  ;;  %v355_v27 = vpop.f32.mrf.mxu0 }
  0xcf   :  { %v3837_v24 = vmax.f32 %v354_v21, 0.0  ;;  %v428_v25 = vpop.f32.mrf.mxu1  ;;  %v356_v29 = vadd.f32 %v355_v27, %v209_v19 }
  0xd0   :  { %v3839_v26 = vmax.f32 %v427_v23, 0.0  ;;  %v429_v28 = vadd.f32 %v428_v25, %v209_v19  ;;  %v4025_v19 = vrot.slane %v3976_v57, %v4019_v15 }
  0xd1   :  { %618 = vrot.lane.b32.xlu0 %v3837_v24, %s3715_s28  ;;  %v3851_v31 = vmax.f32 %v356_v29, 0.0 }
  0xd2   :  { %622 = vrot.lane.b32.xlu1 %v3839_v26, %s3715_s28  ;;  %v3845_v30 = vmax.f32 %v429_v28, 0.0 }
  0xd5   :  { %624 = vrot.lane.b32.xlu0 %v3845_v30, %s3715_s28 }
  0xd6   :  { %584 = vrot.lane.b32.xlu1 %v3837_v24, %s3716_s29 }
  0xd9   :  { %586 = vrot.lane.b32.xlu0 %v3851_v31, %s3716_s29 }
  0xda   :  { %588 = vrot.lane.b32.xlu1 %v3839_v26, %s3716_s29 }
  0xdd   :  { %590 = vrot.lane.b32.xlu0 %v3845_v30, %s3716_s29 }
  0xde   :  { %601 = vrot.lane.b32.xlu1 %v3837_v24, %s3717_s30 }
  0xe1   :  { %603 = vrot.lane.b32.xlu0 %v3851_v31, %s3717_s30 }
  0xe2   :  { %605 = vrot.lane.b32.xlu1 %v3839_v26, %s3717_s30 }
  0xe5   :  { %607 = vrot.lane.b32.xlu0 %v3845_v30, %s3717_s30 }
  0xe6   :  { %567 = vrot.lane.b32.xlu1 %v3837_v24, %s3718_s14 }
  0xe9   :  { %569 = vrot.lane.b32.xlu0 %v3851_v31, %s3718_s14 }
  0xea   :  { %571 = vrot.lane.b32.xlu1 %v3839_v26, %s3718_s14 }
  0xed   :  { %573 = vrot.lane.b32.xlu0 %v3845_v30, %s3718_s14 }
  0xee   :  { %533 = vrot.lane.b32.xlu1 %v3837_v24, %s3719_s17 }
  0xf1   :  { %535 = vrot.lane.b32.xlu0 %v3851_v31, %s3719_s17 }
  0xf2   :  { %537 = vrot.lane.b32.xlu1 %v3839_v26, %s3719_s17 }
  0xf5   :  { %539 = vrot.lane.b32.xlu0 %v3845_v30, %s3719_s17 }
  0xf6   :  { %550 = vrot.lane.b32.xlu1 %v3837_v24, %s3720_s20 }
  0xf9   :  { %552 = vrot.lane.b32.xlu0 %v3851_v31, %s3720_s20 }
  0xfa   :  { %554 = vrot.lane.b32.xlu1 %v3839_v26, %s3720_s20 }
  0xfd   :  { %556 = vrot.lane.b32.xlu0 %v3845_v30, %s3720_s20 }
  0xfe   :  { %620 = vrot.lane.b32.xlu1 %v3851_v31, %s3715_s28 }
 0x101   :  { %499 = vrot.lane.b32.xlu0 %v3851_v31, %s3721_s23 }
 0x102   :  { %497 = vrot.lane.b32.xlu1 %v3837_v24, %s3721_s23 }
 0x105   :  { %503 = vrot.lane.b32.xlu0 %v3845_v30, %s3721_s23 }
 0x106   :  { %501 = vrot.lane.b32.xlu1 %v3839_v26, %s3721_s23 }
 0x109   :  { %518 = vrot.lane.b32.xlu0 %v3851_v31, %s3722_s2 }
 0x10a   :  { %516 = vrot.lane.b32.xlu1 %v3837_v24, %s3722_s2 }
 0x10d   :  { %522 = vrot.lane.b32.xlu0 %v3845_v30, %s3722_s2 }
 0x10e   :  { %520 = vrot.lane.b32.xlu1 %v3839_v26, %s3722_s2 }
 0x111   :  { %659 = vperm.xlu0 %3582, %v656_v35  }
 0x112   :  { %213 = vperm.xlu1 %3583, %v199_v36  }
 0x143   :  { %v3938_v39 = vpop.permute.xlu0 %618 }
 0x144   :  { %v3940_v40 = vpop.permute.xlu1 %622 }
 0x147   :  { %v625_v43 = vpop.permute.xlu0 %624 }
 0x148   :  { %v3953_v44 = vpop.permute.xlu1 %584  ;;  %v627_v45 = vsel %vm626_vm1, %v3940_v40, %v625_v43  ;;  %v630_v46 = vsel %vm626_vm1, %v625_v43, %v3938_v39  ;;  %v4055_v43 = vld [vmem:[%s5892_s1] sm:$0xff] }
 0x149   :  { %v633_v47 = vmul.f32 %v3946_v41, %v627_v45  ;;  %v634_v48 = vmul.f32 %v3951_v42, %v630_v46 }
 0x14b   :  { %v654_v49 = vpack.c.bf16 %v633_v47, %v633_v47  ;;  %v655_v50 = vpack.c.bf16 %v634_v48, %v634_v48  ;;  %v3963_v51 = vpop.permute.xlu0 %586  ;;  %v4067_v47 = vrot.slane %v3976_v57, %v4050_v37  ;;  %v4070_v48 = vrot.slane %v4055_v43, %v144_v59 }
 0x14c   :  { %v3965_v52 = vpop.permute.xlu1 %588 }
 0x14d   :  { %3369 = vmatprep.subr.msk.bf16.mxu1 %vm666_vm2, %v655_v50  ;;  %v674_v53 = vsel %vm666_vm2, %v654_v49, 0 }
 0x14e   :  { %727 = vmatpush1.bf16.msra.mxu1 %v674_v53  ;;  %v4079_v53 = vrot.slane %v3981_v58, %v4050_v37 }
 0x14f   :  { %v591_v55 = vpop.permute.xlu0 %590 }
 0x150   :  { %v3971_v56 = vpop.permute.xlu1 %601  ;;  %v593_v3 = vsel %vm592_vm3, %v3965_v52, %v591_v55  ;;  %v596_v4 = vsel %vm592_vm3, %v591_v55, %v3953_v44 }
 0x151   :  { %v599_v10 = vmul.f32 %v593_v3, %v3989_v63  ;;  %v600_v11 = vmul.f32 %v596_v4, %v3992_v0 }
 0x153   :  { %v3985_v61 = vpop.permute.xlu0 %603 }
 0x154   :  { %v606_v62 = vpop.permute.xlu1 %605 }
 0x157   :  { %v608_v5 = vpop.permute.xlu0 %607 }
 0x158   :  { %v4007_v6 = vpop.permute.xlu1 %567  ;;  %v610_v7 = vsel %vm609_vm4, %v606_v62, %v608_v5  ;;  %v613_v9 = vsel %vm609_vm4, %v608_v5, %v3971_v56 }
 0x159   :  { %v616_v12 = vmul.f32 %v610_v7, %v3995_v1  ;;  %v617_v13 = vmul.f32 %v613_v9, %v3998_v2  ;;  %v4094_v7 = vrot.slane %v4055_v43, %v160_v60  ;;  %v611_v9 = vsel %vm609_vm4, %v3985_v61, %v606_v62 }
 0x15a   :  { %v594_v62 = vsel %vm592_vm3, %v3963_v51, %v3965_v52 }
 0x15b   :  { %v650_v14 = vpack.c.bf16 %v616_v12, %v599_v10  ;;  %v4021_v16 = vpop.permute.xlu0 %569  ;;  %v651_v17 = vpack.c.bf16 %v617_v13, %v600_v11  ;;  %v4109_v11 = vld [vmem:[%s5892_s1 + $0x20] ss:$0 sm:$0xff]  ;;  %v612_v13 = vsel %vm609_vm4, %v3971_v56, %v3985_v61 }
 0x15c   :  { %v572_v18 = vpop.permute.xlu1 %571 }
 0x15d   :  { %728 = vmatprep.subr.bf16.mxu1 %v651_v17 }
 0x15e   :  { %729 = vmatpush1.bf16.msra.mxu1 %v650_v14 }
 0x15f   :  { %v574_v21 = vpop.permute.xlu0 %573 }
 0x160   :  { %v4032_v22 = vpop.permute.xlu1 %533  ;;  %v576_v23 = vsel %vm575_vm5, %v572_v18, %v574_v21  ;;  %v579_v25 = vsel %vm575_vm5, %v574_v21, %v4007_v6 }
 0x161   :  { %v582_v27 = vmul.f32 %v576_v23, %v4025_v19  ;;  %v583_v28 = vmul.f32 %v579_v25, %v4029_v20 }
 0x163   :  { %v646_v29 = vpack.c.bf16 %v582_v27, %v3839_v26  ;;  %v4042_v32 = vpop.permute.xlu0 %535  ;;  %v647_v33 = vpack.c.bf16 %v583_v28, %v3845_v30  ;;  %v96_v26 = vsub.s32 2, %v3969_v54  ;;  %v4062_v30 = vld [vmem:[%s5892_s1 + $0x8] sm:$0xff] }
 0x164   :  { %v538_v34 = vpop.permute.xlu1 %537  ;;  %v4082_v55 = vrot.slane %v4062_v30, %v144_v59  ;;  %v4085_v3 = vrot.slane %v4062_v30, %v160_v60  ;;  %v4101_v59 = vrot.slane %v4062_v30, %v4019_v15  ;;  %v4114_v60 = vld [vmem:[%s5892_s1 + $0x28] ss:$0 sm:$0xff] }
 0x165   :  { %730 = vmatprep.subr.bf16.mxu1 %v647_v33  ;;  %v4073_v49 = vrot.slane %v3981_v58, %v96_v26  ;;  %v4088_v4 = vrot.slane %v3976_v57, %v96_v26  ;;  %v543_v10 = vsel %vm541_vm7, %v4042_v32, %v538_v34  ;;  %v595_v33 = vsel %vm592_vm3, %v3953_v44, %v3963_v51 }
 0x166   :  { %731 = vmatpush1.bf16.msra.mxu1 %v646_v29  ;;  %v615_v56 = vmul.f32 %v611_v9, %v4085_v3  ;;  %v4155_v44 = vrot.slane %v4062_v30, %v4050_v37  ;;  %v80_v51 = vsub.s32 1, %v3969_v54 }
 0x167   :  { %v4045_v35 = vpop.permute.xlu0 %539  ;;  %v548_v61 = vmul.f32 %v543_v10, %v4088_v4 }
 0x168   :  { %v4047_v36 = vpop.permute.xlu1 %550  ;;  %v542_v5 = vsel %vm541_vm7, %v538_v34, %v4045_v35 }
 0x169   :  { %v549_v23 = vmul.f32 %v542_v5, %v4073_v49 }
 0x16b   :  { %v553_v45 = vpop.permute.xlu0 %552 }
 0x16c   :  { %v555_v46 = vpop.permute.xlu1 %554 }
 0x16d   :  { %v560_v50 = vsel %vm558_vm6, %v553_v45, %v555_v46 }
 0x16e   :  { %v565_v14 = vmul.f32 %v560_v50, %v4067_v47  ;;  %v598_v50 = vmul.f32 %v594_v62, %v4082_v55 }
 0x16f   :  { %v557_v12 = vpop.permute.xlu0 %556 }
 0x170   :  { %v621_v17 = vpop.permute.xlu1 %620  ;;  %v559_v21 = vsel %vm558_vm6, %v555_v46, %v557_v12  ;;  %v642_v5 = vpack.c.bf16 %v565_v14, %v548_v61  ;;  %v597_v14 = vmul.f32 %v595_v33, %v4070_v48 }
 0x171   :  { %v628_v25 = vsel %vm626_vm1, %v621_v17, %v3940_v40  ;;  %v629_v52 = vsel %vm626_vm1, %v3938_v39, %v621_v17  ;;  %v566_v27 = vmul.f32 %v559_v21, %v4079_v53  ;;  %v577_v40 = vsel %vm575_vm5, %v4021_v16, %v572_v18 }
 0x172   :  { %v631_v28 = vmul.f32 %v4109_v11, %v629_v52  ;;  %v632_v29 = vmul.f32 %v4114_v60, %v628_v25  ;;  %v64_v39 = vsub.s32 0, %v3969_v54  ;;  %v614_v21 = vmul.f32 %v612_v13, %v4094_v7 }
 0x173   :  { %v500_v34 = vpop.permute.xlu0 %499  ;;  %v643_v46 = vpack.c.bf16 %v566_v27, %v549_v23  ;;  %v4151_v25 = vrot.slane %v4055_v43, %v4019_v15  ;;  %v578_v18 = vsel %vm575_vm5, %v4007_v6, %v4021_v16  ;;  %v581_v62 = vmul.f32 %v577_v40, %v4101_v59 }
 0x174   :  { %v652_v9 = vpack.c.bf16 %v631_v28, %v631_v28  ;;  %v653_v10 = vpack.c.bf16 %v632_v29, %v632_v29  ;;  %v498_v17 = vpop.permute.xlu1 %497  ;;  %v649_v15 = vpack.c.bf16 %v615_v56, %v598_v50  ;;  %v561_v54 = vsel %vm558_vm6, %v4047_v36, %v553_v45 }
 0x175   :  { %732 = vmatprep.subr.bf16.mxu1 %v643_v46  ;;  %v4172_v16 = vrot.slane %v4062_v30, %v96_v26  ;;  %v4175_v23 = vrot.slane %v4055_v43, %v96_v26  ;;  %v4179_v52 = vrot.slane %v4055_v43, %v4050_v37  ;;  %v4182_v27 = vrot.slane %v4062_v30, %v64_v39 }
 0x176   :  { %3367 = vmatprep.subr.msk.bf16.mxu0 %vm666_vm2, %v653_v10  ;;  %v668_v13 = vsel %vm666_vm2, %v652_v9, 0  ;;  %733 = vmatpush1.bf16.msra.mxu1 %v642_v5  ;;  %v648_v61 = vpack.c.bf16 %v614_v21, %v597_v14  ;;  %v580_v45 = vmul.f32 %v578_v18, %v4151_v25  ;;  %v544_v28 = vsel %vm541_vm7, %v4032_v22, %v4042_v32 }
 0x177   :  { %686 = vmatpush1.bf16.msra.mxu0 %v668_v13  ;;  %v504_v6 = vpop.permute.xlu0 %503  ;;  %v562_v26 = vsel %vm558_vm6, %v557_v12, %v4047_v36  ;;  %v564_v37 = vmul.f32 %v561_v54, %v4155_v44  ;;  %v4194_v29 = vrot.slane %v3976_v57, %v64_v39  ;;  %v645_v33 = vpack.c.bf16 %v581_v62, %v3851_v31 }
 0x178   :  { %v502_v56 = vpop.permute.xlu1 %501  ;;  %687 = vmatprep.subr.bf16.mxu0 %v649_v15  ;;  %v4198_v40 = vrot.slane %v4062_v30, %v80_v51  ;;  %v545_v46 = vsel %vm541_vm7, %v4045_v35, %v4032_v22  ;;  %v4205_v32 = vrot.slane %v4055_v43, %v64_v39  ;;  %v4208_v36 = vrot.slane %v3981_v58, %v64_v39 }
 0x179   :  { %v4211_v50 = vrot.slane %v3976_v57, %v80_v51  ;;  %v547_v31 = vmul.f32 %v544_v28, %v4172_v16  ;;  %v563_v30 = vmul.f32 %v562_v26, %v4179_v52  ;;  %v4216_v9 = vrot.slane %v4055_v43, %v80_v51 }
 0x17a   :  { %v4219_v22 = vrot.slane %v3981_v58, %v80_v51  ;;  %v644_v35 = vpack.c.bf16 %v580_v45, %v3837_v24  ;;  %v510_v39 = vsel %vm507_vm8, %v498_v17, %v500_v34  ;;  %v511_v57 = vsel %vm507_vm8, %v504_v6, %v498_v17 }
 0x17b   :  { %688 = vmatpush1.bf16.msra.mxu0 %v648_v61  ;;  %v519_v12 = vpop.permute.xlu0 %518  ;;  %v546_v21 = vmul.f32 %v545_v46, %v4175_v23  ;;  %v509_v43 = vsel %vm507_vm8, %v500_v34, %v502_v56  ;;  %v641_v58 = vpack.c.bf16 %v564_v37, %v547_v31  ;;  %v508_v24 = vsel %vm507_vm8, %v502_v56, %v504_v6  ;;  %v357_v31 = vpop.f32.mrf.mxu0 }
 0x17c   :  { %v517_v5 = vpop.permute.xlu1 %516  ;;  %689 = vmatprep.subr.bf16.mxu0 %v645_v33  ;;  %v513_v13 = vmul.f32 %v510_v39, %v4182_v27  ;;  %v512_v17 = vmul.f32 %v511_v57, %v4205_v32  ;;  %v514_v34 = vmul.f32 %v509_v43, %v4194_v29  ;;  %v515_v61 = vmul.f32 %v508_v24, %v4208_v36 }
 0x17d   :  { %v527_v10 = vsel %vm524_vm9, %v517_v5, %v519_v12  ;;  %v640_v62 = vpack.c.bf16 %v563_v30, %v546_v21  ;;  %v430_v30 = vpop.f32.mrf.mxu1 }
 0x17e   :  { %v530_v18 = vmul.f32 %v527_v10, %v4198_v40 }
 0x17f   :  { %690 = vmatpush1.bf16.msra.mxu0 %v644_v35  ;;  %v523_v51 = vpop.permute.xlu0 %522  ;;  %v432_v35 = vpop.f32.mrf.mxu1 }
 0x180   :  { %v521_v15 = vpop.permute.xlu1 %520  ;;  %691 = vmatprep.subr.bf16.mxu0 %v641_v58  ;;  %v528_v14 = vsel %vm524_vm9, %v523_v51, %v517_v5  ;;  %v637_v26 = vpack.c.bf16 %v530_v18, %v513_v13  ;;  %v359_v5 = vpop.f32.mrf.mxu0 }
 0x181   :  { %v526_v54 = vsel %vm524_vm9, %v519_v12, %v521_v15  ;;  %v525_v6 = vsel %vm524_vm9, %v521_v15, %v523_v51  ;;  %v529_v56 = vmul.f32 %v528_v14, %v4216_v9  ;;  %v635_v12 = vld [vmem:[%s5895_s4] sm:$0xf]  ;;  %v4256_v57 = vpop.f32.mrf.mxu1 }
 0x182   :  { %v531_v45 = vmul.f32 %v526_v54, %v4211_v50  ;;  %v532_v28 = vmul.f32 %v525_v6, %v4219_v22  ;;  %v4254_v39 = vpop.f32.mrf.mxu0 }
 0x183   :  { %v636_v37 = vpack.c.bf16 %v529_v56, %v512_v17  ;;  %692 = vmatpush1.bf16.msra.mxu0 %v640_v62  ;;  %v4260_v21 = vpop.f32.mrf.mxu1 }
 0x184   :  { %v638_v33 = vpack.c.bf16 %v531_v45, %v514_v34  ;;  %693 = vmatprep.subr.bf16.mxu0 %v637_v26  ;;  %v639_v46 = vpack.c.bf16 %v532_v28, %v515_v61  ;;  %v4258_v10 = vpop.f32.mrf.mxu0 }
 0x185   :  { %v4264_v18 = vpop.f32.mrf.mxu1 }
 0x186   :  { %734 = vmatprep.subr.bf16.mxu1 %v639_v46  ;;  %v4262_v43 = vpop.f32.mrf.mxu0  ;;  %5948 = vst [vmem:[#allocation5_spill] sm:$0xff] %v4264_v18 }
 0x187   :  { %694 = vmatpush1.bf16.msra.mxu0 %v636_v37  ;;  %735 = vmatpush1.bf16.msra.mxu1 %v638_v33  ;;  %v4268_v24 = vpop.f32.mrf.mxu1 }
 0x188   :  { %v4266_v58 = vpop.f32.mrf.mxu0  ;;  %5949 = vst [vmem:[#allocation6_spill] sm:$0xff] %v4268_v24 }
 0x189   :  { %v4272_v62 = vpop.f32.mrf.mxu1 }
 0x18a   :  { %3368 = vmatmul.mubr.msk.bf16.vlgmr.msra.gmra.mxu0 %vm662_vm10, %v635_v12  ;;  %3370 = vmatmul.mubr.msk.bf16.vlgmr.msra.gmra.mxu1 %vm662_vm10, %v635_v12  ;;  %v4270_v51 = vpop.f32.mrf.mxu0  ;;  %5951 = vst [vmem:[#allocation8_spill] sm:$0xff] %v4272_v62 }
 0x18b   :  { %973 = vmatprep.mubr.bf16.mxu0 %v5905_v8  ;;  %1014 = vmatprep.mubr.bf16.mxu1 %v5905_v8  ;;  %5950 = vst [vmem:[#allocation7_spill] sm:$0xff] %v4270_v51  ;;  %v4276_v17 = vpop.f32.mrf.mxu1 }
 0x18c   :  { %v4274_v13 = vpop.f32.mrf.mxu0  ;;  %5953 = vst [vmem:[#allocation10_spill] sm:$0xff] %v4276_v17  ;;  %v660_v12 = vpop.permute.xlu0 %659 }
 0x18d   :  { %5952 = vst [vmem:[#allocation9_spill] sm:$0xff] %v4274_v13  ;;  %v4280_v14 = vpop.f32.mrf.mxu1  ;;  %v214_v37 = vpop.permute.xlu1 %213 }
 0x18e   :  { %v4278_v15 = vpop.f32.mrf.mxu0  ;;  %5955 = vst [vmem:[#allocation12_spill] sm:$0xff] %v4280_v14  ;;  %v358_v8 = vadd.f32 %v357_v31, %v214_v37  ;;  %v433_v13 = vadd.f32 %v432_v35, %v214_v37 }
 0x18f   :  { %5954 = vst [vmem:[#allocation11_spill] sm:$0xff] %v4278_v15  ;;  %v4284_v54 = vpop.f32.mrf.mxu1  ;;  %v431_v15 = vadd.f32 %v430_v30, %v214_v37 }
 0x190   :  { %v4282_v34 = vpop.f32.mrf.mxu0  ;;  %5957 = vst [vmem:[#allocation14_spill] sm:$0xff] %v4284_v54 }
 0x191   :  { %5956 = vst [vmem:[#allocation13_spill] sm:$0xff] %v4282_v34  ;;  %v4288_v56 = vpop.f32.mrf.mxu1 }
 0x192   :  { %v4286_v6 = vpop.f32.mrf.mxu0  ;;  %5959 = vst [vmem:[#allocation16_spill] sm:$0xff] %v4288_v56  ;;  %v360_v56 = vadd.f32 %v359_v5, %v214_v37 }
 0x193   :  { %5958 = vst [vmem:[#allocation15_spill] sm:$0xff] %v4286_v6  ;;  %v4292_v45 = vpop.f32.mrf.mxu1 }
 0x194   :  { %v4290_v61 = vpop.f32.mrf.mxu0  ;;  %5961 = vst [vmem:[#allocation18_spill] sm:$0xff] %v4292_v45  ;;  %v469_v45 = vmax.f32 %v358_v8, 0.0  ;;  %v470_v24 = vmax.f32 %v360_v56, 0.0 }
 0x195   :  { %5960 = vst [vmem:[#allocation17_spill] sm:$0xff] %v4290_v61  ;;  %v4296_v26 = vpop.f32.mrf.mxu1 }
 0x196   :  { %v4294_v28 = vpop.f32.mrf.mxu0  ;;  %5963 = vst [vmem:[#allocation20_spill] sm:$0xff] %v4296_v26 }
 0x197   :  { %5962 = vst [vmem:[#allocation19_spill] sm:$0xff] %v4294_v28  ;;  %v4300_v46 = vpop.f32.mrf.mxu1 }
 0x198   :  { %v4298_v33 = vpop.f32.mrf.mxu0  ;;  %5965 = vst [vmem:[#allocation22_spill] sm:$0xff] %v4300_v46 }
 0x199   :  { %5964 = vst [vmem:[#allocation21_spill] sm:$0xff] %v4298_v33 }
 0x24a   :  { %v713_v54 = vpop.f32.mrf.mxu0  ;;  %v754_v14 = vpop.f32.mrf.mxu1 }
 0x24b   :  { %v714_v6 = vadd.f32 %v713_v54, %v660_v12  ;;  %v755_v34 = vadd.f32 %v754_v14, %v660_v12  ;;  %v471_v14 = vmax.f32 %v431_v15, 0.0 }
 0x24c   :  { %v715_v61 = vpop.f32.mrf.mxu0  ;;  %v756_v17 = vpop.f32.mrf.mxu1 }
 0x24d   :  { %v4302_v62 = vmax.f32 %v714_v6, 0.0  ;;  %v716_v28 = vadd.f32 %v715_v61, %v660_v12  ;;  %v757_v26 = vadd.f32 %v756_v17, %v660_v12  ;;  %v4307_v31 = vmax.f32 %v755_v34, 0.0 }
 0x24e   :  { %v717_v51 = vpop.f32.mrf.mxu0  ;;  %v758_v33 = vpop.f32.mrf.mxu1 }
 0x24f   :  { %5966 = vst [vmem:[#allocation23_spill] sm:$0xff] %v4302_v62  ;;  %v4305_v46 = vadd.f32 %v4302_v62, %v469_v45  ;;  %5967 = vst [vmem:[#allocation24_spill] sm:$0xff] %v4307_v31  ;;  %v4309_v54 = vmax.f32 %v716_v28, 0.0  ;;  %v4314_v6 = vmax.f32 %v757_v26, 0.0  ;;  %v4319_v35 = vadd.f32 %v4307_v31, %v471_v14 }
 0x250   :  { %v718_v5 = vpop.f32.mrf.mxu0  ;;  %v759_v30 = vpop.f32.mrf.mxu1  ;;  %v472_v51 = vmax.f32 %v433_v13, 0.0  ;;  %v3372_v13 = vld [vmem:[%s5896_s5 + $0x8] sm:$0xff] }
 0x251   :  { %5968 = vst [vmem:[#allocation25_spill] sm:$0xff] %v4309_v54  ;;  %v4312_v8 = vadd.f32 %v4309_v54, %v470_v24  ;;  %5969 = vst [vmem:[#allocation26_spill] sm:$0xff] %v4314_v6  ;;  %881 = vrot.lane.b32.xlu1 %v4305_v46, %s3715_s28  ;;  %v200_v24 = vld [vmem:[%s5894_s3 + $0x10] sm:$0xff] }
 0x252   :  { %v4324_v17 = vadd.f32 %v4314_v6, %v472_v51 }
 0x253   :  { %883 = vrot.lane.b32.xlu0 %v4312_v8, %s3715_s28 }
 0x255   :  { %885 = vrot.lane.b32.xlu1 %v4319_v35, %s3715_s28 }
 0x257   :  { %887 = vrot.lane.b32.xlu0 %v4324_v17, %s3715_s28 }
 0x259   :  { %849 = vrot.lane.b32.xlu1 %v4305_v46, %s3716_s29 }
 0x25b   :  { %851 = vrot.lane.b32.xlu0 %v4312_v8, %s3716_s29 }
 0x25d   :  { %853 = vrot.lane.b32.xlu1 %v4319_v35, %s3716_s29 }
 0x25f   :  { %855 = vrot.lane.b32.xlu0 %v4324_v17, %s3716_s29 }
 0x261   :  { %865 = vrot.lane.b32.xlu1 %v4305_v46, %s3717_s30 }
 0x263   :  { %867 = vrot.lane.b32.xlu0 %v4312_v8, %s3717_s30 }
 0x265   :  { %869 = vrot.lane.b32.xlu1 %v4319_v35, %s3717_s30 }
 0x267   :  { %871 = vrot.lane.b32.xlu0 %v4324_v17, %s3717_s30 }
 0x269   :  { %833 = vrot.lane.b32.xlu1 %v4305_v46, %s3718_s14 }
 0x26b   :  { %835 = vrot.lane.b32.xlu0 %v4312_v8, %s3718_s14 }
 0x26d   :  { %837 = vrot.lane.b32.xlu1 %v4319_v35, %s3718_s14 }
 0x26f   :  { %839 = vrot.lane.b32.xlu0 %v4324_v17, %s3718_s14 }
 0x271   :  { %801 = vrot.lane.b32.xlu1 %v4305_v46, %s3719_s17 }
 0x273   :  { %803 = vrot.lane.b32.xlu0 %v4312_v8, %s3719_s17 }
 0x275   :  { %805 = vrot.lane.b32.xlu1 %v4319_v35, %s3719_s17 }
 0x277   :  { %807 = vrot.lane.b32.xlu0 %v4324_v17, %s3719_s17 }
 0x279   :  { %817 = vrot.lane.b32.xlu1 %v4305_v46, %s3720_s20 }
 0x27b   :  { %819 = vrot.lane.b32.xlu0 %v4312_v8, %s3720_s20 }
 0x27d   :  { %821 = vrot.lane.b32.xlu1 %v4319_v35, %s3720_s20 }
 0x27f   :  { %823 = vrot.lane.b32.xlu0 %v4324_v17, %s3720_s20 }
 0x281   :  { %769 = vrot.lane.b32.xlu1 %v4305_v46, %s3721_s23 }
 0x283   :  { %771 = vrot.lane.b32.xlu0 %v4312_v8, %s3721_s23 }
 0x285   :  { %773 = vrot.lane.b32.xlu1 %v4319_v35, %s3721_s23 }
 0x287   :  { %775 = vrot.lane.b32.xlu0 %v4324_v17, %s3721_s23 }
 0x289   :  { %785 = vrot.lane.b32.xlu1 %v4305_v46, %s3722_s2 }
 0x28b   :  { %787 = vrot.lane.b32.xlu0 %v4312_v8, %s3722_s2 }
 0x28d   :  { %789 = vrot.lane.b32.xlu1 %v4319_v35, %s3722_s2 }
 0x28f   :  { %791 = vrot.lane.b32.xlu0 %v4324_v17, %s3722_s2 }
 0x291   :  { %218 = vperm.xlu1 %3583, %v200_v24  }
 0x293   :  { %923 = vperm.xlu0 %3582, %v3372_v13  }
 0x2c3   :  { %v882_v15 = vpop.permute.xlu1 %881 }
 0x2c5   :  { %v884_v34 = vpop.permute.xlu0 %883 }
 0x2c6   :  { %v891_v56 = vsel %vm626_vm1, %v882_v15, %v884_v34 }
 0x2c7   :  { %v893_v61 = vmul.f32 %v4109_v11, %v891_v56  ;;  %v886_v45 = vpop.permute.xlu1 %885 }
 0x2c8   :  { %v890_v28 = vsel %vm626_vm1, %v884_v34, %v886_v45 }
 0x2c9   :  { %v915_v26 = vpack.c.bf16 %v893_v61, %v893_v61  ;;  %v894_v37 = vmul.f32 %v4114_v60, %v890_v28  ;;  %v888_v33 = vpop.permute.xlu0 %887 }
 0x2ca   :  { %v889_v12 = vsel %vm626_vm1, %v886_v45, %v888_v33  ;;  %v892_v5 = vsel %vm626_vm1, %v888_v33, %v882_v15 }
 0x2cb   :  { %v916_v30 = vpack.c.bf16 %v894_v37, %v894_v37  ;;  %v895_v14 = vmul.f32 %v3946_v41, %v889_v12  ;;  %v896_v51 = vmul.f32 %v3951_v42, %v892_v5  ;;  %v850_v24 = vpop.permute.xlu1 %849  ;;  %v930_v34 = vsel %vm666_vm2, %v915_v26, 0 }
 0x2cd   :  { %v917_v13 = vpack.c.bf16 %v895_v14, %v895_v14  ;;  %v918_v56 = vpack.c.bf16 %v896_v51, %v896_v51  ;;  %v852_v31 = vpop.permute.xlu0 %851  ;;  %3373 = vmatprep.subr.msk.bf16.mxu0 %vm666_vm2, %v916_v30 }
 0x2ce   :  { %948 = vmatpush1.bf16.msra.mxu0 %v930_v34  ;;  %v859_v5 = vsel %vm592_vm3, %v850_v24, %v852_v31 }
 0x2cf   :  { %3375 = vmatprep.subr.msk.bf16.mxu1 %vm666_vm2, %v918_v56  ;;  %v854_v61 = vpop.permute.xlu1 %853  ;;  %v936_v45 = vsel %vm666_vm2, %v917_v13, 0  ;;  %v861_v62 = vmul.f32 %v859_v5, %v4070_v48 }
 0x2d0   :  { %989 = vmatpush1.bf16.msra.mxu1 %v936_v45  ;;  %v858_v33 = vsel %vm592_vm3, %v852_v31, %v854_v61 }
 0x2d1   :  { %v856_v15 = vpop.permute.xlu0 %855  ;;  %v862_v56 = vmul.f32 %v858_v33, %v4082_v55 }
 0x2d2   :  { %v857_v26 = vsel %vm592_vm3, %v854_v61, %v856_v15  ;;  %v860_v14 = vsel %vm592_vm3, %v856_v15, %v850_v24 }
 0x2d3   :  { %v866_v28 = vpop.permute.xlu1 %865  ;;  %v863_v31 = vmul.f32 %v857_v26, %v3989_v63  ;;  %v864_v15 = vmul.f32 %v860_v14, %v3992_v0 }
 0x2d5   :  { %v868_v37 = vpop.permute.xlu0 %867 }
 0x2d6   :  { %v875_v12 = vsel %vm609_vm4, %v866_v28, %v868_v37 }
 0x2d7   :  { %v870_v30 = vpop.permute.xlu1 %869  ;;  %v877_v51 = vmul.f32 %v875_v12, %v4094_v7 }
 0x2d8   :  { %v874_v13 = vsel %vm609_vm4, %v868_v37, %v870_v30 }
 0x2d9   :  { %v878_v34 = vmul.f32 %v874_v13, %v4085_v3  ;;  %v872_v45 = vpop.permute.xlu0 %871  ;;  %v911_v13 = vpack.c.bf16 %v877_v51, %v861_v62 }
 0x2da   :  { %v873_v61 = vsel %vm609_vm4, %v870_v30, %v872_v45  ;;  %v876_v24 = vsel %vm609_vm4, %v872_v45, %v866_v28 }
 0x2db   :  { %v879_v12 = vmul.f32 %v873_v61, %v3995_v1  ;;  %v880_v37 = vmul.f32 %v876_v24, %v3998_v2  ;;  %v834_v33 = vpop.permute.xlu1 %833  ;;  %v912_v6 = vpack.c.bf16 %v878_v34, %v862_v56 }
 0x2dd   :  { %v913_v54 = vpack.c.bf16 %v879_v12, %v863_v31  ;;  %v836_v18 = vpop.permute.xlu0 %835  ;;  %949 = vmatprep.subr.bf16.mxu0 %v912_v6  ;;  %v914_v5 = vpack.c.bf16 %v880_v37, %v864_v15 }
 0x2de   :  { %v843_v26 = vsel %vm575_vm5, %v834_v33, %v836_v18  ;;  %950 = vmatpush1.bf16.msra.mxu0 %v911_v13 }
 0x2df   :  { %990 = vmatprep.subr.bf16.mxu1 %v914_v5  ;;  %v838_v30 = vpop.permute.xlu1 %837  ;;  %v845_v28 = vmul.f32 %v843_v26, %v4151_v25 }
 0x2e0   :  { %v842_v14 = vsel %vm575_vm5, %v836_v18, %v838_v30  ;;  %991 = vmatpush1.bf16.msra.mxu1 %v913_v54 }
 0x2e1   :  { %v846_v45 = vmul.f32 %v842_v14, %v4101_v59  ;;  %v840_v56 = vpop.permute.xlu0 %839  ;;  %v907_v24 = vpack.c.bf16 %v845_v28, %v4305_v46 }
 0x2e2   :  { %v841_v62 = vsel %vm575_vm5, %v838_v30, %v840_v56  ;;  %v844_v6 = vsel %vm575_vm5, %v840_v56, %v834_v33 }
 0x2e3   :  { %v847_v51 = vmul.f32 %v841_v62, %v4025_v19  ;;  %v848_v34 = vmul.f32 %v844_v6, %v4029_v20  ;;  %v802_v31 = vpop.permute.xlu1 %801  ;;  %v908_v61 = vpack.c.bf16 %v846_v45, %v4312_v8 }
 0x2e5   :  { %v909_v18 = vpack.c.bf16 %v847_v51, %v4319_v35  ;;  %v804_v54 = vpop.permute.xlu0 %803  ;;  %951 = vmatprep.subr.bf16.mxu0 %v908_v61  ;;  %v910_v15 = vpack.c.bf16 %v848_v34, %v4324_v17 }
 0x2e6   :  { %952 = vmatpush1.bf16.msra.mxu0 %v907_v24  ;;  %v811_v13 = vsel %vm541_vm7, %v802_v31, %v804_v54 }
 0x2e7   :  { %992 = vmatprep.subr.bf16.mxu1 %v910_v15  ;;  %v806_v12 = vpop.permute.xlu1 %805  ;;  %v814_v46 = vmul.f32 %v811_v13, %v4172_v16 }
 0x2e8   :  { %993 = vmatpush1.bf16.msra.mxu1 %v909_v18  ;;  %v810_v14 = vsel %vm541_vm7, %v804_v54, %v806_v12 }
 0x2e9   :  { %v808_v37 = vpop.permute.xlu0 %807  ;;  %v815_v54 = vmul.f32 %v810_v14, %v4088_v4 }
 0x2ea   :  { %v809_v17 = vsel %vm541_vm7, %v806_v12, %v808_v37  ;;  %v812_v30 = vsel %vm541_vm7, %v808_v37, %v802_v31 }
 0x2eb   :  { %v818_v33 = vpop.permute.xlu1 %817  ;;  %v813_v34 = vmul.f32 %v812_v30, %v4175_v23  ;;  %v816_v31 = vmul.f32 %v809_v17, %v4073_v49 }
 0x2ed   :  { %v820_v5 = vpop.permute.xlu0 %819 }
 0x2ee   :  { %v827_v8 = vsel %vm558_vm6, %v818_v33, %v820_v5 }
 0x2ef   :  { %v830_v35 = vmul.f32 %v827_v8, %v4155_v44  ;;  %v822_v26 = vpop.permute.xlu1 %821 }
 0x2f0   :  { %v826_v28 = vsel %vm558_vm6, %v820_v5, %v822_v26 }
 0x2f1   :  { %v824_v45 = vpop.permute.xlu0 %823  ;;  %v904_v56 = vpack.c.bf16 %v830_v35, %v814_v46  ;;  %v831_v62 = vmul.f32 %v826_v28, %v4067_v47 }
 0x2f2   :  { %v825_v6 = vsel %vm558_vm6, %v822_v26, %v824_v45  ;;  %v828_v51 = vsel %vm558_vm6, %v824_v45, %v818_v33 }
 0x2f3   :  { %v829_v61 = vmul.f32 %v828_v51, %v4179_v52  ;;  %v832_v24 = vmul.f32 %v825_v6, %v4079_v53  ;;  %953 = vmatprep.subr.bf16.mxu0 %v904_v56  ;;  %v770_v18 = vpop.permute.xlu1 %769  ;;  %v905_v13 = vpack.c.bf16 %v831_v62, %v815_v54 }
 0x2f5   :  { %v903_v15 = vpack.c.bf16 %v829_v61, %v813_v34  ;;  %v772_v12 = vpop.permute.xlu0 %771  ;;  %v906_v37 = vpack.c.bf16 %v832_v24, %v816_v31 }
 0x2f6   :  { %v779_v46 = vsel %vm507_vm8, %v770_v18, %v772_v12 }
 0x2f7   :  { %954 = vmatpush1.bf16.msra.mxu0 %v903_v15  ;;  %994 = vmatprep.subr.bf16.mxu1 %v906_v37  ;;  %v774_v5 = vpop.permute.xlu1 %773  ;;  %v782_v17 = vmul.f32 %v779_v46, %v4182_v27 }
 0x2f8   :  { %995 = vmatpush1.bf16.msra.mxu1 %v905_v13  ;;  %v778_v62 = vsel %vm507_vm8, %v772_v12, %v774_v5 }
 0x2f9   :  { %v776_v33 = vpop.permute.xlu0 %775  ;;  %v783_v12 = vmul.f32 %v778_v62, %v4194_v29 }
 0x2fa   :  { %v777_v14 = vsel %vm507_vm8, %v774_v5, %v776_v33  ;;  %v780_v45 = vsel %vm507_vm8, %v776_v33, %v770_v18  ;;  %v3371_v33 = vld [vmem:[%s5895_s4 + $0x4] sm:$0xf] }
 0x2fb   :  { %v786_v8 = vpop.permute.xlu1 %785  ;;  %v781_v24 = vmul.f32 %v780_v45, %v4205_v32  ;;  %v784_v18 = vmul.f32 %v777_v14, %v4208_v36 }
 0x2fd   :  { %v788_v35 = vpop.permute.xlu0 %787 }
 0x2fe   :  { %v795_v26 = vsel %vm524_vm9, %v786_v8, %v788_v35 }
 0x2ff   :  { %v798_v30 = vmul.f32 %v795_v26, %v4198_v40  ;;  %v790_v28 = vpop.permute.xlu1 %789 }
 0x300   :  { %v794_v56 = vsel %vm524_vm9, %v788_v35, %v790_v28 }
 0x301   :  { %v792_v6 = vpop.permute.xlu0 %791  ;;  %v900_v51 = vpack.c.bf16 %v798_v30, %v782_v17  ;;  %v799_v34 = vmul.f32 %v794_v56, %v4211_v50 }
 0x302   :  { %v793_v31 = vsel %vm524_vm9, %v790_v28, %v792_v6  ;;  %v796_v61 = vsel %vm524_vm9, %v792_v6, %v786_v8  ;;  %v5970_v8 = vmov 0  }
 0x303   :  { %v797_v54 = vmul.f32 %v796_v61, %v4216_v9  ;;  %v800_v15 = vmul.f32 %v793_v31, %v4219_v22  ;;  %955 = vmatprep.subr.bf16.mxu0 %v900_v51  ;;  %v901_v5 = vpack.c.bf16 %v799_v34, %v783_v12 }
 0x305   :  { %v899_v37 = vpack.c.bf16 %v797_v54, %v781_v24  ;;  %v902_v13 = vpack.c.bf16 %v800_v15, %v784_v18 }
 0x307   :  { %956 = vmatpush1.bf16.msra.mxu0 %v899_v37  ;;  %996 = vmatprep.subr.bf16.mxu1 %v902_v13 }
 0x308   :  { %997 = vmatpush1.bf16.msra.mxu1 %v901_v5 }
 0x30a   :  { %3374 = vmatmul.mubr.msk.bf16.vlgmr.msra.gmra.mxu0 %vm662_vm10, %v3371_v33 }
 0x30b   :  { %3376 = vmatmul.mubr.msk.bf16.vlgmr.msra.gmra.mxu1 %vm662_vm10, %v3371_v33  ;;  %1235 = vmatprep.mubr.bf16.mxu0 %v5970_v8 }
 0x30c   :  { %1276 = vmatprep.mubr.bf16.mxu1 %v5970_v8  ;;  %v219_v46 = vpop.permute.xlu1 %218 }
 0x30d   :  { %v364_v35 = vadd.f32 %v4254_v39, %v219_v46  ;;  %v366_v14 = vadd.f32 %v4258_v10, %v219_v46  ;;  %v437_v51 = vadd.f32 %v4256_v57, %v219_v46  ;;  %v439_v61 = vadd.f32 %v4260_v21, %v219_v46 }
 0x30e   :  { %v924_v26 = vpop.permute.xlu0 %923 }
 0x30f   :  { %v473_v62 = vmax.f32 %v364_v35, 0.0  ;;  %v474_v15 = vmax.f32 %v366_v14, 0.0  ;;  %v475_v13 = vmax.f32 %v437_v51, 0.0  ;;  %v476_v46 = vmax.f32 %v439_v61, 0.0 }
 0x3ca   :  { %v975_v17 = vpop.f32.mrf.mxu0 }
 0x3cb   :  { %v976_v30 = vadd.f32 %v975_v17, %v924_v26  ;;  %v1016_v28 = vpop.f32.mrf.mxu1  ;;  %v3378_v17 = vld [vmem:[%s5896_s5 + $0x10] sm:$0xff] }
 0x3cc   :  { %v1017_v45 = vadd.f32 %v1016_v28, %v924_v26  ;;  %v977_v56 = vpop.f32.mrf.mxu0 }
 0x3cd   :  { %v4505_v6 = vmax.f32 %v976_v30, 0.0  ;;  %v978_v34 = vadd.f32 %v977_v56, %v924_v26  ;;  %v1018_v31 = vpop.f32.mrf.mxu1 }
 0x3ce   :  { %v1019_v24 = vadd.f32 %v1018_v31, %v924_v26  ;;  %v979_v18 = vpop.f32.mrf.mxu0  ;;  %v4512_v54 = vmax.f32 %v1017_v45, 0.0  ;;  %v201_v26 = vld [vmem:[%s5894_s3 + $0x18] sm:$0xff] }
 0x3cf   :  { %5971 = vst [vmem:[#allocation27_spill] sm:$0xff] %v4505_v6  ;;  %v4510_v39 = vadd.f32 %v4505_v6, %v473_v62  ;;  %v4514_v10 = vmax.f32 %v978_v34, 0.0  ;;  %v1020_v12 = vpop.f32.mrf.mxu1 }
 0x3d0   :  { %5972 = vst [vmem:[#allocation28_spill] sm:$0xff] %v4512_v54  ;;  %v980_v37 = vpop.f32.mrf.mxu0  ;;  %v4519_v57 = vmax.f32 %v1019_v24, 0.0  ;;  %v4524_v21 = vadd.f32 %v4512_v54, %v475_v13 }
 0x3d1   :  { %5973 = vst [vmem:[#allocation29_spill] sm:$0xff] %v4514_v10  ;;  %v4517_v5 = vadd.f32 %v4514_v10, %v474_v15  ;;  %v1021_v33 = vpop.f32.mrf.mxu1  ;;  %1143 = vrot.lane.b32.xlu1 %v4510_v39, %s3715_s28 }
 0x3d2   :  { %5974 = vst [vmem:[#allocation30_spill] sm:$0xff] %v4519_v57  ;;  %v4529_v35 = vadd.f32 %v4519_v57, %v476_v46 }
 0x3d3   :  { %1145 = vrot.lane.b32.xlu0 %v4517_v5, %s3715_s28 }
 0x3d5   :  { %1147 = vrot.lane.b32.xlu1 %v4524_v21, %s3715_s28 }
 0x3d7   :  { %1149 = vrot.lane.b32.xlu0 %v4529_v35, %s3715_s28 }
 0x3d9   :  { %1111 = vrot.lane.b32.xlu1 %v4510_v39, %s3716_s29 }
 0x3db   :  { %1113 = vrot.lane.b32.xlu0 %v4517_v5, %s3716_s29 }
 0x3dd   :  { %1115 = vrot.lane.b32.xlu1 %v4524_v21, %s3716_s29 }
 0x3df   :  { %1117 = vrot.lane.b32.xlu0 %v4529_v35, %s3716_s29 }
 0x3e1   :  { %1127 = vrot.lane.b32.xlu1 %v4510_v39, %s3717_s30 }
 0x3e3   :  { %1129 = vrot.lane.b32.xlu0 %v4517_v5, %s3717_s30 }
 0x3e5   :  { %1131 = vrot.lane.b32.xlu1 %v4524_v21, %s3717_s30 }
 0x3e7   :  { %1133 = vrot.lane.b32.xlu0 %v4529_v35, %s3717_s30 }
 0x3e9   :  { %1095 = vrot.lane.b32.xlu1 %v4510_v39, %s3718_s14 }
 0x3eb   :  { %1097 = vrot.lane.b32.xlu0 %v4517_v5, %s3718_s14 }
 0x3ed   :  { %1099 = vrot.lane.b32.xlu1 %v4524_v21, %s3718_s14 }
 0x3ef   :  { %1101 = vrot.lane.b32.xlu0 %v4529_v35, %s3718_s14 }
 0x3f1   :  { %1063 = vrot.lane.b32.xlu1 %v4510_v39, %s3719_s17 }
 0x3f3   :  { %1065 = vrot.lane.b32.xlu0 %v4517_v5, %s3719_s17 }
 0x3f5   :  { %1067 = vrot.lane.b32.xlu1 %v4524_v21, %s3719_s17 }
 0x3f7   :  { %1069 = vrot.lane.b32.xlu0 %v4529_v35, %s3719_s17 }
 0x3f9   :  { %1079 = vrot.lane.b32.xlu1 %v4510_v39, %s3720_s20 }
 0x3fb   :  { %1081 = vrot.lane.b32.xlu0 %v4517_v5, %s3720_s20 }
 0x3fd   :  { %1083 = vrot.lane.b32.xlu1 %v4524_v21, %s3720_s20 }
 0x3ff   :  { %1085 = vrot.lane.b32.xlu0 %v4529_v35, %s3720_s20 }
 0x401   :  { %1031 = vrot.lane.b32.xlu1 %v4510_v39, %s3721_s23 }
 0x403   :  { %1033 = vrot.lane.b32.xlu0 %v4517_v5, %s3721_s23 }
 0x405   :  { %1035 = vrot.lane.b32.xlu1 %v4524_v21, %s3721_s23 }
 0x407   :  { %1037 = vrot.lane.b32.xlu0 %v4529_v35, %s3721_s23 }
 0x409   :  { %1047 = vrot.lane.b32.xlu1 %v4510_v39, %s3722_s2 }
 0x40b   :  { %1049 = vrot.lane.b32.xlu0 %v4517_v5, %s3722_s2 }
 0x40d   :  { %1051 = vrot.lane.b32.xlu1 %v4524_v21, %s3722_s2 }
 0x40f   :  { %1053 = vrot.lane.b32.xlu0 %v4529_v35, %s3722_s2 }
 0x411   :  { %223 = vperm.xlu1 %3583, %v201_v26  }
 0x413   :  { %1185 = vperm.xlu0 %3582, %v3378_v17  }
 0x443   :  { %v1144_v30 = vpop.permute.xlu1 %1143 }
 0x445   :  { %v1146_v28 = vpop.permute.xlu0 %1145 }
 0x446   :  { %v1153_v14 = vsel %vm626_vm1, %v1144_v30, %v1146_v28 }
 0x447   :  { %v1155_v45 = vmul.f32 %v4109_v11, %v1153_v14  ;;  %v1148_v56 = vpop.permute.xlu1 %1147 }
 0x448   :  { %v1152_v62 = vsel %vm626_vm1, %v1146_v28, %v1148_v56 }
 0x449   :  { %v1177_v51 = vpack.c.bf16 %v1155_v45, %v1155_v45  ;;  %v1156_v34 = vmul.f32 %v4114_v60, %v1152_v62  ;;  %v1150_v31 = vpop.permute.xlu0 %1149 }
 0x44a   :  { %v1151_v61 = vsel %vm626_vm1, %v1148_v56, %v1150_v31  ;;  %v1154_v24 = vsel %vm626_vm1, %v1150_v31, %v1144_v30 }
 0x44b   :  { %v1178_v18 = vpack.c.bf16 %v1156_v34, %v1156_v34  ;;  %v1157_v15 = vmul.f32 %v3946_v41, %v1151_v61  ;;  %v1158_v12 = vmul.f32 %v3951_v42, %v1154_v24  ;;  %v1112_v11 = vpop.permute.xlu1 %1111  ;;  %v1192_v60 = vsel %vm666_vm2, %v1177_v51, 0 }
 0x44d   :  { %v1179_v37 = vpack.c.bf16 %v1157_v15, %v1157_v15  ;;  %v1180_v13 = vpack.c.bf16 %v1158_v12, %v1158_v12  ;;  %v1114_v33 = vpop.permute.xlu0 %1113  ;;  %3379 = vmatprep.subr.msk.bf16.mxu0 %vm666_vm2, %v1178_v18 }
 0x44e   :  { %1210 = vmatpush1.bf16.msra.mxu0 %v1192_v60  ;;  %v1121_v14 = vsel %vm592_vm3, %v1112_v11, %v1114_v33 }
 0x44f   :  { %3381 = vmatprep.subr.msk.bf16.mxu1 %vm666_vm2, %v1180_v13  ;;  %v1116_v46 = vpop.permute.xlu1 %1115  ;;  %v1198_v26 = vsel %vm666_vm2, %v1179_v37, 0  ;;  %v1123_v18 = vmul.f32 %v1121_v14, %v4070_v48 }
 0x450   :  { %1251 = vmatpush1.bf16.msra.mxu1 %v1198_v26  ;;  %v1120_v42 = vsel %vm592_vm3, %v1114_v33, %v1116_v46 }
 0x451   :  { %v1118_v17 = vpop.permute.xlu0 %1117  ;;  %v1124_v31 = vmul.f32 %v1120_v42, %v4082_v55 }
 0x452   :  { %v1119_v45 = vsel %vm592_vm3, %v1116_v46, %v1118_v17  ;;  %v1122_v62 = vsel %vm592_vm3, %v1118_v17, %v1112_v11 }
 0x453   :  { %v1128_v30 = vpop.permute.xlu1 %1127  ;;  %v1125_v15 = vmul.f32 %v1119_v45, %v3989_v63  ;;  %v1126_v37 = vmul.f32 %v1122_v62, %v3992_v0 }
 0x455   :  { %v1130_v41 = vpop.permute.xlu0 %1129 }
 0x456   :  { %v1137_v28 = vsel %vm609_vm4, %v1128_v30, %v1130_v41 }
 0x457   :  { %v1132_v56 = vpop.permute.xlu1 %1131  ;;  %v1139_v51 = vmul.f32 %v1137_v28, %v4094_v7 }
 0x458   :  { %v1136_v34 = vsel %vm609_vm4, %v1130_v41, %v1132_v56 }
 0x459   :  { %v1140_v61 = vmul.f32 %v1136_v34, %v4085_v3  ;;  %v1134_v24 = vpop.permute.xlu0 %1133  ;;  %v1173_v26 = vpack.c.bf16 %v1139_v51, %v1123_v18 }
 0x45a   :  { %v1135_v12 = vsel %vm609_vm4, %v1132_v56, %v1134_v24  ;;  %v1138_v11 = vsel %vm609_vm4, %v1134_v24, %v1128_v30 }
 0x45b   :  { %v1141_v13 = vmul.f32 %v1135_v12, %v3995_v1  ;;  %v1142_v33 = vmul.f32 %v1138_v11, %v3998_v2  ;;  %v1096_v60 = vpop.permute.xlu1 %1095  ;;  %v1174_v46 = vpack.c.bf16 %v1140_v61, %v1124_v31 }
 0x45d   :  { %v1175_v17 = vpack.c.bf16 %v1141_v13, %v1125_v15  ;;  %v1098_v41 = vpop.permute.xlu0 %1097  ;;  %1211 = vmatprep.subr.bf16.mxu0 %v1174_v46  ;;  %v1176_v42 = vpack.c.bf16 %v1142_v33, %v1126_v37 }
 0x45e   :  { %v1105_v28 = vsel %vm575_vm5, %v1096_v60, %v1098_v41  ;;  %1212 = vmatpush1.bf16.msra.mxu0 %v1173_v26 }
 0x45f   :  { %1252 = vmatprep.subr.bf16.mxu1 %v1176_v42  ;;  %v1100_v14 = vpop.permute.xlu1 %1099  ;;  %v1107_v30 = vmul.f32 %v1105_v28, %v4151_v25 }
 0x460   :  { %v1104_v45 = vsel %vm575_vm5, %v1098_v41, %v1100_v14  ;;  %1253 = vmatpush1.bf16.msra.mxu1 %v1175_v17 }
 0x461   :  { %v1108_v56 = vmul.f32 %v1104_v45, %v4101_v59  ;;  %v1102_v62 = vpop.permute.xlu0 %1101  ;;  %v1169_v15 = vpack.c.bf16 %v1107_v30, %v4510_v39 }
 0x462   :  { %v1103_v51 = vsel %vm575_vm5, %v1100_v14, %v1102_v62  ;;  %v1106_v34 = vsel %vm575_vm5, %v1102_v62, %v1096_v60 }
 0x463   :  { %v1109_v31 = vmul.f32 %v1103_v51, %v4025_v19  ;;  %v1110_v61 = vmul.f32 %v1106_v34, %v4029_v20  ;;  %v1064_v24 = vpop.permute.xlu1 %1063  ;;  %v1170_v18 = vpack.c.bf16 %v1108_v56, %v4517_v5 }
 0x465   :  { %v1171_v12 = vpack.c.bf16 %v1109_v31, %v4524_v21  ;;  %v1066_v11 = vpop.permute.xlu0 %1065  ;;  %1213 = vmatprep.subr.bf16.mxu0 %v1170_v18  ;;  %v1172_v37 = vpack.c.bf16 %v1110_v61, %v4529_v35 }
 0x466   :  { %1214 = vmatpush1.bf16.msra.mxu0 %v1169_v15  ;;  %v1073_v46 = vsel %vm541_vm7, %v1064_v24, %v1066_v11 }
 0x467   :  { %1254 = vmatprep.subr.bf16.mxu1 %v1172_v37  ;;  %v1068_v13 = vpop.permute.xlu1 %1067  ;;  %v1076_v39 = vmul.f32 %v1073_v46, %v4172_v16 }
 0x468   :  { %1255 = vmatpush1.bf16.msra.mxu1 %v1171_v12  ;;  %v1072_v28 = vsel %vm541_vm7, %v1066_v11, %v1068_v13 }
 0x469   :  { %v1070_v33 = vpop.permute.xlu0 %1069  ;;  %v1077_v18 = vmul.f32 %v1072_v28, %v4088_v4 }
 0x46a   :  { %v1071_v35 = vsel %vm541_vm7, %v1068_v13, %v1070_v33  ;;  %v1074_v41 = vsel %vm541_vm7, %v1070_v33, %v1064_v24 }
 0x46b   :  { %v1080_v60 = vpop.permute.xlu1 %1079  ;;  %v1075_v51 = vmul.f32 %v1074_v41, %v4175_v23  ;;  %v1078_v34 = vmul.f32 %v1071_v35, %v4073_v49 }
 0x46d   :  { %v1082_v26 = vpop.permute.xlu0 %1081 }
 0x46e   :  { %v1089_v5 = vsel %vm558_vm6, %v1080_v60, %v1082_v26 }
 0x46f   :  { %v1092_v21 = vmul.f32 %v1089_v5, %v4155_v44  ;;  %v1084_v17 = vpop.permute.xlu1 %1083 }
 0x470   :  { %v1088_v42 = vsel %vm558_vm6, %v1082_v26, %v1084_v17 }
 0x471   :  { %v1086_v14 = vpop.permute.xlu0 %1085  ;;  %v1166_v30 = vpack.c.bf16 %v1092_v21, %v1076_v39  ;;  %v1093_v45 = vmul.f32 %v1088_v42, %v4067_v47 }
 0x472   :  { %v1087_v56 = vsel %vm558_vm6, %v1084_v17, %v1086_v14  ;;  %v1090_v62 = vsel %vm558_vm6, %v1086_v14, %v1080_v60 }
 0x473   :  { %v1091_v31 = vmul.f32 %v1090_v62, %v4179_v52  ;;  %v1094_v61 = vmul.f32 %v1087_v56, %v4079_v53  ;;  %1215 = vmatprep.subr.bf16.mxu0 %v1166_v30  ;;  %v1032_v24 = vpop.permute.xlu1 %1031  ;;  %v1167_v37 = vpack.c.bf16 %v1093_v45, %v1077_v18 }
 0x475   :  { %v1165_v15 = vpack.c.bf16 %v1091_v31, %v1075_v51  ;;  %v1034_v12 = vpop.permute.xlu0 %1033  ;;  %v1168_v11 = vpack.c.bf16 %v1094_v61, %v1078_v34 }
 0x476   :  { %v1041_v46 = vsel %vm507_vm8, %v1032_v24, %v1034_v12 }
 0x477   :  { %1216 = vmatpush1.bf16.msra.mxu0 %v1165_v15  ;;  %1256 = vmatprep.subr.bf16.mxu1 %v1168_v11  ;;  %v1036_v13 = vpop.permute.xlu1 %1035  ;;  %v1044_v39 = vmul.f32 %v1041_v46, %v4182_v27  ;;  %v3377_v11 = vld [vmem:[%s5895_s4 + $0x8] sm:$0xf] }
 0x478   :  { %1257 = vmatpush1.bf16.msra.mxu1 %v1167_v37  ;;  %v1040_v28 = vsel %vm507_vm8, %v1034_v12, %v1036_v13 }
 0x479   :  { %v1038_v33 = vpop.permute.xlu0 %1037 }
 0x47a   :  { %v1039_v35 = vsel %vm507_vm8, %v1036_v13, %v1038_v33  ;;  %v1042_v41 = vsel %vm507_vm8, %v1038_v33, %v1032_v24  ;;  %v1045_v24 = vmul.f32 %v1040_v28, %v4194_v29 }
 0x47b   :  { %v1048_v60 = vpop.permute.xlu1 %1047  ;;  %v1043_v51 = vmul.f32 %v1042_v41, %v4205_v32  ;;  %v1046_v34 = vmul.f32 %v1039_v35, %v4208_v36  ;;  %v5976_v41 = vld [vmem:[#allocation5_spill] sm:$0xff] }
 0x47d   :  { %v1050_v26 = vpop.permute.xlu0 %1049 }
 0x47e   :  { %v1057_v5 = vsel %vm524_vm9, %v1048_v60, %v1050_v26 }
 0x47f   :  { %v1060_v21 = vmul.f32 %v1057_v5, %v4198_v40  ;;  %v1052_v17 = vpop.permute.xlu1 %1051 }
 0x480   :  { %v1056_v42 = vsel %vm524_vm9, %v1050_v26, %v1052_v17 }
 0x481   :  { %v1054_v14 = vpop.permute.xlu0 %1053  ;;  %v1162_v30 = vpack.c.bf16 %v1060_v21, %v1044_v39  ;;  %v1061_v45 = vmul.f32 %v1056_v42, %v4211_v50 }
 0x482   :  { %v1055_v56 = vsel %vm524_vm9, %v1052_v17, %v1054_v14  ;;  %v1058_v62 = vsel %vm524_vm9, %v1054_v14, %v1048_v60 }
 0x483   :  { %v1059_v31 = vmul.f32 %v1058_v62, %v4216_v9  ;;  %v1062_v61 = vmul.f32 %v1055_v56, %v4219_v22  ;;  %1217 = vmatprep.subr.bf16.mxu0 %v1162_v30  ;;  %v1163_v12 = vpack.c.bf16 %v1061_v45, %v1045_v24  ;;  %v5977_v30 = vld [vmem:[#allocation6_spill] sm:$0xff] }
 0x485   :  { %v1161_v18 = vpack.c.bf16 %v1059_v31, %v1043_v51  ;;  %v1164_v15 = vpack.c.bf16 %v1062_v61, %v1046_v34 }
 0x487   :  { %1218 = vmatpush1.bf16.msra.mxu0 %v1161_v18  ;;  %1258 = vmatprep.subr.bf16.mxu1 %v1164_v15 }
 0x488   :  { %1259 = vmatpush1.bf16.msra.mxu1 %v1163_v12 }
 0x48a   :  { %3380 = vmatmul.mubr.msk.bf16.vlgmr.msra.gmra.mxu0 %vm662_vm10, %v3377_v11 }
 0x48b   :  { %3382 = vmatmul.mubr.msk.bf16.vlgmr.msra.gmra.mxu1 %vm662_vm10, %v3377_v11  ;;  %1497 = vmatprep.mubr.bf16.mxu0 %v5970_v8 }
 0x48c   :  { %1538 = vmatprep.mubr.bf16.mxu1 %v5970_v8  ;;  %v224_v37 = vpop.permute.xlu1 %223 }
 0x48d   :  { %v368_v13 = vadd.f32 %v4262_v43, %v224_v37  ;;  %v370_v5 = vadd.f32 %v4266_v58, %v224_v37  ;;  %v441_v42 = vadd.f32 %v5976_v41, %v224_v37  ;;  %v443_v45 = vadd.f32 %v5977_v30, %v224_v37 }
 0x48e   :  { %v1186_v33 = vpop.permute.xlu0 %1185 }
 0x48f   :  { %v477_v17 = vmax.f32 %v368_v13, 0.0  ;;  %v478_v34 = vmax.f32 %v370_v5, 0.0  ;;  %v479_v24 = vmax.f32 %v441_v42, 0.0  ;;  %v480_v37 = vmax.f32 %v443_v45, 0.0 }
 0x54a   :  { %v1237_v60 = vpop.f32.mrf.mxu0 }
 0x54b   :  { %v1238_v46 = vadd.f32 %v1237_v60, %v1186_v33  ;;  %v1278_v26 = vpop.f32.mrf.mxu1  ;;  %v3384_v60 = vld [vmem:[%s5896_s5 + $0x18] sm:$0xff] }
 0x54c   :  { %v1279_v39 = vadd.f32 %v1278_v26, %v1186_v33  ;;  %v1239_v21 = vpop.f32.mrf.mxu0 }
 0x54d   :  { %v4710_v35 = vmax.f32 %v1238_v46, 0.0  ;;  %v1240_v28 = vadd.f32 %v1239_v21, %v1186_v33  ;;  %v1280_v14 = vpop.f32.mrf.mxu1 }
 0x54e   :  { %v1281_v56 = vadd.f32 %v1280_v14, %v1186_v33  ;;  %v1241_v62 = vpop.f32.mrf.mxu0  ;;  %v4717_v51 = vmax.f32 %v1279_v39, 0.0  ;;  %v202_v33 = vld [vmem:[%s5894_s3 + $0x20] sm:$0xff] }
 0x54f   :  { %5975 = vst [vmem:[#allocation31_spill] sm:$0xff] %v4710_v35  ;;  %v4715_v43 = vadd.f32 %v4710_v35, %v477_v17  ;;  %v4719_v58 = vmax.f32 %v1240_v28, 0.0  ;;  %v1282_v31 = vpop.f32.mrf.mxu1  ;;  %v4807_v39 = vld [vmem:[%s5892_s1 + $0x20] ss:$0 sm:$0xff]  ;;  %v4815_v28 = vld [vmem:[%s5892_s1 + $0x28] ss:$0 sm:$0xff] }
 0x550   :  { %5978 = vst [vmem:[#allocation5_spill] sm:$0xff] %v4717_v51  ;;  %v1242_v61 = vpop.f32.mrf.mxu0  ;;  %v4724_v15 = vmax.f32 %v1281_v56, 0.0  ;;  %v4729_v11 = vadd.f32 %v4717_v51, %v479_v24 }
 0x551   :  { %v4722_v18 = vadd.f32 %v4719_v58, %v478_v34  ;;  %v1283_v12 = vpop.f32.mrf.mxu1  ;;  %1405 = vrot.lane.b32.xlu1 %v4715_v43, %s3715_s28  ;;  %v4825_v34 = vld [vmem:[%s5892_s1 + $0x30] ss:$0 sm:$0xff]  ;;  %v4831_v61 = vld [vmem:[%s5892_s1 + $0x38] ss:$0 sm:$0xff] }
 0x552   :  { %5979 = vst [vmem:[#allocation6_spill] sm:$0xff] %v4724_v15  ;;  %v4734_v13 = vadd.f32 %v4724_v15, %v480_v37 }
 0x553   :  { %1407 = vrot.lane.b32.xlu0 %v4722_v18, %s3715_s28 }
 0x555   :  { %1409 = vrot.lane.b32.xlu1 %v4729_v11, %s3715_s28 }
 0x557   :  { %1411 = vrot.lane.b32.xlu0 %v4734_v13, %s3715_s28 }
 0x559   :  { %1373 = vrot.lane.b32.xlu1 %v4715_v43, %s3716_s29 }
 0x55b   :  { %1375 = vrot.lane.b32.xlu0 %v4722_v18, %s3716_s29 }
 0x55d   :  { %1377 = vrot.lane.b32.xlu1 %v4729_v11, %s3716_s29 }
 0x55f   :  { %1379 = vrot.lane.b32.xlu0 %v4734_v13, %s3716_s29 }
 0x561   :  { %1389 = vrot.lane.b32.xlu1 %v4715_v43, %s3717_s30 }
 0x563   :  { %1391 = vrot.lane.b32.xlu0 %v4722_v18, %s3717_s30 }
 0x565   :  { %1393 = vrot.lane.b32.xlu1 %v4729_v11, %s3717_s30 }
 0x567   :  { %1395 = vrot.lane.b32.xlu0 %v4734_v13, %s3717_s30 }
 0x569   :  { %1357 = vrot.lane.b32.xlu1 %v4715_v43, %s3718_s14 }
 0x56b   :  { %1359 = vrot.lane.b32.xlu0 %v4722_v18, %s3718_s14 }
 0x56d   :  { %1361 = vrot.lane.b32.xlu1 %v4729_v11, %s3718_s14 }
 0x56f   :  { %1363 = vrot.lane.b32.xlu0 %v4734_v13, %s3718_s14 }
 0x571   :  { %1325 = vrot.lane.b32.xlu1 %v4715_v43, %s3719_s17 }
 0x573   :  { %1327 = vrot.lane.b32.xlu0 %v4722_v18, %s3719_s17 }
 0x575   :  { %1329 = vrot.lane.b32.xlu1 %v4729_v11, %s3719_s17 }
 0x577   :  { %1331 = vrot.lane.b32.xlu0 %v4734_v13, %s3719_s17 }
 0x579   :  { %1341 = vrot.lane.b32.xlu1 %v4715_v43, %s3720_s20 }
 0x57b   :  { %1343 = vrot.lane.b32.xlu0 %v4722_v18, %s3720_s20 }
 0x57d   :  { %1345 = vrot.lane.b32.xlu1 %v4729_v11, %s3720_s20 }
 0x57f   :  { %1347 = vrot.lane.b32.xlu0 %v4734_v13, %s3720_s20 }
 0x581   :  { %1293 = vrot.lane.b32.xlu1 %v4715_v43, %s3721_s23 }
 0x583   :  { %1295 = vrot.lane.b32.xlu0 %v4722_v18, %s3721_s23 }
 0x585   :  { %1297 = vrot.lane.b32.xlu1 %v4729_v11, %s3721_s23 }
 0x587   :  { %1299 = vrot.lane.b32.xlu0 %v4734_v13, %s3721_s23 }
 0x589   :  { %1309 = vrot.lane.b32.xlu1 %v4715_v43, %s3722_s2 }
 0x58b   :  { %1311 = vrot.lane.b32.xlu0 %v4722_v18, %s3722_s2 }
 0x58d   :  { %1313 = vrot.lane.b32.xlu1 %v4729_v11, %s3722_s2 }
 0x58f   :  { %1315 = vrot.lane.b32.xlu0 %v4734_v13, %s3722_s2 }
 0x591   :  { %228 = vperm.xlu1 %3583, %v202_v33  }
 0x593   :  { %1447 = vperm.xlu0 %3582, %v3384_v60  }
 0x5c3   :  { %v1406_v46 = vpop.permute.xlu1 %1405 }
 0x5c5   :  { %v1408_v26 = vpop.permute.xlu0 %1407 }
 0x5c6   :  { %v1415_v5 = vsel %vm626_vm1, %v1406_v46, %v1408_v26 }
 0x5c7   :  { %v1417_v21 = vmul.f32 %v4807_v39, %v1415_v5  ;;  %v1410_v17 = vpop.permute.xlu1 %1409 }
 0x5c8   :  { %v1414_v41 = vsel %vm626_vm1, %v1408_v26, %v1410_v17 }
 0x5c9   :  { %v1439_v42 = vpack.c.bf16 %v1417_v21, %v1417_v21  ;;  %v1418_v14 = vmul.f32 %v4815_v28, %v1414_v41  ;;  %v1412_v30 = vpop.permute.xlu0 %1411 }
 0x5ca   :  { %v1413_v45 = vsel %vm626_vm1, %v1410_v17, %v1412_v30  ;;  %v1416_v56 = vsel %vm626_vm1, %v1412_v30, %v1406_v46 }
 0x5cb   :  { %v1440_v62 = vpack.c.bf16 %v1418_v14, %v1418_v14  ;;  %v1419_v31 = vmul.f32 %v4825_v34, %v1413_v45  ;;  %v1420_v24 = vmul.f32 %v4831_v61, %v1416_v56  ;;  %v1374_v12 = vpop.permute.xlu1 %1373  ;;  %v1454_v46 = vsel %vm666_vm2, %v1439_v42, 0 }
 0x5cd   :  { %v1441_v37 = vpack.c.bf16 %v1419_v31, %v1419_v31  ;;  %v1442_v33 = vpack.c.bf16 %v1420_v24, %v1420_v24  ;;  %v1376_v60 = vpop.permute.xlu0 %1375  ;;  %3385 = vmatprep.subr.msk.bf16.mxu0 %vm666_vm2, %v1440_v62 }
 0x5ce   :  { %1472 = vmatpush1.bf16.msra.mxu0 %v1454_v46  ;;  %v1383_v45 = vsel %vm592_vm3, %v1374_v12, %v1376_v60 }
 0x5cf   :  { %3387 = vmatprep.subr.msk.bf16.mxu1 %vm666_vm2, %v1442_v33  ;;  %v1378_v26 = vpop.permute.xlu1 %1377  ;;  %v1460_v5 = vsel %vm666_vm2, %v1441_v37, 0 }
 0x5d0   :  { %1513 = vmatpush1.bf16.msra.mxu1 %v1460_v5  ;;  %v1382_v14 = vsel %vm592_vm3, %v1376_v60, %v1378_v26  ;;  %v1385_v5 = vmul.f32 %v1383_v45, %v4070_v48 }
 0x5d1   :  { %v1380_v21 = vpop.permute.xlu0 %1379  ;;  %v1386_v37 = vmul.f32 %v1382_v14, %v4082_v55 }
 0x5d2   :  { %v1381_v42 = vsel %vm592_vm3, %v1378_v26, %v1380_v21  ;;  %v1384_v62 = vsel %vm592_vm3, %v1380_v21, %v1374_v12 }
 0x5d3   :  { %v1390_v17 = vpop.permute.xlu1 %1389  ;;  %v1387_v60 = vmul.f32 %v1381_v42, %v3989_v63  ;;  %v1388_v21 = vmul.f32 %v1384_v62, %v3992_v0 }
 0x5d5   :  { %v1392_v41 = vpop.permute.xlu0 %1391 }
 0x5d6   :  { %v1399_v30 = vsel %vm609_vm4, %v1390_v17, %v1392_v41 }
 0x5d7   :  { %v1394_v56 = vpop.permute.xlu1 %1393  ;;  %v1401_v31 = vmul.f32 %v1399_v30, %v4094_v7 }
 0x5d8   :  { %v1398_v24 = vsel %vm609_vm4, %v1392_v41, %v1394_v56 }
 0x5d9   :  { %v1402_v33 = vmul.f32 %v1398_v24, %v4085_v3  ;;  %v1396_v46 = vpop.permute.xlu0 %1395  ;;  %v1435_v24 = vpack.c.bf16 %v1401_v31, %v1385_v5 }
 0x5da   :  { %v1397_v26 = vsel %vm609_vm4, %v1394_v56, %v1396_v46  ;;  %v1400_v12 = vsel %vm609_vm4, %v1396_v46, %v1390_v17 }
 0x5db   :  { %v1403_v30 = vmul.f32 %v1397_v26, %v3995_v1  ;;  %v1404_v41 = vmul.f32 %v1400_v12, %v3998_v2  ;;  %v1358_v14 = vpop.permute.xlu1 %1357  ;;  %v1436_v51 = vpack.c.bf16 %v1402_v33, %v1386_v37 }
 0x5dd   :  { %v1437_v35 = vpack.c.bf16 %v1403_v30, %v1387_v60  ;;  %v1360_v15 = vpop.permute.xlu0 %1359  ;;  %1473 = vmatprep.subr.bf16.mxu0 %v1436_v51  ;;  %v1438_v45 = vpack.c.bf16 %v1404_v41, %v1388_v21 }
 0x5de   :  { %v1367_v42 = vsel %vm575_vm5, %v1358_v14, %v1360_v15  ;;  %1474 = vmatpush1.bf16.msra.mxu0 %v1435_v24 }
 0x5df   :  { %1514 = vmatprep.subr.bf16.mxu1 %v1438_v45  ;;  %v1362_v56 = vpop.permute.xlu1 %1361  ;;  %v1369_v17 = vmul.f32 %v1367_v42, %v4151_v25 }
 0x5e0   :  { %v1366_v62 = vsel %vm575_vm5, %v1360_v15, %v1362_v56  ;;  %1515 = vmatpush1.bf16.msra.mxu1 %v1437_v35 }
 0x5e1   :  { %v1370_v46 = vmul.f32 %v1366_v62, %v4101_v59  ;;  %v1364_v37 = vpop.permute.xlu0 %1363  ;;  %v1431_v12 = vpack.c.bf16 %v1369_v17, %v4715_v43 }
 0x5e2   :  { %v1365_v31 = vsel %vm575_vm5, %v1362_v56, %v1364_v37  ;;  %v1368_v51 = vsel %vm575_vm5, %v1364_v37, %v1358_v14 }
 0x5e3   :  { %v1371_v33 = vmul.f32 %v1365_v31, %v4025_v19  ;;  %v1372_v5 = vmul.f32 %v1368_v51, %v4029_v20  ;;  %v1326_v60 = vpop.permute.xlu1 %1325  ;;  %v1432_v26 = vpack.c.bf16 %v1370_v46, %v4722_v18 }
 0x5e5   :  { %v1433_v35 = vpack.c.bf16 %v1371_v33, %v4729_v11  ;;  %v1328_v15 = vpop.permute.xlu0 %1327  ;;  %1475 = vmatprep.subr.bf16.mxu0 %v1432_v26  ;;  %v1434_v21 = vpack.c.bf16 %v1372_v5, %v4734_v13 }
 0x5e6   :  { %1476 = vmatpush1.bf16.msra.mxu0 %v1431_v12  ;;  %v1335_v24 = vsel %vm541_vm7, %v1326_v60, %v1328_v15 }
 0x5e7   :  { %1516 = vmatprep.subr.bf16.mxu1 %v1434_v21  ;;  %v1330_v30 = vpop.permute.xlu1 %1329  ;;  %v1338_v43 = vmul.f32 %v1335_v24, %v4172_v16 }
 0x5e8   :  { %1517 = vmatpush1.bf16.msra.mxu1 %v1433_v35  ;;  %v1334_v62 = vsel %vm541_vm7, %v1328_v15, %v1330_v30 }
 0x5e9   :  { %v1332_v41 = vpop.permute.xlu0 %1331  ;;  %v1339_v15 = vmul.f32 %v1334_v62, %v4088_v4 }
 0x5ea   :  { %v1333_v13 = vsel %vm541_vm7, %v1330_v30, %v1332_v41  ;;  %v1336_v56 = vsel %vm541_vm7, %v1332_v41, %v1326_v60 }
 0x5eb   :  { %v1342_v14 = vpop.permute.xlu1 %1341  ;;  %v1337_v5 = vmul.f32 %v1336_v56, %v4175_v23  ;;  %v1340_v60 = vmul.f32 %v1333_v13, %v4073_v49 }
 0x5ed   :  { %v1344_v45 = vpop.permute.xlu0 %1343 }
 0x5ee   :  { %v1351_v18 = vsel %vm558_vm6, %v1342_v14, %v1344_v45 }
 0x5ef   :  { %v1354_v11 = vmul.f32 %v1351_v18, %v4155_v44  ;;  %v1346_v42 = vpop.permute.xlu1 %1345 }
 0x5f0   :  { %v1350_v17 = vsel %vm558_vm6, %v1344_v45, %v1346_v42 }
 0x5f1   :  { %v1348_v46 = vpop.permute.xlu0 %1347  ;;  %v1428_v37 = vpack.c.bf16 %v1354_v11, %v1338_v43  ;;  %v1355_v31 = vmul.f32 %v1350_v17, %v4067_v47 }
 0x5f2   :  { %v1349_v51 = vsel %vm558_vm6, %v1346_v42, %v1348_v46  ;;  %v1352_v33 = vsel %vm558_vm6, %v1348_v46, %v1342_v14 }
 0x5f3   :  { %v1353_v26 = vmul.f32 %v1352_v33, %v4179_v52  ;;  %v1356_v12 = vmul.f32 %v1349_v51, %v4079_v53  ;;  %1477 = vmatprep.subr.bf16.mxu0 %v1428_v37  ;;  %v1294_v35 = vpop.permute.xlu1 %1293  ;;  %v1429_v24 = vpack.c.bf16 %v1355_v31, %v1339_v15 }
 0x5f5   :  { %v1427_v21 = vpack.c.bf16 %v1353_v26, %v1337_v5  ;;  %v1296_v30 = vpop.permute.xlu0 %1295  ;;  %v1430_v41 = vpack.c.bf16 %v1356_v12, %v1340_v60 }
 0x5f6   :  { %v1303_v43 = vsel %vm507_vm8, %v1294_v35, %v1296_v30 }
 0x5f7   :  { %1478 = vmatpush1.bf16.msra.mxu0 %v1427_v21  ;;  %1518 = vmatprep.subr.bf16.mxu1 %v1430_v41  ;;  %v1298_v45 = vpop.permute.xlu1 %1297  ;;  %v1306_v13 = vmul.f32 %v1303_v43, %v4182_v27  ;;  %v5980_v43 = vld [vmem:[#allocation7_spill] sm:$0xff] }
 0x5f8   :  { %1519 = vmatpush1.bf16.msra.mxu1 %v1429_v24  ;;  %v1302_v31 = vsel %vm507_vm8, %v1296_v30, %v1298_v45 }
 0x5f9   :  { %v1300_v14 = vpop.permute.xlu0 %1299  ;;  %v1307_v30 = vmul.f32 %v1302_v31, %v4194_v29 }
 0x5fa   :  { %v1301_v62 = vsel %vm507_vm8, %v1298_v45, %v1300_v14  ;;  %v1304_v46 = vsel %vm507_vm8, %v1300_v14, %v1294_v35  ;;  %v3383_v14 = vld [vmem:[%s5895_s4 + $0xc] sm:$0xf] }
 0x5fb   :  { %v1310_v18 = vpop.permute.xlu1 %1309  ;;  %v1305_v12 = vmul.f32 %v1304_v46, %v4205_v32  ;;  %v1308_v35 = vmul.f32 %v1301_v62, %v4208_v36  ;;  %v5981_v62 = vld [vmem:[#allocation9_spill] sm:$0xff] }
 0x5fd   :  { %v1312_v11 = vpop.permute.xlu0 %1311 }
 0x5fe   :  { %v1319_v42 = vsel %vm524_vm9, %v1310_v18, %v1312_v11 }
 0x5ff   :  { %v1322_v56 = vmul.f32 %v1319_v42, %v4198_v40  ;;  %v1314_v17 = vpop.permute.xlu1 %1313 }
 0x600   :  { %v1318_v37 = vsel %vm524_vm9, %v1312_v11, %v1314_v17 }
 0x601   :  { %v1316_v51 = vpop.permute.xlu0 %1315  ;;  %v1424_v33 = vpack.c.bf16 %v1322_v56, %v1306_v13  ;;  %v1323_v5 = vmul.f32 %v1318_v37, %v4211_v50 }
 0x602   :  { %v1317_v60 = vsel %vm524_vm9, %v1314_v17, %v1316_v51  ;;  %v1320_v26 = vsel %vm524_vm9, %v1316_v51, %v1310_v18 }
 0x603   :  { %v1321_v15 = vmul.f32 %v1320_v26, %v4216_v9  ;;  %v1324_v21 = vmul.f32 %v1317_v60, %v4219_v22  ;;  %1479 = vmatprep.subr.bf16.mxu0 %v1424_v33  ;;  %v1425_v45 = vpack.c.bf16 %v1323_v5, %v1307_v30  ;;  %v5983_v5 = vld [vmem:[#allocation8_spill] sm:$0xff] }
 0x605   :  { %v1423_v41 = vpack.c.bf16 %v1321_v15, %v1305_v12  ;;  %v1426_v24 = vpack.c.bf16 %v1324_v21, %v1308_v35  ;;  %v5984_v35 = vld [vmem:[#allocation10_spill] sm:$0xff] }
 0x607   :  { %1480 = vmatpush1.bf16.msra.mxu0 %v1423_v41  ;;  %1520 = vmatprep.subr.bf16.mxu1 %v1426_v24 }
 0x608   :  { %1521 = vmatpush1.bf16.msra.mxu1 %v1425_v45 }
 0x60a   :  { %3386 = vmatmul.mubr.msk.bf16.vlgmr.msra.gmra.mxu0 %vm662_vm10, %v3383_v14 }
 0x60b   :  { %3388 = vmatmul.mubr.msk.bf16.vlgmr.msra.gmra.mxu1 %vm662_vm10, %v3383_v14  ;;  %1759 = vmatprep.mubr.bf16.mxu0 %v5970_v8 }
 0x60c   :  { %1800 = vmatprep.mubr.bf16.mxu1 %v5970_v8  ;;  %v229_v18 = vpop.permute.xlu1 %228 }
 0x60d   :  { %v374_v11 = vadd.f32 %v5980_v43, %v229_v18  ;;  %v376_v46 = vadd.f32 %v5981_v62, %v229_v18  ;;  %v447_v60 = vadd.f32 %v5983_v5, %v229_v18  ;;  %v449_v15 = vadd.f32 %v5984_v35, %v229_v18 }
 0x60e   :  { %v1448_v42 = vpop.permute.xlu0 %1447 }
 0x60f   :  { %v481_v51 = vmax.f32 %v374_v11, 0.0  ;;  %v482_v45 = vmax.f32 %v376_v46, 0.0 }
 0x6ca   :  { %v1499_v13 = vpop.f32.mrf.mxu0 }
 0x6cb   :  { %v1500_v56 = vadd.f32 %v1499_v13, %v1448_v42  ;;  %v1540_v17 = vpop.f32.mrf.mxu1  ;;  %v483_v13 = vmax.f32 %v447_v60, 0.0 }
 0x6cc   :  { %v1541_v37 = vadd.f32 %v1540_v17, %v1448_v42  ;;  %v1501_v31 = vpop.f32.mrf.mxu0 }
 0x6cd   :  { %v4935_v33 = vmax.f32 %v1500_v56, 0.0  ;;  %v1502_v26 = vadd.f32 %v1501_v31, %v1448_v42  ;;  %v1542_v12 = vpop.f32.mrf.mxu1  ;;  %v3390_v31 = vld [vmem:[%s5896_s5 + $0x20] sm:$0xff] }
 0x6ce   :  { %v1543_v21 = vadd.f32 %v1542_v12, %v1448_v42  ;;  %v1503_v30 = vpop.f32.mrf.mxu0  ;;  %v4942_v24 = vmax.f32 %v1541_v37, 0.0  ;;  %v484_v42 = vmax.f32 %v449_v15, 0.0  ;;  %v203_v37 = vld [vmem:[%s5894_s3 + $0x28] sm:$0xff] }
 0x6cf   :  { %5982 = vst [vmem:[#allocation7_spill] sm:$0xff] %v4935_v33  ;;  %v4940_v41 = vadd.f32 %v4935_v33, %v481_v51  ;;  %v4944_v14 = vmax.f32 %v1502_v26, 0.0  ;;  %v1544_v43 = vpop.f32.mrf.mxu1 }
 0x6d0   :  { %5985 = vst [vmem:[#allocation9_spill] sm:$0xff] %v4942_v24  ;;  %v1504_v11 = vpop.f32.mrf.mxu0  ;;  %v4949_v17 = vmax.f32 %v1543_v21, 0.0  ;;  %v4954_v18 = vadd.f32 %v4942_v24, %v483_v13 }
 0x6d1   :  { %5986 = vst [vmem:[#allocation8_spill] sm:$0xff] %v4944_v14  ;;  %v4947_v56 = vadd.f32 %v4944_v14, %v482_v45  ;;  %v1545_v62 = vpop.f32.mrf.mxu1  ;;  %1667 = vrot.lane.b32.xlu1 %v4940_v41, %s3715_s28 }
 0x6d2   :  { %5987 = vst [vmem:[#allocation10_spill] sm:$0xff] %v4949_v17  ;;  %v4959_v46 = vadd.f32 %v4949_v17, %v484_v42 }
 0x6d3   :  { %1669 = vrot.lane.b32.xlu0 %v4947_v56, %s3715_s28 }
 0x6d5   :  { %1671 = vrot.lane.b32.xlu1 %v4954_v18, %s3715_s28 }
 0x6d7   :  { %1673 = vrot.lane.b32.xlu0 %v4959_v46, %s3715_s28 }
 0x6d9   :  { %1635 = vrot.lane.b32.xlu1 %v4940_v41, %s3716_s29 }
 0x6db   :  { %1637 = vrot.lane.b32.xlu0 %v4947_v56, %s3716_s29 }
 0x6dd   :  { %1639 = vrot.lane.b32.xlu1 %v4954_v18, %s3716_s29 }
 0x6df   :  { %1641 = vrot.lane.b32.xlu0 %v4959_v46, %s3716_s29 }
 0x6e1   :  { %1651 = vrot.lane.b32.xlu1 %v4940_v41, %s3717_s30 }
 0x6e3   :  { %1653 = vrot.lane.b32.xlu0 %v4947_v56, %s3717_s30 }
 0x6e5   :  { %1655 = vrot.lane.b32.xlu1 %v4954_v18, %s3717_s30 }
 0x6e7   :  { %1657 = vrot.lane.b32.xlu0 %v4959_v46, %s3717_s30 }
 0x6e9   :  { %1619 = vrot.lane.b32.xlu1 %v4940_v41, %s3718_s14 }
 0x6eb   :  { %1621 = vrot.lane.b32.xlu0 %v4947_v56, %s3718_s14 }
 0x6ed   :  { %1623 = vrot.lane.b32.xlu1 %v4954_v18, %s3718_s14 }
 0x6ef   :  { %1625 = vrot.lane.b32.xlu0 %v4959_v46, %s3718_s14 }
 0x6f1   :  { %1587 = vrot.lane.b32.xlu1 %v4940_v41, %s3719_s17 }
 0x6f3   :  { %1589 = vrot.lane.b32.xlu0 %v4947_v56, %s3719_s17 }
 0x6f5   :  { %1591 = vrot.lane.b32.xlu1 %v4954_v18, %s3719_s17 }
 0x6f7   :  { %1593 = vrot.lane.b32.xlu0 %v4959_v46, %s3719_s17 }
 0x6f9   :  { %1603 = vrot.lane.b32.xlu1 %v4940_v41, %s3720_s20 }
 0x6fb   :  { %1605 = vrot.lane.b32.xlu0 %v4947_v56, %s3720_s20 }
 0x6fd   :  { %1607 = vrot.lane.b32.xlu1 %v4954_v18, %s3720_s20 }
 0x6ff   :  { %1609 = vrot.lane.b32.xlu0 %v4959_v46, %s3720_s20 }
 0x701   :  { %1555 = vrot.lane.b32.xlu1 %v4940_v41, %s3721_s23 }
 0x703   :  { %1557 = vrot.lane.b32.xlu0 %v4947_v56, %s3721_s23 }
 0x705   :  { %1559 = vrot.lane.b32.xlu1 %v4954_v18, %s3721_s23 }
 0x707   :  { %1561 = vrot.lane.b32.xlu0 %v4959_v46, %s3721_s23 }
 0x709   :  { %1571 = vrot.lane.b32.xlu1 %v4940_v41, %s3722_s2 }
 0x70b   :  { %1573 = vrot.lane.b32.xlu0 %v4947_v56, %s3722_s2 }
 0x70d   :  { %1575 = vrot.lane.b32.xlu1 %v4954_v18, %s3722_s2 }
 0x70f   :  { %1577 = vrot.lane.b32.xlu0 %v4959_v46, %s3722_s2 }
 0x711   :  { %233 = vperm.xlu1 %3583, %v203_v37  }
 0x713   :  { %1709 = vperm.xlu0 %3582, %v3390_v31  }
 0x743   :  { %v1668_v51 = vpop.permute.xlu1 %1667 }
 0x745   :  { %v1670_v5 = vpop.permute.xlu0 %1669 }
 0x746   :  { %v1677_v60 = vsel %vm626_vm1, %v1668_v51, %v1670_v5 }
 0x747   :  { %v1679_v26 = vmul.f32 %v4807_v39, %v1677_v60  ;;  %v1672_v12 = vpop.permute.xlu1 %1671 }
 0x748   :  { %v1676_v35 = vsel %vm626_vm1, %v1670_v5, %v1672_v12 }
 0x749   :  { %v1701_v15 = vpack.c.bf16 %v1679_v26, %v1679_v26  ;;  %v1680_v21 = vmul.f32 %v4815_v28, %v1676_v35  ;;  %v1674_v30 = vpop.permute.xlu0 %1673 }
 0x74a   :  { %v1675_v45 = vsel %vm626_vm1, %v1672_v12, %v1674_v30  ;;  %v1678_v43 = vsel %vm626_vm1, %v1674_v30, %v1668_v51 }
 0x74b   :  { %v1702_v11 = vpack.c.bf16 %v1680_v21, %v1680_v21  ;;  %v1681_v13 = vmul.f32 %v4825_v34, %v1675_v45  ;;  %v1682_v62 = vmul.f32 %v4831_v61, %v1678_v43  ;;  %v1636_v42 = vpop.permute.xlu1 %1635  ;;  %v1716_v5 = vsel %vm666_vm2, %v1701_v15, 0 }
 0x74d   :  { %v1703_v37 = vpack.c.bf16 %v1681_v13, %v1681_v13  ;;  %v1704_v31 = vpack.c.bf16 %v1682_v62, %v1682_v62  ;;  %v1638_v60 = vpop.permute.xlu0 %1637  ;;  %3391 = vmatprep.subr.msk.bf16.mxu0 %vm666_vm2, %v1702_v11 }
 0x74e   :  { %1734 = vmatpush1.bf16.msra.mxu0 %v1716_v5  ;;  %v1645_v43 = vsel %vm592_vm3, %v1636_v42, %v1638_v60 }
 0x74f   :  { %3393 = vmatprep.subr.msk.bf16.mxu1 %vm666_vm2, %v1704_v31  ;;  %v1640_v26 = vpop.permute.xlu1 %1639  ;;  %v1722_v12 = vsel %vm666_vm2, %v1703_v37, 0  ;;  %v1647_v24 = vmul.f32 %v1645_v43, %v4070_v48 }
 0x750   :  { %1775 = vmatpush1.bf16.msra.mxu1 %v1722_v12  ;;  %v1644_v30 = vsel %vm592_vm3, %v1638_v60, %v1640_v26 }
 0x751   :  { %v1642_v51 = vpop.permute.xlu0 %1641  ;;  %v1648_v31 = vmul.f32 %v1644_v30, %v4082_v55 }
 0x752   :  { %v1643_v15 = vsel %vm592_vm3, %v1640_v26, %v1642_v51  ;;  %v1646_v13 = vsel %vm592_vm3, %v1642_v51, %v1636_v42 }
 0x753   :  { %v1652_v35 = vpop.permute.xlu1 %1651  ;;  %v1649_v60 = vmul.f32 %v1643_v15, %v3989_v63  ;;  %v1650_v51 = vmul.f32 %v1646_v13, %v3992_v0 }
 0x755   :  { %v1654_v21 = vpop.permute.xlu0 %1653 }
 0x756   :  { %v1661_v45 = vsel %vm609_vm4, %v1652_v35, %v1654_v21 }
 0x757   :  { %v1656_v11 = vpop.permute.xlu1 %1655  ;;  %v1663_v62 = vmul.f32 %v1661_v45, %v4094_v7 }
 0x758   :  { %v1660_v37 = vsel %vm609_vm4, %v1654_v21, %v1656_v11 }
 0x759   :  { %v1664_v5 = vmul.f32 %v1660_v37, %v4085_v3  ;;  %v1658_v12 = vpop.permute.xlu0 %1657  ;;  %v1697_v37 = vpack.c.bf16 %v1663_v62, %v1647_v24 }
 0x75a   :  { %v1659_v26 = vsel %vm609_vm4, %v1656_v11, %v1658_v12  ;;  %v1662_v42 = vsel %vm609_vm4, %v1658_v12, %v1652_v35 }
 0x75b   :  { %v1665_v45 = vmul.f32 %v1659_v26, %v3995_v1  ;;  %v1666_v21 = vmul.f32 %v1662_v42, %v3998_v2  ;;  %v1620_v30 = vpop.permute.xlu1 %1619  ;;  %v1698_v33 = vpack.c.bf16 %v1664_v5, %v1648_v31 }
 0x75d   :  { %v1699_v17 = vpack.c.bf16 %v1665_v45, %v1649_v60  ;;  %v1622_v14 = vpop.permute.xlu0 %1621  ;;  %1735 = vmatprep.subr.bf16.mxu0 %v1698_v33  ;;  %v1700_v43 = vpack.c.bf16 %v1666_v21, %v1650_v51 }
 0x75e   :  { %v1629_v15 = vsel %vm575_vm5, %v1620_v30, %v1622_v14  ;;  %1736 = vmatpush1.bf16.msra.mxu0 %v1697_v37 }
 0x75f   :  { %1776 = vmatprep.subr.bf16.mxu1 %v1700_v43  ;;  %v1624_v11 = vpop.permute.xlu1 %1623  ;;  %v1631_v35 = vmul.f32 %v1629_v15, %v4151_v25 }
 0x760   :  { %v1628_v13 = vsel %vm575_vm5, %v1622_v14, %v1624_v11  ;;  %1777 = vmatpush1.bf16.msra.mxu1 %v1699_v17 }
 0x761   :  { %v1632_v12 = vmul.f32 %v1628_v13, %v4101_v59  ;;  %v1626_v31 = vpop.permute.xlu0 %1625  ;;  %v1693_v42 = vpack.c.bf16 %v1631_v35, %v4940_v41 }
 0x762   :  { %v1627_v24 = vsel %vm575_vm5, %v1624_v11, %v1626_v31  ;;  %v1630_v33 = vsel %vm575_vm5, %v1626_v31, %v1620_v30 }
 0x763   :  { %v1633_v62 = vmul.f32 %v1627_v24, %v4025_v19  ;;  %v1634_v5 = vmul.f32 %v1630_v33, %v4029_v20  ;;  %v1588_v60 = vpop.permute.xlu1 %1587  ;;  %v1694_v26 = vpack.c.bf16 %v1632_v12, %v4947_v56 }
 0x765   :  { %v1695_v14 = vpack.c.bf16 %v1633_v62, %v4954_v18  ;;  %v1590_v17 = vpop.permute.xlu0 %1589  ;;  %1737 = vmatprep.subr.bf16.mxu0 %v1694_v26  ;;  %v1696_v51 = vpack.c.bf16 %v1634_v5, %v4959_v46 }
 0x766   :  { %1738 = vmatpush1.bf16.msra.mxu0 %v1693_v42  ;;  %v1597_v37 = vsel %vm541_vm7, %v1588_v60, %v1590_v17 }
 0x767   :  { %1778 = vmatprep.subr.bf16.mxu1 %v1696_v51  ;;  %v1592_v45 = vpop.permute.xlu1 %1591  ;;  %v1600_v41 = vmul.f32 %v1597_v37, %v4172_v16 }
 0x768   :  { %1779 = vmatpush1.bf16.msra.mxu1 %v1695_v14  ;;  %v1596_v13 = vsel %vm541_vm7, %v1590_v17, %v1592_v45 }
 0x769   :  { %v1594_v21 = vpop.permute.xlu0 %1593  ;;  %v1601_v17 = vmul.f32 %v1596_v13, %v4088_v4 }
 0x76a   :  { %v1595_v46 = vsel %vm541_vm7, %v1592_v45, %v1594_v21  ;;  %v1598_v11 = vsel %vm541_vm7, %v1594_v21, %v1588_v60 }
 0x76b   :  { %v1604_v30 = vpop.permute.xlu1 %1603  ;;  %v1599_v5 = vmul.f32 %v1598_v11, %v4175_v23  ;;  %v1602_v60 = vmul.f32 %v1595_v46, %v4073_v49 }
 0x76d   :  { %v1606_v43 = vpop.permute.xlu0 %1605 }
 0x76e   :  { %v1613_v56 = vsel %vm558_vm6, %v1604_v30, %v1606_v43 }
 0x76f   :  { %v1616_v18 = vmul.f32 %v1613_v56, %v4155_v44  ;;  %v1608_v15 = vpop.permute.xlu1 %1607 }
 0x770   :  { %v1612_v35 = vsel %vm558_vm6, %v1606_v43, %v1608_v15 }
 0x771   :  { %v1610_v12 = vpop.permute.xlu0 %1609  ;;  %v1690_v31 = vpack.c.bf16 %v1616_v18, %v1600_v41  ;;  %v1617_v24 = vmul.f32 %v1612_v35, %v4067_v47 }
 0x772   :  { %v1611_v33 = vsel %vm558_vm6, %v1608_v15, %v1610_v12  ;;  %v1614_v62 = vsel %vm558_vm6, %v1610_v12, %v1604_v30 }
 0x773   :  { %v1615_v26 = vmul.f32 %v1614_v62, %v4179_v52  ;;  %v1618_v42 = vmul.f32 %v1611_v33, %v4079_v53  ;;  %1739 = vmatprep.subr.bf16.mxu0 %v1690_v31  ;;  %v1556_v14 = vpop.permute.xlu1 %1555  ;;  %v1691_v37 = vpack.c.bf16 %v1617_v24, %v1601_v17 }
 0x775   :  { %v1689_v51 = vpack.c.bf16 %v1615_v26, %v1599_v5  ;;  %v1558_v45 = vpop.permute.xlu0 %1557  ;;  %v1692_v21 = vpack.c.bf16 %v1618_v42, %v1602_v60 }
 0x776   :  { %v1565_v41 = vsel %vm507_vm8, %v1556_v14, %v1558_v45 }
 0x777   :  { %1740 = vmatpush1.bf16.msra.mxu0 %v1689_v51  ;;  %1780 = vmatprep.subr.bf16.mxu1 %v1692_v21  ;;  %v1560_v43 = vpop.permute.xlu1 %1559  ;;  %v1568_v46 = vmul.f32 %v1565_v41, %v4182_v27  ;;  %v5988_v41 = vld [vmem:[#allocation11_spill] sm:$0xff] }
 0x778   :  { %1781 = vmatpush1.bf16.msra.mxu1 %v1691_v37  ;;  %v1564_v24 = vsel %vm507_vm8, %v1558_v45, %v1560_v43 }
 0x779   :  { %v1562_v30 = vpop.permute.xlu0 %1561  ;;  %v1569_v45 = vmul.f32 %v1564_v24, %v4194_v29 }
 0x77a   :  { %v1563_v13 = vsel %vm507_vm8, %v1560_v43, %v1562_v30  ;;  %v1566_v12 = vsel %vm507_vm8, %v1562_v30, %v1556_v14  ;;  %v3389_v30 = vld [vmem:[%s5895_s4 + $0x10] sm:$0xf] }
 0x77b   :  { %v1572_v56 = vpop.permute.xlu1 %1571  ;;  %v1567_v42 = vmul.f32 %v1566_v12, %v4205_v32  ;;  %v1570_v14 = vmul.f32 %v1563_v13, %v4208_v36  ;;  %v5989_v13 = vld [vmem:[#allocation13_spill] sm:$0xff] }
 0x77d   :  { %v1574_v18 = vpop.permute.xlu0 %1573 }
 0x77e   :  { %v1581_v15 = vsel %vm524_vm9, %v1572_v56, %v1574_v18 }
 0x77f   :  { %v1584_v11 = vmul.f32 %v1581_v15, %v4198_v40  ;;  %v1576_v35 = vpop.permute.xlu1 %1575 }
 0x780   :  { %v1580_v31 = vsel %vm524_vm9, %v1574_v18, %v1576_v35 }
 0x781   :  { %v1578_v33 = vpop.permute.xlu0 %1577  ;;  %v1686_v62 = vpack.c.bf16 %v1584_v11, %v1568_v46  ;;  %v1585_v5 = vmul.f32 %v1580_v31, %v4211_v50 }
 0x782   :  { %v1579_v60 = vsel %vm524_vm9, %v1576_v35, %v1578_v33  ;;  %v1582_v26 = vsel %vm524_vm9, %v1578_v33, %v1572_v56 }
 0x783   :  { %v1583_v17 = vmul.f32 %v1582_v26, %v4216_v9  ;;  %v1586_v51 = vmul.f32 %v1579_v60, %v4219_v22  ;;  %1741 = vmatprep.subr.bf16.mxu0 %v1686_v62  ;;  %v1687_v43 = vpack.c.bf16 %v1585_v5, %v1569_v45  ;;  %v5990_v5 = vld [vmem:[#allocation12_spill] sm:$0xff] }
 0x785   :  { %v1685_v21 = vpack.c.bf16 %v1583_v17, %v1567_v42  ;;  %v1688_v37 = vpack.c.bf16 %v1586_v51, %v1570_v14  ;;  %v5991_v14 = vld [vmem:[#allocation14_spill] sm:$0xff] }
 0x787   :  { %1742 = vmatpush1.bf16.msra.mxu0 %v1685_v21  ;;  %1782 = vmatprep.subr.bf16.mxu1 %v1688_v37 }
 0x788   :  { %1783 = vmatpush1.bf16.msra.mxu1 %v1687_v43 }
 0x78a   :  { %3392 = vmatmul.mubr.msk.bf16.vlgmr.msra.gmra.mxu0 %vm662_vm10, %v3389_v30 }
 0x78b   :  { %3394 = vmatmul.mubr.msk.bf16.vlgmr.msra.gmra.mxu1 %vm662_vm10, %v3389_v30  ;;  %2021 = vmatprep.mubr.bf16.mxu0 %v5970_v8 }
 0x78c   :  { %2062 = vmatprep.mubr.bf16.mxu1 %v5970_v8  ;;  %v234_v56 = vpop.permute.xlu1 %233 }
 0x78d   :  { %v378_v18 = vadd.f32 %v5988_v41, %v234_v56  ;;  %v380_v12 = vadd.f32 %v5989_v13, %v234_v56  ;;  %v451_v60 = vadd.f32 %v5990_v5, %v234_v56  ;;  %v453_v17 = vadd.f32 %v5991_v14, %v234_v56 }
 0x78e   :  { %v1710_v15 = vpop.permute.xlu0 %1709 }
 0x78f   :  { %v485_v33 = vmax.f32 %v378_v18, 0.0  ;;  %v486_v43 = vmax.f32 %v380_v12, 0.0 }
 0x84a   :  { %v1761_v46 = vpop.f32.mrf.mxu0 }
 0x84b   :  { %v1762_v11 = vadd.f32 %v1761_v46, %v1710_v15  ;;  %v1802_v35 = vpop.f32.mrf.mxu1  ;;  %v487_v46 = vmax.f32 %v451_v60, 0.0 }
 0x84c   :  { %v1803_v31 = vadd.f32 %v1802_v35, %v1710_v15  ;;  %v1763_v24 = vpop.f32.mrf.mxu0 }
 0x84d   :  { %v5140_v62 = vmax.f32 %v1762_v11, 0.0  ;;  %v1764_v26 = vadd.f32 %v1763_v24, %v1710_v15  ;;  %v1804_v42 = vpop.f32.mrf.mxu1  ;;  %v3396_v24 = vld [vmem:[%s5896_s5 + $0x28] sm:$0xff] }
 0x84e   :  { %v1805_v51 = vadd.f32 %v1804_v42, %v1710_v15  ;;  %v1765_v45 = vpop.f32.mrf.mxu0  ;;  %v5147_v37 = vmax.f32 %v1803_v31, 0.0  ;;  %v488_v15 = vmax.f32 %v453_v17, 0.0  ;;  %v204_v31 = vld [vmem:[%s5894_s3 + $0x30] sm:$0xff] }
 0x84f   :  { %v5145_v21 = vadd.f32 %v5140_v62, %v485_v33  ;;  %v5149_v30 = vmax.f32 %v1764_v26, 0.0  ;;  %v1806_v41 = vpop.f32.mrf.mxu1 }
 0x850   :  { %5992 = vst [vmem:[#allocation11_spill] sm:$0xff] %v5147_v37  ;;  %v1766_v18 = vpop.f32.mrf.mxu0  ;;  %v5154_v35 = vmax.f32 %v1805_v51, 0.0  ;;  %v5159_v56 = vadd.f32 %v5147_v37, %v487_v46 }
 0x851   :  { %v5152_v11 = vadd.f32 %v5149_v30, %v486_v43  ;;  %v1807_v13 = vpop.f32.mrf.mxu1  ;;  %1929 = vrot.lane.b32.xlu1 %v5145_v21, %s3715_s28 }
 0x852   :  { %5993 = vst [vmem:[#allocation13_spill] sm:$0xff] %v5154_v35  ;;  %v5164_v12 = vadd.f32 %v5154_v35, %v488_v15 }
 0x853   :  { %1931 = vrot.lane.b32.xlu0 %v5152_v11, %s3715_s28 }
 0x855   :  { %1933 = vrot.lane.b32.xlu1 %v5159_v56, %s3715_s28 }
 0x857   :  { %1935 = vrot.lane.b32.xlu0 %v5164_v12, %s3715_s28 }
 0x859   :  { %1897 = vrot.lane.b32.xlu1 %v5145_v21, %s3716_s29 }
 0x85b   :  { %1899 = vrot.lane.b32.xlu0 %v5152_v11, %s3716_s29 }
 0x85d   :  { %1901 = vrot.lane.b32.xlu1 %v5159_v56, %s3716_s29 }
 0x85f   :  { %1903 = vrot.lane.b32.xlu0 %v5164_v12, %s3716_s29 }
 0x861   :  { %1913 = vrot.lane.b32.xlu1 %v5145_v21, %s3717_s30 }
 0x863   :  { %1915 = vrot.lane.b32.xlu0 %v5152_v11, %s3717_s30 }
 0x865   :  { %1917 = vrot.lane.b32.xlu1 %v5159_v56, %s3717_s30 }
 0x867   :  { %1919 = vrot.lane.b32.xlu0 %v5164_v12, %s3717_s30 }
 0x869   :  { %1881 = vrot.lane.b32.xlu1 %v5145_v21, %s3718_s14 }
 0x86b   :  { %1883 = vrot.lane.b32.xlu0 %v5152_v11, %s3718_s14 }
 0x86d   :  { %1885 = vrot.lane.b32.xlu1 %v5159_v56, %s3718_s14 }
 0x86f   :  { %1887 = vrot.lane.b32.xlu0 %v5164_v12, %s3718_s14 }
 0x871   :  { %1849 = vrot.lane.b32.xlu1 %v5145_v21, %s3719_s17 }
 0x873   :  { %1851 = vrot.lane.b32.xlu0 %v5152_v11, %s3719_s17 }
 0x875   :  { %1853 = vrot.lane.b32.xlu1 %v5159_v56, %s3719_s17 }
 0x877   :  { %1855 = vrot.lane.b32.xlu0 %v5164_v12, %s3719_s17 }
 0x879   :  { %1865 = vrot.lane.b32.xlu1 %v5145_v21, %s3720_s20 }
 0x87b   :  { %1867 = vrot.lane.b32.xlu0 %v5152_v11, %s3720_s20 }
 0x87d   :  { %1869 = vrot.lane.b32.xlu1 %v5159_v56, %s3720_s20 }
 0x87f   :  { %1871 = vrot.lane.b32.xlu0 %v5164_v12, %s3720_s20 }
 0x881   :  { %1817 = vrot.lane.b32.xlu1 %v5145_v21, %s3721_s23 }
 0x883   :  { %1819 = vrot.lane.b32.xlu0 %v5152_v11, %s3721_s23 }
 0x885   :  { %1821 = vrot.lane.b32.xlu1 %v5159_v56, %s3721_s23 }
 0x887   :  { %1823 = vrot.lane.b32.xlu0 %v5164_v12, %s3721_s23 }
 0x889   :  { %1833 = vrot.lane.b32.xlu1 %v5145_v21, %s3722_s2 }
 0x88b   :  { %1835 = vrot.lane.b32.xlu0 %v5152_v11, %s3722_s2 }
 0x88d   :  { %1837 = vrot.lane.b32.xlu1 %v5159_v56, %s3722_s2 }
 0x88f   :  { %1839 = vrot.lane.b32.xlu0 %v5164_v12, %s3722_s2 }
 0x891   :  { %238 = vperm.xlu1 %3583, %v204_v31  }
 0x893   :  { %1971 = vperm.xlu0 %3582, %v3396_v24  }
 0x8c3   :  { %v1930_v33 = vpop.permute.xlu1 %1929 }
 0x8c5   :  { %v1932_v5 = vpop.permute.xlu0 %1931 }
 0x8c6   :  { %v1939_v60 = vsel %vm626_vm1, %v1930_v33, %v1932_v5 }
 0x8c7   :  { %v1941_v26 = vmul.f32 %v4807_v39, %v1939_v60  ;;  %v1934_v42 = vpop.permute.xlu1 %1933 }
 0x8c8   :  { %v1938_v14 = vsel %vm626_vm1, %v1932_v5, %v1934_v42 }
 0x8c9   :  { %v1963_v17 = vpack.c.bf16 %v1941_v26, %v1941_v26  ;;  %v1942_v51 = vmul.f32 %v4815_v28, %v1938_v14  ;;  %v1936_v45 = vpop.permute.xlu0 %1935 }
 0x8ca   :  { %v1937_v43 = vsel %vm626_vm1, %v1934_v42, %v1936_v45  ;;  %v1940_v41 = vsel %vm626_vm1, %v1936_v45, %v1930_v33 }
 0x8cb   :  { %v1964_v18 = vpack.c.bf16 %v1942_v51, %v1942_v51  ;;  %v1943_v46 = vmul.f32 %v4825_v34, %v1937_v43  ;;  %v1944_v13 = vmul.f32 %v4831_v61, %v1940_v41  ;;  %v1898_v39 = vpop.permute.xlu1 %1897  ;;  %v1978_v28 = vsel %vm666_vm2, %v1963_v17, 0 }
 0x8cd   :  { %v1965_v15 = vpack.c.bf16 %v1943_v46, %v1943_v46  ;;  %v1966_v31 = vpack.c.bf16 %v1944_v13, %v1944_v13  ;;  %v1900_v24 = vpop.permute.xlu0 %1899  ;;  %3397 = vmatprep.subr.msk.bf16.mxu0 %vm666_vm2, %v1964_v18 }
 0x8ce   :  { %1996 = vmatpush1.bf16.msra.mxu0 %v1978_v28  ;;  %v1907_v14 = vsel %vm592_vm3, %v1898_v39, %v1900_v24 }
 0x8cf   :  { %3399 = vmatprep.subr.msk.bf16.mxu1 %vm666_vm2, %v1966_v31  ;;  %v1902_v5 = vpop.permute.xlu1 %1901  ;;  %v1984_v60 = vsel %vm666_vm2, %v1965_v15, 0  ;;  %v1909_v15 = vmul.f32 %v1907_v14, %v4070_v48 }
 0x8d0   :  { %2037 = vmatpush1.bf16.msra.mxu1 %v1984_v60  ;;  %v1906_v61 = vsel %vm592_vm3, %v1900_v24, %v1902_v5 }
 0x8d1   :  { %v1904_v33 = vpop.permute.xlu0 %1903  ;;  %v1910_v18 = vmul.f32 %v1906_v61, %v4082_v55 }
 0x8d2   :  { %v1905_v17 = vsel %vm592_vm3, %v1902_v5, %v1904_v33  ;;  %v1908_v45 = vsel %vm592_vm3, %v1904_v33, %v1898_v39 }
 0x8d3   :  { %v1914_v26 = vpop.permute.xlu1 %1913  ;;  %v1911_v31 = vmul.f32 %v1905_v17, %v3989_v63  ;;  %v1912_v28 = vmul.f32 %v1908_v45, %v3992_v0 }
 0x8d5   :  { %v1916_v34 = vpop.permute.xlu0 %1915 }
 0x8d6   :  { %v1923_v42 = vsel %vm609_vm4, %v1914_v26, %v1916_v34 }
 0x8d7   :  { %v1918_v51 = vpop.permute.xlu1 %1917  ;;  %v1925_v43 = vmul.f32 %v1923_v42, %v4094_v7 }
 0x8d8   :  { %v1922_v41 = vsel %vm609_vm4, %v1916_v34, %v1918_v51 }
 0x8d9   :  { %v1926_v46 = vmul.f32 %v1922_v41, %v4085_v3  ;;  %v1920_v13 = vpop.permute.xlu0 %1919  ;;  %v1959_v61 = vpack.c.bf16 %v1925_v43, %v1909_v15 }
 0x8da   :  { %v1921_v24 = vsel %vm609_vm4, %v1918_v51, %v1920_v13  ;;  %v1924_v39 = vsel %vm609_vm4, %v1920_v13, %v1914_v26 }
 0x8db   :  { %v1927_v5 = vmul.f32 %v1921_v24, %v3995_v1  ;;  %v1928_v60 = vmul.f32 %v1924_v39, %v3998_v2  ;;  %v1882_v33 = vpop.permute.xlu1 %1881  ;;  %v1960_v34 = vpack.c.bf16 %v1926_v46, %v1910_v18 }
 0x8dd   :  { %v1961_v42 = vpack.c.bf16 %v1927_v5, %v1911_v31  ;;  %v1884_v41 = vpop.permute.xlu0 %1883  ;;  %1997 = vmatprep.subr.bf16.mxu0 %v1960_v34  ;;  %v1962_v14 = vpack.c.bf16 %v1928_v60, %v1912_v28 }
 0x8de   :  { %v1891_v17 = vsel %vm575_vm5, %v1882_v33, %v1884_v41  ;;  %1998 = vmatpush1.bf16.msra.mxu0 %v1959_v61 }
 0x8df   :  { %2038 = vmatprep.subr.bf16.mxu1 %v1962_v14  ;;  %v1886_v51 = vpop.permute.xlu1 %1885  ;;  %v1893_v26 = vmul.f32 %v1891_v17, %v4151_v25 }
 0x8e0   :  { %v1890_v45 = vsel %vm575_vm5, %v1884_v41, %v1886_v51  ;;  %2039 = vmatpush1.bf16.msra.mxu1 %v1961_v42 }
 0x8e1   :  { %v1894_v13 = vmul.f32 %v1890_v45, %v4101_v59  ;;  %v1888_v18 = vpop.permute.xlu0 %1887  ;;  %v1955_v28 = vpack.c.bf16 %v1893_v26, %v5145_v21 }
 0x8e2   :  { %v1889_v43 = vsel %vm575_vm5, %v1886_v51, %v1888_v18  ;;  %v1892_v46 = vsel %vm575_vm5, %v1888_v18, %v1882_v33 }
 0x8e3   :  { %v1895_v15 = vmul.f32 %v1889_v43, %v4025_v19  ;;  %v1896_v31 = vmul.f32 %v1892_v46, %v4029_v20  ;;  %v1850_v24 = vpop.permute.xlu1 %1849  ;;  %v1956_v39 = vpack.c.bf16 %v1894_v13, %v5152_v11 }
 0x8e5   :  { %v1957_v5 = vpack.c.bf16 %v1895_v15, %v5159_v56  ;;  %v1852_v60 = vpop.permute.xlu0 %1851  ;;  %1999 = vmatprep.subr.bf16.mxu0 %v1956_v39  ;;  %v1958_v34 = vpack.c.bf16 %v1896_v31, %v5164_v12 }
 0x8e6   :  { %2000 = vmatpush1.bf16.msra.mxu0 %v1955_v28  ;;  %v1859_v41 = vsel %vm541_vm7, %v1850_v24, %v1852_v60 }
 0x8e7   :  { %2040 = vmatprep.subr.bf16.mxu1 %v1958_v34  ;;  %v1854_v61 = vpop.permute.xlu1 %1853  ;;  %v1862_v21 = vmul.f32 %v1859_v41, %v4172_v16 }
 0x8e8   :  { %2041 = vmatpush1.bf16.msra.mxu1 %v1957_v5  ;;  %v1858_v45 = vsel %vm541_vm7, %v1852_v60, %v1854_v61 }
 0x8e9   :  { %v1856_v33 = vpop.permute.xlu0 %1855  ;;  %v1863_v60 = vmul.f32 %v1858_v45, %v4088_v4 }
 0x8ea   :  { %v1857_v12 = vsel %vm541_vm7, %v1854_v61, %v1856_v33  ;;  %v1860_v51 = vsel %vm541_vm7, %v1856_v33, %v1850_v24 }
 0x8eb   :  { %v1866_v42 = vpop.permute.xlu1 %1865  ;;  %v1861_v31 = vmul.f32 %v1860_v51, %v4175_v23  ;;  %v1864_v24 = vmul.f32 %v1857_v12, %v4073_v49 }
 0x8ed   :  { %v1868_v14 = vpop.permute.xlu0 %1867 }
 0x8ee   :  { %v1875_v11 = vsel %vm558_vm6, %v1866_v42, %v1868_v14 }
 0x8ef   :  { %v1878_v56 = vmul.f32 %v1875_v11, %v4155_v44  ;;  %v1870_v17 = vpop.permute.xlu1 %1869 }
 0x8f0   :  { %v1874_v26 = vsel %vm558_vm6, %v1868_v14, %v1870_v17 }
 0x8f1   :  { %v1872_v13 = vpop.permute.xlu0 %1871  ;;  %v1952_v18 = vpack.c.bf16 %v1878_v56, %v1862_v21  ;;  %v1879_v43 = vmul.f32 %v1874_v26, %v4067_v47 }
 0x8f2   :  { %v1873_v46 = vsel %vm558_vm6, %v1870_v17, %v1872_v13  ;;  %v1876_v15 = vsel %vm558_vm6, %v1872_v13, %v1866_v42 }
 0x8f3   :  { %v1877_v39 = vmul.f32 %v1876_v15, %v4179_v52  ;;  %v1880_v28 = vmul.f32 %v1873_v46, %v4079_v53  ;;  %2001 = vmatprep.subr.bf16.mxu0 %v1952_v18  ;;  %v1818_v5 = vpop.permute.xlu1 %1817  ;;  %v1953_v41 = vpack.c.bf16 %v1879_v43, %v1863_v60 }
 0x8f5   :  { %v1951_v34 = vpack.c.bf16 %v1877_v39, %v1861_v31  ;;  %v1820_v61 = vpop.permute.xlu0 %1819  ;;  %v1954_v33 = vpack.c.bf16 %v1880_v28, %v1864_v24 }
 0x8f6   :  { %v1827_v21 = vsel %vm507_vm8, %v1818_v5, %v1820_v61 }
 0x8f7   :  { %2002 = vmatpush1.bf16.msra.mxu0 %v1951_v34  ;;  %2042 = vmatprep.subr.bf16.mxu1 %v1954_v33  ;;  %v1822_v14 = vpop.permute.xlu1 %1821  ;;  %v1830_v12 = vmul.f32 %v1827_v21, %v4182_v27  ;;  %v5994_v21 = vld [vmem:[#allocation15_spill] sm:$0xff] }
 0x8f8   :  { %2043 = vmatpush1.bf16.msra.mxu1 %v1953_v41  ;;  %v1826_v43 = vsel %vm507_vm8, %v1820_v61, %v1822_v14 }
 0x8f9   :  { %v1824_v42 = vpop.permute.xlu0 %1823  ;;  %v1831_v61 = vmul.f32 %v1826_v43, %v4194_v29 }
 0x8fa   :  { %v1825_v45 = vsel %vm507_vm8, %v1822_v14, %v1824_v42  ;;  %v1828_v13 = vsel %vm507_vm8, %v1824_v42, %v1818_v5  ;;  %v3395_v42 = vld [vmem:[%s5895_s4 + $0x14] sm:$0xf] }
 0x8fb   :  { %v1834_v11 = vpop.permute.xlu1 %1833  ;;  %v1829_v28 = vmul.f32 %v1828_v13, %v4205_v32  ;;  %v1832_v5 = vmul.f32 %v1825_v45, %v4208_v36 }
 0x8fd   :  { %v1836_v56 = vpop.permute.xlu0 %1835 }
 0x8fe   :  { %v1843_v17 = vsel %vm524_vm9, %v1834_v11, %v1836_v56 }
 0x8ff   :  { %v1846_v51 = vmul.f32 %v1843_v17, %v4198_v40  ;;  %v1838_v26 = vpop.permute.xlu1 %1837 }
 0x900   :  { %v1842_v18 = vsel %vm524_vm9, %v1836_v56, %v1838_v26 }
 0x901   :  { %v1840_v46 = vpop.permute.xlu0 %1839  ;;  %v1948_v15 = vpack.c.bf16 %v1846_v51, %v1830_v12  ;;  %v1847_v31 = vmul.f32 %v1842_v18, %v4211_v50  ;;  %v5995_v51 = vld [vmem:[#allocation17_spill] sm:$0xff] }
 0x902   :  { %v1841_v24 = vsel %vm524_vm9, %v1838_v26, %v1840_v46  ;;  %v1844_v39 = vsel %vm524_vm9, %v1840_v46, %v1834_v11  ;;  %v5996_v46 = vld [vmem:[#allocation16_spill] sm:$0xff] }
 0x903   :  { %v1845_v60 = vmul.f32 %v1844_v39, %v4216_v9  ;;  %v1848_v34 = vmul.f32 %v1841_v24, %v4219_v22  ;;  %2003 = vmatprep.subr.bf16.mxu0 %v1948_v15  ;;  %v1949_v14 = vpack.c.bf16 %v1847_v31, %v1831_v61 }
 0x905   :  { %v1947_v33 = vpack.c.bf16 %v1845_v60, %v1829_v28  ;;  %v1950_v41 = vpack.c.bf16 %v1848_v34, %v1832_v5  ;;  %v5997_v5 = vld [vmem:[#allocation18_spill] sm:$0xff] }
 0x907   :  { %2004 = vmatpush1.bf16.msra.mxu0 %v1947_v33  ;;  %2044 = vmatprep.subr.bf16.mxu1 %v1950_v41 }
 0x908   :  { %2045 = vmatpush1.bf16.msra.mxu1 %v1949_v14 }
 0x90a   :  { %3398 = vmatmul.mubr.msk.bf16.vlgmr.msra.gmra.mxu0 %vm662_vm10, %v3395_v42 }
 0x90b   :  { %3400 = vmatmul.mubr.msk.bf16.vlgmr.msra.gmra.mxu1 %vm662_vm10, %v3395_v42  ;;  %2283 = vmatprep.mubr.bf16.mxu0 %v5970_v8 }
 0x90c   :  { %2324 = vmatprep.mubr.bf16.mxu1 %v5970_v8  ;;  %v239_v11 = vpop.permute.xlu1 %238 }
 0x90d   :  { %v384_v56 = vadd.f32 %v5994_v21, %v239_v11  ;;  %v386_v26 = vadd.f32 %v5995_v51, %v239_v11  ;;  %v457_v15 = vadd.f32 %v5996_v46, %v239_v11  ;;  %v459_v60 = vadd.f32 %v5997_v5, %v239_v11  ;;  %v2744_v46 = vld [vmem:[%s5901_s10] sm:$0xff]  ;;  %v2806_v5 = vld [vmem:[%s5903_s12 + $0x10] sm:$0xff] }
 0x90e   :  { %v1972_v17 = vpop.permute.xlu0 %1971 }
 0x90f   :  { %v489_v31 = vmax.f32 %v384_v56, 0.0  ;;  %v490_v33 = vmax.f32 %v386_v26, 0.0  ;;  %v491_v51 = vmax.f32 %v457_v15, 0.0  ;;  %v492_v11 = vmax.f32 %v459_v60, 0.0  ;;  %v2810_v15 = vld [vmem:[%s5903_s12 + $0x30] sm:$0xff]  ;;  %v2807_v60 = vld [vmem:[%s5903_s12 + $0x18] sm:$0xff] }
 0x9ca   :  { %v2023_v12 = vpop.f32.mrf.mxu0 }
 0x9cb   :  { %v2024_v45 = vadd.f32 %v2023_v12, %v1972_v17  ;;  %v2064_v13 = vpop.f32.mrf.mxu1 }
 0x9cc   :  { %v2065_v18 = vadd.f32 %v2064_v13, %v1972_v17  ;;  %v2025_v43 = vpop.f32.mrf.mxu0 }
 0x9cd   :  { %v5346_v24 = vmax.f32 %v2024_v45, 0.0  ;;  %v2026_v39 = vadd.f32 %v2025_v43, %v1972_v17  ;;  %v2066_v28 = vpop.f32.mrf.mxu1  ;;  %v3402_v43 = vld [vmem:[%s5896_s5 + $0x30] sm:$0xff] }
 0x9ce   :  { %v2067_v34 = vadd.f32 %v2066_v28, %v1972_v17  ;;  %v2027_v61 = vpop.f32.mrf.mxu0  ;;  %v5352_v14 = vmax.f32 %v2065_v18, 0.0  ;;  %v205_v18 = vld [vmem:[%s5894_s3 + $0x38] sm:$0xff]  ;;  %v2809_v28 = vld [vmem:[%s5903_s12 + $0x28] sm:$0xff] }
 0x9cf   :  { %v5350_v41 = vadd.f32 %v5346_v24, %v489_v31  ;;  %v5354_v42 = vmax.f32 %v2026_v39, 0.0  ;;  %v2068_v21 = vpop.f32.mrf.mxu1  ;;  %v2811_v31 = vld [vmem:[%s5903_s12 + $0x38] sm:$0xff]  ;;  %v2808_v39 = vld [vmem:[%s5903_s12 + $0x20] sm:$0xff]  ;;  %v2805_v61 = vld [vmem:[%s5903_s12 + $0x8] sm:$0xff] }
 0x9d0   :  { %5998 = vst [vmem:[#allocation12_spill] sm:$0xff] %v5352_v14  ;;  %v2028_v12 = vpop.f32.mrf.mxu0  ;;  %v5359_v45 = vmax.f32 %v2067_v34, 0.0  ;;  %v5364_v17 = vadd.f32 %v5352_v14, %v491_v51  ;;  %v2804_v34 = vld [vmem:[%s5903_s12] sm:$0xff] }
 0x9d1   :  { %v5357_v56 = vadd.f32 %v5354_v42, %v490_v33  ;;  %v2069_v13 = vpop.f32.mrf.mxu1  ;;  %2191 = vrot.lane.b32.xlu1 %v5350_v41, %s3715_s28  ;;  %v3680_v51 = vld [vmem:[%s5892_s1 + $0x20] ss:$0 sm:$0xff] }
 0x9d2   :  { %5999 = vst [vmem:[#allocation14_spill] sm:$0xff] %v5359_v45  ;;  %v5369_v26 = vadd.f32 %v5359_v45, %v492_v11 }
 0x9d3   :  { %2193 = vrot.lane.b32.xlu0 %v5357_v56, %s3715_s28 }
 0x9d5   :  { %2195 = vrot.lane.b32.xlu1 %v5364_v17, %s3715_s28 }
 0x9d7   :  { %2197 = vrot.lane.b32.xlu0 %v5369_v26, %s3715_s28 }
 0x9d9   :  { %2159 = vrot.lane.b32.xlu1 %v5350_v41, %s3716_s29 }
 0x9db   :  { %2161 = vrot.lane.b32.xlu0 %v5357_v56, %s3716_s29 }
 0x9dd   :  { %2163 = vrot.lane.b32.xlu1 %v5364_v17, %s3716_s29 }
 0x9df   :  { %2165 = vrot.lane.b32.xlu0 %v5369_v26, %s3716_s29 }
 0x9e1   :  { %2175 = vrot.lane.b32.xlu1 %v5350_v41, %s3717_s30 }
 0x9e3   :  { %2177 = vrot.lane.b32.xlu0 %v5357_v56, %s3717_s30 }
 0x9e5   :  { %2179 = vrot.lane.b32.xlu1 %v5364_v17, %s3717_s30 }
 0x9e7   :  { %2181 = vrot.lane.b32.xlu0 %v5369_v26, %s3717_s30 }
 0x9e9   :  { %2143 = vrot.lane.b32.xlu1 %v5350_v41, %s3718_s14 }
 0x9eb   :  { %2145 = vrot.lane.b32.xlu0 %v5357_v56, %s3718_s14 }
 0x9ed   :  { %2147 = vrot.lane.b32.xlu1 %v5364_v17, %s3718_s14 }
 0x9ef   :  { %2149 = vrot.lane.b32.xlu0 %v5369_v26, %s3718_s14 }
 0x9f1   :  { %2111 = vrot.lane.b32.xlu1 %v5350_v41, %s3719_s17 }
 0x9f3   :  { %2113 = vrot.lane.b32.xlu0 %v5357_v56, %s3719_s17 }
 0x9f5   :  { %2115 = vrot.lane.b32.xlu1 %v5364_v17, %s3719_s17 }
 0x9f7   :  { %2117 = vrot.lane.b32.xlu0 %v5369_v26, %s3719_s17 }
 0x9f9   :  { %2127 = vrot.lane.b32.xlu1 %v5350_v41, %s3720_s20 }
 0x9fb   :  { %2129 = vrot.lane.b32.xlu0 %v5357_v56, %s3720_s20 }
 0x9fd   :  { %2131 = vrot.lane.b32.xlu1 %v5364_v17, %s3720_s20 }
 0x9ff   :  { %2133 = vrot.lane.b32.xlu0 %v5369_v26, %s3720_s20 }
 0xa01   :  { %2079 = vrot.lane.b32.xlu1 %v5350_v41, %s3721_s23 }
 0xa03   :  { %2081 = vrot.lane.b32.xlu0 %v5357_v56, %s3721_s23 }
 0xa05   :  { %2083 = vrot.lane.b32.xlu1 %v5364_v17, %s3721_s23 }
 0xa07   :  { %2085 = vrot.lane.b32.xlu0 %v5369_v26, %s3721_s23 }
 0xa09   :  { %2095 = vrot.lane.b32.xlu1 %v5350_v41, %s3722_s2 }
 0xa0b   :  { %2097 = vrot.lane.b32.xlu0 %v5357_v56, %s3722_s2 }
 0xa0d   :  { %2099 = vrot.lane.b32.xlu1 %v5364_v17, %s3722_s2 }
 0xa0f   :  { %2101 = vrot.lane.b32.xlu0 %v5369_v26, %s3722_s2 }
 0xa11   :  { %243 = vperm.xlu1 %3583, %v205_v18  }
 0xa13   :  { %2233 = vperm.xlu0 %3582, %v3402_v43  }
 0xa15   :  { %2747 = vperm.xlu1 %3583, %v2744_v46   ;;  %v3681_v46 = vld [vmem:[%s5892_s1 + $0x28] ss:$0 sm:$0xff] }
 0xa17   :  { %2844 = vperm.xlu0 %3582, %v2810_v15  }
 0xa19   :  { %2849 = vperm.xlu1 %3583, %v2811_v31  }
 0xa1b   :  { %2834 = vperm.xlu0 %3582, %v2808_v39  }
 0xa1d   :  { %2839 = vperm.xlu1 %3583, %v2809_v28  }
 0xa1f   :  { %2824 = vperm.xlu0 %3582, %v2806_v5  }
 0xa21   :  { %2829 = vperm.xlu1 %3583, %v2807_v60   ;;  %v3682_v60 = vld [vmem:[%s5892_s1 + $0x30] ss:$0 sm:$0xff] }
 0xa23   :  { %2814 = vperm.xlu0 %3582, %v2804_v34  }
 0xa25   :  { %2819 = vperm.xlu1 %3583, %v2805_v61   ;;  %v3683_v61 = vld [vmem:[%s5892_s1 + $0x38] ss:$0 sm:$0xff] }
 0xa43   :  { %v2192_v33 = vpop.permute.xlu1 %2191 }
 0xa45   :  { %v2194_v21 = vpop.permute.xlu0 %2193 }
 0xa46   :  { %v2201_v12 = vsel %vm626_vm1, %v2192_v33, %v2194_v21 }
 0xa47   :  { %v2203_v13 = vmul.f32 %v3680_v51, %v2201_v12  ;;  %v2196_v11 = vpop.permute.xlu1 %2195 }
 0xa48   :  { %v2200_v18 = vsel %vm626_vm1, %v2194_v21, %v2196_v11 }
 0xa49   :  { %v2225_v43 = vpack.c.bf16 %v2203_v13, %v2203_v13  ;;  %v2204_v15 = vmul.f32 %v3681_v46, %v2200_v18  ;;  %v2198_v31 = vpop.permute.xlu0 %2197 }
 0xa4a   :  { %v2199_v39 = vsel %vm626_vm1, %v2196_v11, %v2198_v31  ;;  %v2202_v28 = vsel %vm626_vm1, %v2198_v31, %v2192_v33 }
 0xa4b   :  { %v2226_v5 = vpack.c.bf16 %v2204_v15, %v2204_v15  ;;  %v2205_v34 = vmul.f32 %v3682_v60, %v2199_v39  ;;  %v2206_v21 = vmul.f32 %v3683_v61, %v2202_v28  ;;  %v2160_v12 = vpop.permute.xlu1 %2159  ;;  %v2240_v11 = vsel %vm666_vm2, %v2225_v43, 0 }
 0xa4d   :  { %v2227_v51 = vpack.c.bf16 %v2205_v34, %v2205_v34  ;;  %v2228_v13 = vpack.c.bf16 %v2206_v21, %v2206_v21  ;;  %v2162_v18 = vpop.permute.xlu0 %2161  ;;  %3403 = vmatprep.subr.msk.bf16.mxu0 %vm666_vm2, %v2226_v5 }
 0xa4e   :  { %2258 = vmatpush1.bf16.msra.mxu0 %v2240_v11  ;;  %v2169_v5 = vsel %vm592_vm3, %v2160_v12, %v2162_v18 }
 0xa4f   :  { %3405 = vmatprep.subr.msk.bf16.mxu1 %vm666_vm2, %v2228_v13  ;;  %v2164_v33 = vpop.permute.xlu1 %2163  ;;  %v2246_v46 = vsel %vm666_vm2, %v2227_v51, 0  ;;  %v2171_v8 = vmul.f32 %v2169_v5, %v4070_v48 }
 0xa50   :  { %2299 = vmatpush1.bf16.msra.mxu1 %v2246_v46  ;;  %v2168_v28 = vsel %vm592_vm3, %v2162_v18, %v2164_v33 }
 0xa51   :  { %v2166_v15 = vpop.permute.xlu0 %2165  ;;  %v2172_v13 = vmul.f32 %v2168_v28, %v4082_v55 }
 0xa52   :  { %v2167_v43 = vsel %vm592_vm3, %v2164_v33, %v2166_v15  ;;  %v2170_v61 = vsel %vm592_vm3, %v2166_v15, %v2160_v12 }
 0xa53   :  { %v2176_v31 = vpop.permute.xlu1 %2175  ;;  %v2173_v18 = vmul.f32 %v2167_v43, %v3989_v63 }
 0xa55   :  { %v2178_v39 = vpop.permute.xlu0 %2177 }
 0xa56   :  { %v2185_v60 = vsel %vm609_vm4, %v2176_v31, %v2178_v39 }
 0xa57   :  { %v2180_v34 = vpop.permute.xlu1 %2179  ;;  %v2187_v21 = vmul.f32 %v2185_v60, %v4094_v7  ;;  %v2174_v7 = vmul.f32 %v2170_v61, %v3992_v0 }
 0xa58   :  { %v2184_v51 = vsel %vm609_vm4, %v2178_v39, %v2180_v34 }
 0xa59   :  { %v2188_v11 = vmul.f32 %v2184_v51, %v4085_v3  ;;  %v2182_v46 = vpop.permute.xlu0 %2181  ;;  %v2221_v3 = vpack.c.bf16 %v2187_v21, %v2171_v8 }
 0xa5a   :  { %v2183_v33 = vsel %vm609_vm4, %v2180_v34, %v2182_v46  ;;  %v2186_v12 = vsel %vm609_vm4, %v2182_v46, %v2176_v31 }
 0xa5b   :  { %v2189_v15 = vmul.f32 %v2183_v33, %v3995_v1  ;;  %v2190_v39 = vmul.f32 %v2186_v12, %v3998_v2  ;;  %v2144_v55 = vpop.permute.xlu1 %2143  ;;  %v2222_v28 = vpack.c.bf16 %v2188_v11, %v2172_v13 }
 0xa5d   :  { %v2223_v60 = vpack.c.bf16 %v2189_v15, %v2173_v18  ;;  %v2146_v51 = vpop.permute.xlu0 %2145  ;;  %2259 = vmatprep.subr.bf16.mxu0 %v2222_v28  ;;  %v2224_v48 = vpack.c.bf16 %v2190_v39, %v2174_v7 }
 0xa5e   :  { %v2153_v63 = vsel %vm575_vm5, %v2144_v55, %v2146_v51  ;;  %2260 = vmatpush1.bf16.msra.mxu0 %v2221_v3 }
 0xa5f   :  { %2300 = vmatprep.subr.bf16.mxu1 %v2224_v48  ;;  %v2148_v5 = vpop.permute.xlu1 %2147  ;;  %v2155_v31 = vmul.f32 %v2153_v63, %v4151_v25 }
 0xa60   :  { %v2152_v0 = vsel %vm575_vm5, %v2146_v51, %v2148_v5  ;;  %2301 = vmatpush1.bf16.msra.mxu1 %v2223_v60 }
 0xa61   :  { %v2156_v1 = vmul.f32 %v2152_v0, %v4101_v59  ;;  %v2150_v2 = vpop.permute.xlu0 %2149  ;;  %v2217_v13 = vpack.c.bf16 %v2155_v31, %v5350_v41 }
 0xa62   :  { %v2151_v8 = vsel %vm575_vm5, %v2148_v5, %v2150_v2  ;;  %v2154_v43 = vsel %vm575_vm5, %v2150_v2, %v2144_v55 }
 0xa63   :  { %v2157_v34 = vmul.f32 %v2151_v8, %v4025_v19  ;;  %v2158_v61 = vmul.f32 %v2154_v43, %v4029_v20  ;;  %v2112_v21 = vpop.permute.xlu1 %2111  ;;  %v2218_v25 = vpack.c.bf16 %v2156_v1, %v5357_v56 }
 0xa65   :  { %v2219_v11 = vpack.c.bf16 %v2157_v34, %v5364_v17  ;;  %v2114_v46 = vpop.permute.xlu0 %2113  ;;  %2261 = vmatprep.subr.bf16.mxu0 %v2218_v25  ;;  %v2220_v59 = vpack.c.bf16 %v2158_v61, %v5369_v26 }
 0xa66   :  { %2262 = vmatpush1.bf16.msra.mxu0 %v2217_v13  ;;  %v2121_v19 = vsel %vm541_vm7, %v2112_v21, %v2114_v46 }
 0xa67   :  { %2302 = vmatprep.subr.bf16.mxu1 %v2220_v59  ;;  %v2116_v18 = vpop.permute.xlu1 %2115  ;;  %v2124_v41 = vmul.f32 %v2121_v19, %v4172_v16 }
 0xa68   :  { %2303 = vmatpush1.bf16.msra.mxu1 %v2219_v11  ;;  %v2120_v55 = vsel %vm541_vm7, %v2114_v46, %v2116_v18 }
 0xa69   :  { %v2118_v33 = vpop.permute.xlu0 %2117  ;;  %v2125_v0 = vmul.f32 %v2120_v55, %v4088_v4  ;;  %v6001_v55 = vld [vmem:[#allocation26_spill] sm:$0xff] }
 0xa6a   :  { %v2119_v26 = vsel %vm541_vm7, %v2116_v18, %v2118_v33  ;;  %v2122_v15 = vsel %vm541_vm7, %v2118_v33, %v2112_v21 }
 0xa6b   :  { %v2128_v12 = vpop.permute.xlu1 %2127  ;;  %v2123_v51 = vmul.f32 %v2122_v15, %v4175_v23  ;;  %v2126_v48 = vmul.f32 %v2119_v26, %v4073_v49  ;;  %v6000_v26 = vld [vmem:[#allocation25_spill] sm:$0xff] }
 0xa6c   :  { %v2338_v15 = vpack.c.bf16 %v4514_v10, %v6000_v26 }
 0xa6d   :  { %v2130_v20 = vpop.permute.xlu0 %2129 }
 0xa6e   :  { %v2137_v56 = vsel %vm558_vm6, %v2128_v12, %v2130_v20 }
 0xa6f   :  { %v2140_v17 = vmul.f32 %v2137_v56, %v4155_v44  ;;  %v2132_v7 = vpop.permute.xlu1 %2131 }
 0xa70   :  { %v2136_v39 = vsel %vm558_vm6, %v2130_v20, %v2132_v7 }
 0xa71   :  { %v2134_v28 = vpop.permute.xlu0 %2133  ;;  %v2214_v3 = vpack.c.bf16 %v2140_v17, %v2124_v41  ;;  %v2141_v60 = vmul.f32 %v2136_v39, %v4067_v47  ;;  %v3612_v39 = vld [vmem:[%s5899_s8 + $0xf0] sm:$0xff]  }
 0xa72   :  { %v2135_v44 = vsel %vm558_vm6, %v2132_v7, %v2134_v28  ;;  %v2138_v16 = vsel %vm558_vm6, %v2134_v28, %v2128_v12  ;;  %v2340_v28 = vpack.c.bf16 %v4519_v57, %v6001_v55 }
 0xa73   :  { %v2139_v63 = vmul.f32 %v2138_v16, %v4179_v52  ;;  %v2142_v5 = vmul.f32 %v2135_v44, %v4079_v53  ;;  %2263 = vmatprep.subr.bf16.mxu0 %v2214_v3  ;;  %v2080_v31 = vpop.permute.xlu1 %2079  ;;  %v2215_v8 = vpack.c.bf16 %v2141_v60, %v2125_v0  ;;  %v3611_v3 = vld [vmem:[%s5899_s8 + $0x30] sm:$0xff]   ;;  %v3614_v44 = vld [vmem:[%s5899_s8 + $0x68] sm:$0xff]   ;;  %v3621_v0 = vld [vmem:[%s5899_s8 + $0xa0] sm:$0xff]  }
 0xa74   :  { %v3613_v60 = vld [vmem:[%s5899_s8 + $0xb0] sm:$0xff]   ;;  %v3616_v16 = vld [vmem:[%s5899_s8 + $0xe8] sm:$0xff]  }
 0xa75   :  { %v2213_v1 = vpack.c.bf16 %v2139_v63, %v2123_v51  ;;  %v2082_v47 = vpop.permute.xlu0 %2081  ;;  %v2216_v2 = vpack.c.bf16 %v2142_v5, %v2126_v48  ;;  %v3615_v51 = vld [vmem:[%s5899_s8 + $0x28] sm:$0xff]   ;;  %v3618_v63 = vld [vmem:[%s5899_s8 + $0x60] sm:$0xff]  }
 0xa76   :  { %v2089_v49 = vsel %vm507_vm8, %v2080_v31, %v2082_v47  ;;  %v3617_v48 = vld [vmem:[%s5899_s8 + $0xa8] sm:$0xff]   ;;  %v3620_v5 = vld [vmem:[%s5899_s8 + $0xe0] sm:$0xff]  }
 0xa77   :  { %2264 = vmatpush1.bf16.msra.mxu0 %v2213_v1  ;;  %2304 = vmatprep.subr.bf16.mxu1 %v2216_v2  ;;  %v2084_v43 = vpop.permute.xlu1 %2083  ;;  %v2092_v61 = vmul.f32 %v2089_v49, %v4182_v27  ;;  %v3622_v1 = vld [vmem:[%s5899_s8 + $0x58] sm:$0xff]   ;;  %v3629_v49 = vld [vmem:[%s5899_s8 + $0x90] sm:$0xff]  }
 0xa78   :  { %2305 = vmatpush1.bf16.msra.mxu1 %v2215_v8  ;;  %v2088_v46 = vsel %vm507_vm8, %v2082_v47, %v2084_v43  ;;  %v3624_v47 = vld [vmem:[%s5899_s8 + $0xd8] sm:$0xff]  }
 0xa79   :  { %v2086_v34 = vpop.permute.xlu0 %2085  ;;  %v2093_v41 = vmul.f32 %v2088_v46, %v4194_v29  ;;  %v3607_v29 = vld [vmem:[%s5899_s8 + $0x38] sm:$0xff]   ;;  %v6002_v46 = vld [vmem:[#allocation23_spill] sm:$0xff] }
 0xa7a   :  { %v2087_v25 = vsel %vm507_vm8, %v2084_v43, %v2086_v34  ;;  %v2090_v13 = vsel %vm507_vm8, %v2086_v34, %v2080_v31  ;;  %v3619_v31 = vld [vmem:[%s5899_s8 + $0x20] sm:$0xff]   ;;  %v3623_v2 = vld [vmem:[%s5899_s8 + $0x18] sm:$0xff]   ;;  %v3626_v43 = vld [vmem:[%s5899_s8 + $0x50] sm:$0xff]  }
 0xa7b   :  { %v2096_v23 = vpop.permute.xlu1 %2095  ;;  %v2091_v12 = vmul.f32 %v2090_v13, %v4205_v32  ;;  %v2094_v19 = vmul.f32 %v2087_v25, %v4208_v36  ;;  %v3401_v36 = vld [vmem:[%s5895_s4 + $0x18] sm:$0xf]  ;;  %v3628_v34 = vld [vmem:[%s5899_s8 + $0xd0] sm:$0xff]   ;;  %v3636_v25 = vld [vmem:[%s5899_s8 + $0xc0] sm:$0xff]  }
 0xa7c   :  { %v3625_v8 = vld [vmem:[%s5899_s8 + $0x98] sm:$0xff]   ;;  %v3635_v13 = vld [vmem:[%s5899_s8] sm:$0xff]  }
 0xa7d   :  { %v2098_v52 = vpop.permute.xlu0 %2097 }
 0xa7e   :  { %v2105_v53 = vsel %vm524_vm9, %v2096_v23, %v2098_v52 }
 0xa7f   :  { %v2108_v4 = vmul.f32 %v2105_v53, %v4198_v40  ;;  %v2100_v21 = vpop.permute.xlu1 %2099  ;;  %v3632_v53 = vld [vmem:[%s5899_s8 + $0xc8] sm:$0xff]  }
 0xa80   :  { %v2104_v11 = vsel %vm524_vm9, %v2098_v52, %v2100_v21  ;;  %v3630_v52 = vld [vmem:[%s5899_s8 + $0x48] sm:$0xff]  }
 0xa81   :  { %v2102_v59 = vpop.permute.xlu0 %2101  ;;  %v2210_v18 = vpack.c.bf16 %v2108_v4, %v2092_v61  ;;  %v2109_v33 = vmul.f32 %v2104_v11, %v4211_v50  ;;  %v3606_v50 = vld [vmem:[%s5899_s8 + $0x78] sm:$0xff]   ;;  %v3631_v61 = vld [vmem:[%s5899_s8 + $0x8] sm:$0xff]   ;;  %v3637_v11 = vld [vmem:[%s5899_s8 + $0x80] sm:$0xff]  }
 0xa82   :  { %v2103_v27 = vsel %vm524_vm9, %v2100_v21, %v2102_v59  ;;  %v2106_v40 = vsel %vm524_vm9, %v2102_v59, %v2096_v23  ;;  %v3627_v23 = vld [vmem:[%s5899_s8 + $0x10] sm:$0xff]   ;;  %v3633_v4 = vld [vmem:[%s5899_s8 + $0x88] sm:$0xff]   ;;  %v3634_v21 = vld [vmem:[%s5899_s8 + $0x40] sm:$0xff]   ;;  %v2337_v59 = vpack.c.bf16 %v4505_v6, %v6002_v46 }
 0xa83   :  { %v2107_v20 = vmul.f32 %v2106_v40, %v4216_v9  ;;  %v2110_v56 = vmul.f32 %v2103_v27, %v4219_v22  ;;  %2265 = vmatprep.subr.bf16.mxu0 %v2210_v18  ;;  %v2211_v32 = vpack.c.bf16 %v2109_v33, %v2093_v41  ;;  %v3609_v9 = vld [vmem:[%s5899_s8 + $0xb8] sm:$0xff]   ;;  %v3610_v22 = vld [vmem:[%s5899_s8 + $0x70] sm:$0xff]  }
 0xa84   :  { %v6003_v18 = vld [vmem:[#allocation24_spill] sm:$0xff]  ;;  %v6008_v41 = vld [vmem:[#allocation7_spill] sm:$0xff] }
 0xa85   :  { %v2209_v17 = vpack.c.bf16 %v2107_v20, %v2091_v12  ;;  %v2212_v7 = vpack.c.bf16 %v2110_v56, %v2094_v19  ;;  %v2339_v33 = vpack.c.bf16 %v4512_v54, %v6003_v18  ;;  %v6004_v27 = vld [vmem:[#allocation8_spill] sm:$0xff]  ;;  %v6005_v12 = vld [vmem:[#allocation6_spill] sm:$0xff]  ;;  %v6007_v56 = vld [vmem:[#allocation31_spill] sm:$0xff] }
 0xa86   :  { %v2342_v40 = vpack.c.bf16 %v6004_v27, %v4719_v58  ;;  %v6006_v19 = vld [vmem:[#allocation10_spill] sm:$0xff] }
 0xa87   :  { %2266 = vmatpush1.bf16.msra.mxu0 %v2209_v17  ;;  %2306 = vmatprep.subr.bf16.mxu1 %v2212_v7  ;;  %v2344_v20 = vpack.c.bf16 %v6006_v19, %v6005_v12  ;;  %v2346_v17 = vpack.c.bf16 %v5354_v42, %v5149_v30  ;;  %v6009_v7 = vld [vmem:[#allocation5_spill] sm:$0xff] }
 0xa88   :  { %2307 = vmatpush1.bf16.msra.mxu1 %v2211_v32  ;;  %3454 = vmatprep.subr.bf16.mxu0 %v3606_v50  ;;  %v2341_v50 = vpack.c.bf16 %v6008_v41, %v6007_v56 }
 0xa89   :  { %3494 = vmatprep.subr.bf16.mxu1 %v3608_v38  ;;  %v6010_v38 = vld [vmem:[#allocation9_spill] sm:$0xff] }
 0xa8a   :  { %3404 = vmatmul.mubr.msk.bf16.vlgmr.msra.gmra.mxu0 %vm662_vm10, %v3401_v36  ;;  %v2343_v32 = vpack.c.bf16 %v6010_v38, %v6009_v7 }
 0xa8b   :  { %3406 = vmatmul.mubr.msk.bf16.vlgmr.msra.gmra.mxu1 %vm662_vm10, %v3401_v36  ;;  %3455 = vmatpush3.bf16.msra.mxu0 %v3607_v29  ;;  %v2348_v36 = vpack.c.bf16 %v5359_v45, %v5154_v35  ;;  %v2345_v29 = vpack.c.bf16 %v5346_v24, %v5140_v62 }
 0xa8c   :  { %2641 = vmatprep.mubr.bf16.mxu0 %v2338_v15  ;;  %3495 = vmatpush3.bf16.msra.mxu1 %v3609_v9  ;;  %v2347_v9 = vpack.c.bf16 %v5352_v14, %v5147_v37 }
 0xa8d   :  { %2706 = vmatprep.mubr.bf16.mxu1 %v2340_v28  ;;  %3456 = vmatprep.subr.bf16.mxu0 %v3610_v22  ;;  %v244_v22 = vpop.permute.xlu1 %243 }
 0xa8e   :  { %3496 = vmatprep.subr.bf16.mxu1 %v3612_v39  ;;  %v2234_v15 = vpop.permute.xlu0 %2233 }
 0xa8f   :  { %3457 = vmatpush3.bf16.msra.mxu0 %v3611_v3 }
 0xa90   :  { %3497 = vmatpush3.bf16.msra.mxu1 %v3613_v60  ;;  %3458 = vmatprep.subr.bf16.mxu0 %v3614_v44  ;;  %v6011_v60 = vld [vmem:[#allocation21_spill] sm:$0xff] }
 0xa91   :  { %3498 = vmatprep.subr.bf16.mxu1 %v3616_v16  ;;  %v5704_v44 = vadd.f32 %v6011_v60, %v244_v22  ;;  %v6012_v16 = vld [vmem:[#allocation19_spill] sm:$0xff] }
 0xa93   :  { %3459 = vmatpush3.bf16.msra.mxu0 %v3615_v51  ;;  %v5707_v51 = vadd.f32 %v6012_v16, %v244_v22 }
 0xa94   :  { %3499 = vmatpush3.bf16.msra.mxu1 %v3617_v48  ;;  %3460 = vmatprep.subr.bf16.mxu0 %v3618_v63 }
 0xa95   :  { %3500 = vmatprep.subr.bf16.mxu1 %v3620_v5  ;;  %v6013_v5 = vld [vmem:[#allocation22_spill] sm:$0xff] }
 0xa97   :  { %3461 = vmatpush3.bf16.msra.mxu0 %v3619_v31  ;;  %v5712_v31 = vadd.f32 %v6013_v5, %v244_v22 }
 0xa98   :  { %3501 = vmatpush3.bf16.msra.mxu1 %v3621_v0  ;;  %3462 = vmatprep.subr.bf16.mxu0 %v3622_v1  ;;  %v6014_v0 = vld [vmem:[#allocation20_spill] sm:$0xff] }
 0xa99   :  { %3502 = vmatprep.subr.bf16.mxu1 %v3624_v47  ;;  %v5715_v1 = vadd.f32 %v6014_v0, %v244_v22 }
 0xa9b   :  { %3463 = vmatpush3.bf16.msra.mxu0 %v3623_v2 }
 0xa9c   :  { %3503 = vmatpush3.bf16.msra.mxu1 %v3625_v8  ;;  %3464 = vmatprep.subr.bf16.mxu0 %v3626_v43 }
 0xa9d   :  { %3504 = vmatprep.subr.bf16.mxu1 %v3628_v34 }
 0xa9f   :  { %3465 = vmatpush3.bf16.msra.mxu0 %v3627_v23 }
 0xaa0   :  { %3505 = vmatpush3.bf16.msra.mxu1 %v3629_v49  ;;  %3466 = vmatprep.subr.bf16.mxu0 %v3630_v52  ;;  %v5934_v49 = vmax.f32 %v5704_v44, 0.0 }
 0xaa1   :  { %3506 = vmatprep.subr.bf16.mxu1 %v3632_v53 }
 0xaa3   :  { %3467 = vmatpush3.bf16.msra.mxu0 %v3631_v61  ;;  %v5935_v61 = vmax.f32 %v5707_v51, 0.0 }
 0xaa4   :  { %3507 = vmatpush3.bf16.msra.mxu1 %v3633_v4  ;;  %3468 = vmatprep.subr.bf16.mxu0 %v3634_v21  ;;  %v5930_v4 = vmax.f32 %v5712_v31, 0.0 }
 0xaa5   :  { %3508 = vmatprep.subr.bf16.mxu1 %v3636_v25 }
 0xaa7   :  { %3469 = vmatpush3.bf16.msra.mxu0 %v3635_v13  ;;  %v5931_v13 = vmax.f32 %v5715_v1, 0.0 }
 0xaa8   :  { %3509 = vmatpush3.bf16.msra.mxu1 %v3637_v11 }
 0xaaa   :  { %2642 = vmatmul.mubr.bf16.vlgmr.msra.gmra.mxu0 %v2337_v59 }
 0xaab   :  { %2649 = vmatprep.mubr.bf16.mxu0 %v2342_v40  ;;  %2707 = vmatmul.mubr.bf16.vlgmr.msra.gmra.mxu1 %v2339_v33 }
 0xaac   :  { %2714 = vmatprep.mubr.bf16.mxu1 %v2344_v20 }
 0xab2   :  { %2650 = vmatmul.mubr.bf16.gmra.mxu0 %v2341_v50  ;;  %v5938_v50 = vmov 0.0  }
 0xab3   :  { %2657 = vmatprep.mubr.bf16.mxu0 %v2346_v17  ;;  %2715 = vmatmul.mubr.bf16.gmra.mxu1 %v2343_v32 }
 0xab4   :  { %2722 = vmatprep.mubr.bf16.mxu1 %v2348_v36  ;;  %3544 = vmatprep.subr.bf16.mxu0 %v5938_v50 }
 0xaba   :  { %2658 = vmatmul.mubr.bf16.gmra.mxu0 %v2345_v29 }
 0xabb   :  { %2723 = vmatmul.mubr.bf16.gmra.mxu1 %v2347_v9 }
 0xb4a   :  { %v2285_v39 = vpop.f32.mrf.mxu0 }
 0xb4b   :  { %v5701_v28 = vadd.f32 %v2285_v39, %v2234_v15  ;;  %v2326_v3 = vpop.f32.mrf.mxu1 }
 0xb4c   :  { %v5709_v48 = vadd.f32 %v2326_v3, %v2234_v15  ;;  %v2287_v63 = vpop.f32.mrf.mxu0 }
 0xb4d   :  { %v5717_v47 = vadd.f32 %v2287_v63, %v2234_v15  ;;  %v2328_v2 = vpop.f32.mrf.mxu1  ;;  %v5937_v8 = vmax.f32 %v5701_v28, 0.0 }
 0xb4e   :  { %v5720_v43 = vadd.f32 %v2328_v2, %v2234_v15  ;;  %v2289_v34 = vpop.f32.mrf.mxu0  ;;  %v5933_v23 = vmax.f32 %v5709_v48, 0.0 }
 0xb4f   :  { %v5936_v52 = vmax.f32 %v5717_v47, 0.0  ;;  %v2330_v53 = vpop.f32.mrf.mxu1  ;;  %v2349_v33 = vpack.c.bf16 %v5935_v61, %v5937_v8 }
 0xb50   :  { %v5932_v21 = vmax.f32 %v5720_v43, 0.0  ;;  %v2290_v25 = vpop.f32.mrf.mxu0  ;;  %v2351_v20 = vpack.c.bf16 %v5931_v13, %v5933_v23 }
 0xb51   :  { %v2350_v11 = vpack.c.bf16 %v5934_v49, %v5936_v52  ;;  %v2331_v59 = vpop.f32.mrf.mxu1 }
 0xb52   :  { %v2352_v40 = vpack.c.bf16 %v5930_v4, %v5932_v21 }
 0xb53   :  { %2665 = vmatprep.mubr.bf16.mxu0 %v2350_v11 }
 0xb54   :  { %2666 = vmatmul.mubr.bf16.gmra.mxu0 %v2349_v33  ;;  %2730 = vmatprep.mubr.bf16.mxu1 %v2352_v40 }
 0xb55   :  { %2731 = vmatmul.mubr.bf16.gmra.mxu1 %v2351_v20  ;;  %3552 = vmatprep.mubr.msk.bf16.mxu0 %vm3724_vm11, %v5938_v50 }
 0xb6a   :  { %v3470_v17 = vpop.f32.mrf.mxu0 }
 0xb6b   :  { %v3510_v32 = vpop.f32.mrf.mxu1 }
 0xb6c   :  { %v3471_v36 = vpop.f32.mrf.mxu0 }
 0xb6d   :  { %v3511_v29 = vpop.f32.mrf.mxu1 }
 0xb6e   :  { %v3473_v9 = vpop.f32.mrf.mxu0 }
 0xb6f   :  { %v3513_v22 = vpop.f32.mrf.mxu1 }
 0xb70   :  { %v3474_v15 = vpop.f32.mrf.mxu0 }
 0xb71   :  { %v3514_v39 = vpop.f32.mrf.mxu1 }
 0xb72   :  { %v3476_v3 = vpop.f32.mrf.mxu0 }
 0xb73   :  { %v3516_v60 = vpop.f32.mrf.mxu1 }
 0xb74   :  { %v3477_v16 = vpop.f32.mrf.mxu0 }
 0xb75   :  { %v3517_v63 = vpop.f32.mrf.mxu1  ;;  %v3478_v10 = vadd.f32 %v3477_v16, %v3476_v3 }
 0xb76   :  { %v3479_v5 = vpop.f32.mrf.mxu0  ;;  %v3518_v6 = vadd.f32 %v3517_v63, %v3516_v60 }
 0xb77   :  { %v3519_v0 = vpop.f32.mrf.mxu1 }
 0xb78   :  { %v3480_v2 = vpop.f32.mrf.mxu0 }
 0xb79   :  { %v3520_v34 = vpop.f32.mrf.mxu1  ;;  %v3481_v35 = vadd.f32 %v3480_v2, %v3479_v5 }
 0xb7a   :  { %v3482_v53 = vpop.f32.mrf.mxu0  ;;  %v3521_v37 = vadd.f32 %v3520_v34, %v3519_v0 }
 0xb7b   :  { %v3522_v25 = vpop.f32.mrf.mxu1 }
 0xb7c   :  { %v3483_v11 = vpop.f32.mrf.mxu0 }
 0xb7d   :  { %v3523_v59 = vpop.f32.mrf.mxu1  ;;  %v3484_v12 = vadd.f32 %v3483_v11, %v3482_v53 }
 0xb7e   :  { %v3485_v33 = vpop.f32.mrf.mxu0  ;;  %v3524_v45 = vadd.f32 %v3523_v59, %v3522_v25 }
 0xb7f   :  { %v3525_v40 = vpop.f32.mrf.mxu1 }
 0xb80   :  { %v3486_v20 = vpop.f32.mrf.mxu0  ;;  %v2725_v41 = vadd.f32 %v3524_v45, %v3484_v12  ;;  %v2739_v45 = vld [vmem:[%s5900_s9] sm:$0xf] }
 0xb81   :  { %v3526_v4 = vpop.f32.mrf.mxu1  ;;  %v3487_v18 = vadd.f32 %v3486_v20, %v3485_v33 }
 0xb82   :  { %v3527_v7 = vadd.f32 %v3526_v4, %v3525_v40  ;;  %v3472_v4 = vadd.f32 %v3471_v36, %v3470_v17  ;;  %v3641_v17 = vld [vmem:[%s5902_s11 + $0x18] sm:$0xff]   ;;  %v2845_v36 = vpop.permute.xlu0 %2844 }
 0xb84   :  { %v2728_v26 = vadd.f32 %v3527_v7, %v3487_v18 }
 0xc14   :  { %v3488_v13 = vpop.f32.mrf.mxu0 }
 0xc15   :  { %v3528_v21 = vpop.f32.mrf.mxu1 }
 0xc16   :  { %v3489_v23 = vpop.f32.mrf.mxu0 }
 0xc17   :  { %v3529_v49 = vpop.f32.mrf.mxu1  ;;  %v3490_v8 = vadd.f32 %v3489_v23, %v3488_v13  ;;  %v6015_v23 = vmov 0.0   ;;  %v3639_v13 = vld [vmem:[%s5902_s11 + $0x8] sm:$0xff]  }
 0xc18   :  { %v3491_v61 = vpop.f32.mrf.mxu0  ;;  %v3530_v50 = vadd.f32 %v3529_v49, %v3528_v21  ;;  %v3475_v49 = vadd.f32 %v3474_v15, %v3473_v9  ;;  %v2742_v21 = vpack.c.bf16 %v2728_v26, %v2725_v41  ;;  %v2835_v9 = vpop.permute.xlu0 %2834 }
 0xc19   :  { %v3531_v52 = vpop.f32.mrf.mxu1 }
 0xc1a   :  { %v3492_v57 = vpop.f32.mrf.mxu0  ;;  %v2733_v14 = vadd.f32 %v3530_v50, %v3490_v8  ;;  %v3640_v50 = vld [vmem:[%s5902_s11 + $0x10] sm:$0xff]  }
 0xc1b   :  { %v3493_v54 = vadd.f32 %v3492_v57, %v3491_v61  ;;  %v3532_v55 = vpop.f32.mrf.mxu1  ;;  %v3515_v57 = vadd.f32 %v3514_v39, %v3513_v22  ;;  %v2720_v61 = vadd.f32 %v3521_v37, %v3481_v35  ;;  %v6016_v37 = vmov 0  }
 0xc1c   :  { %v3533_v38 = vadd.f32 %v3532_v55, %v3531_v52  ;;  %v3512_v55 = vadd.f32 %v3511_v29, %v3510_v32  ;;  %v2717_v52 = vadd.f32 %v3518_v6, %v3478_v10  ;;  %v3638_v6 = vld [vmem:[%s5902_s11] sm:$0xff]   ;;  %v2748_v10 = vpop.permute.xlu1 %2747  ;;  %v3725_v32 = vmov 1   ;;  %v2825_v15 = vpop.permute.xlu0 %2824  ;;  %s3332_s11 = sshll.u32 %s3726_s25, 4  ;;  %s3333_s11 = int_to_ptr.vmem [resolvable:$true] %s3332_s11 }
 0xc1d   :  { %3558 = vmatprep.mubr.msk.bf16.mxu1 %vm2872_vm13, %v3638_v6  ;;  %3584 = vset.pattern.permute.xlu0 %v3725_v32  ;;  %p3697_p1 = scmp.lt.s32.totalorder %s3333_s11, %s3333_s11 }
 0xc1e   :  { %v2736_v19 = vadd.f32 %v3533_v38, %v3493_v54  ;;  %v2712_v54 = vadd.f32 %v3515_v57, %v3475_v49  ;;  %v2741_v38 = vpack.c.bf16 %v2720_v61, %v2717_v52  ;;  %v2709_v18 = vadd.f32 %v3512_v55, %v3472_v4 }
 0xc20   :  { %v2743_v46 = vpack.c.bf16 %v2736_v19, %v2733_v14  ;;  %v2740_v14 = vpack.c.bf16 %v2712_v54, %v2709_v18  ;;  %v2850_v29 = vpop.permute.xlu1 %2849 }
 0xc22   :  { %3545 = vmatpush3.bf16.msra.mxu0 %v2743_v46 }
 0xc23   :  { %3546 = vmatprep.subr.bf16.mxu0 %v6015_v23 }
 0xc24   :  { %v2840_v22 = vpop.permute.xlu1 %2839 }
 0xc26   :  { %3547 = vmatpush3.bf16.msra.mxu0 %v2742_v21 }
 0xc27   :  { %3548 = vmatprep.subr.bf16.mxu0 %v6015_v23 }
 0xc28   :  { %v2830_v63 = vpop.permute.xlu1 %2829 }
 0xc2a   :  { %3549 = vmatpush3.bf16.msra.mxu0 %v2741_v38 }
 0xc2b   :  { %3550 = vmatprep.subr.bf16.mxu0 %v6015_v23 }
 0xc2c   :  { %v2820_v54 = vpop.permute.xlu1 %2819 }
 0xc2e   :  { %3551 = vmatpush3.bf16.msra.mxu0 %v2740_v14 }
 0xc31   :  { %3553 = vmatmul.mubr.msk.bf16.vlgmr.msra.gmra.mxu0 %vm2750_vm12, %v2739_v45 }
 0xc32   :  { %3189 = vmatprep.mubr.bf16.mxu0 %v6016_v37 }
 0xcf1   :  { %v2788_v35 = vpop.f32.mrf.mxu0 }
 0xcf2   :  { %v2789_v26 = vadd.f32 %v2788_v35, %v2748_v10 }
 0xcf3   :  { %v3554_v46 = vpop.f32.mrf.mxu0 }
 0xcf4   :  { %v2794_v12 = vmax.f32 %v2789_v26, 0.0  ;;  %v2815_v46 = vpop.permute.xlu0 %2814 }
 0xcf5   :  { %v2791_v19 = vpop.f32.mrf.mxu0 }
 0xcf6   :  { %v2803_v41 = vpack.c.bf16 %v2794_v12, %v2794_v12 }
 0xcf7   :  { %v3555_v7 = vpop.f32.mrf.mxu0 }
 0xcf8   :  { %3566 = vmatprep.subr.msk.bf16.mxu1 %vm666_vm2, %v2803_v41  ;;  %v2886_v8 = vsel %vm666_vm2, %v2803_v41, 0 }
 0xcf9   :  { %3557 = vmatpush3.bf16.msra.mxu1 %v2886_v8 }
 0xcfc   :  { %3559 = vmatmul.mubr.msk.bf16.vlgmr.msra.gmra.mxu1 %vm2872_vm13, %v3639_v13 }
 0xcfd   :  { %3562 = vmatprep.mubr.msk.bf16.mxu1 %vm2872_vm13, %v3640_v50 }
 0xd04   :  { %3563 = vmatmul.mubr.msk.bf16.gmra.mxu1 %vm2872_vm13, %v3641_v17 }
 0xd05   :  { %3242 = vmatprep.mubr.bf16.mxu1 %v6016_v37 }
 0xdbc   :  { %v3560_v39 = vpop.f32.mrf.mxu1 }
 0xdbd   :  { %v2931_v3 = vadd.f32 %v3560_v39, %v2825_v15 }
 0xdbe   :  { %v2922_v60 = vpop.f32.mrf.mxu1 }
 0xdbf   :  { %v2955_v16 = vsub.f32 0.0, %v2931_v3  ;;  %v2923_v12 = vadd.f32 %v2922_v60, %v2815_v46 }
 0xdc0   :  { %v3561_v5 = vpop.f32.mrf.mxu1 }
 0xdc1   :  { %v2965_v0 = vmul.f32 1.442695, %v2955_v16  ;;  %v2934_v2 = vadd.f32 %v3561_v5, %v2830_v63  ;;  %v2953_v8 = vsub.f32 0.0, %v2923_v12 }
 0xdc2   :  { %v2925_v34 = vpop.f32.mrf.mxu1 }
 0xdc3   :  { %3644 = vpow2.f32 %v2965_v0  ;;  %v2956_v53 = vsub.f32 0.0, %v2934_v2  ;;  %v2926_v38 = vadd.f32 %v2925_v34, %v2820_v54 }
 0xdc4   :  { %v3564_v25 = vpop.f32.mrf.mxu1 }
 0xdc5   :  { %v2967_v11 = vmul.f32 1.442695, %v2956_v53  ;;  %v2947_v59 = vadd.f32 %v3564_v25, %v2845_v36  ;;  %v2954_v35 = vsub.f32 0.0, %v2926_v38  ;;  %v2961_v36 = vmul.f32 1.442695, %v2953_v8 }
 0xdc6   :  { %v2938_v33 = vpop.f32.mrf.mxu1  ;;  %v6018_v38 = vmax.f32 %v5717_v47, 0.0 }
 0xdc7   :  { %3646 = vpow2.f32 %v2967_v11  ;;  %v2959_v40 = vsub.f32 0.0, %v2947_v59  ;;  %v2939_v20 = vadd.f32 %v2938_v33, %v2835_v9  ;;  %v2963_v41 = vmul.f32 1.442695, %v2954_v35  ;;  %v3117_v11 = vld [vmem:[%s5898_s7] sm:$0xff]  ;;  %v3119_v59 = vld [vmem:[%s5898_s7 + $0x10] sm:$0xff] }
 0xdc8   :  { %v3565_v23 = vpop.f32.mrf.mxu1 }
 0xdc9   :  { %v2973_v49 = vmul.f32 1.442695, %v2959_v40  ;;  %v2957_v57 = vsub.f32 0.0, %v2939_v20  ;;  %v2950_v61 = vadd.f32 %v3565_v23, %v2850_v29  ;;  %v3118_v40 = vld [vmem:[%s5898_s7 + $0x8] sm:$0xff]  ;;  %v3120_v20 = vld [vmem:[%s5898_s7 + $0x18] sm:$0xff] }
 0xdca   :  { %v2941_v21 = vpop.f32.mrf.mxu1 }
 0xdcb   :  { %3648 = vpow2.f32 %v2973_v49  ;;  %v2969_v4 = vmul.f32 1.442695, %v2957_v57  ;;  %v2960_v55 = vsub.f32 0.0, %v2950_v61  ;;  %v2942_v52 = vadd.f32 %v2941_v21, %v2840_v22 }
 0xdcd   :  { %3650 = vpow2.f32 %v2969_v4  ;;  %v2958_v18 = vsub.f32 0.0, %v2942_v52  ;;  %v2975_v14 = vmul.f32 1.442695, %v2960_v55  ;;  %v6017_v55 = vmax.f32 %v5701_v28, 0.0 }
 0xdcf   :  { %v2971_v45 = vmul.f32 1.442695, %v2958_v18 }
 0xdd0   :  { %v3645_v6 = vpop.eup %3644 }
 0xdd1   :  { %v2979_v10 = vadd.f32 1.0, %v3645_v6  ;;  %3652 = vpow2.f32 %v2971_v45  ;;  %v6019_v45 = vmax.f32 %v5707_v51, 0.0  ;;  %v6021_v51 = vmax.f32 %v5709_v48, 0.0 }
 0xdd2   :  { %3654 = vpow2.f32 %v2975_v14 }
 0xdd3   :  { %3656 = vrcp.f32 %v2979_v10  ;;  %v6020_v10 = vmax.f32 %v5704_v44, 0.0  ;;  %v6022_v44 = vmax.f32 %v5720_v43, 0.0 }
 0xdd4   :  { %v3647_v26 = vpop.eup %3646 }
 0xdd5   :  { %v2980_v19 = vadd.f32 1.0, %v3647_v26 }
 0xdd7   :  { %3658 = vrcp.f32 %v2980_v19 }
 0xdd8   :  { %v3649_v7 = vpop.eup %3648  ;;  %3660 = vpow2.f32 %v2963_v41 }
 0xdd9   :  { %v2983_v13 = vadd.f32 1.0, %v3649_v7 }
 0xdda   :  { %v3651_v50 = vpop.eup %3650 }
 0xddb   :  { %3662 = vrcp.f32 %v2983_v13  ;;  %v2981_v17 = vadd.f32 1.0, %v3651_v50  ;;  %v6023_v50 = vmax.f32 %v5715_v1, 0.0 }
 0xddd   :  { %3664 = vrcp.f32 %v2981_v17  ;;  %v6024_v17 = vmax.f32 %v5712_v31, 0.0 }
 0xdde   :  { %v3653_v29 = vpop.eup %3652  ;;  %3666 = vpow2.f32 %v2961_v36 }
 0xddf   :  { %v3655_v9 = vpop.eup %3654  ;;  %v2982_v15 = vadd.f32 1.0, %v3653_v29 }
 0xde0   :  { %v3657_v22 = vpop.eup %3656  ;;  %v2984_v39 = vadd.f32 1.0, %v3655_v9 }
 0xde1   :  { %3058 = vperm.xlu0 %3584, %v3657_v22   ;;  %3668 = vrcp.f32 %v2982_v15  ;;  %v6025_v15 = vld [vmem:[#allocation7_spill] sm:$0xff] }
 0xde2   :  { %3670 = vrcp.f32 %v2984_v39 }
 0xde4   :  { %v3659_v3 = vpop.eup %3658 }
 0xde5   :  { %3010 = vperm.xlu1 %3583, %v3659_v3   ;;  %3585 = vset.pattern.permute.xlu0 %v6016_v37  ;;  %v3661_v60 = vpop.eup %3660 }
 0xde6   :  { %v2978_v63 = vadd.f32 1.0, %v3661_v60  ;;  %v6027_v60 = vld [vmem:[#allocation29_spill] sm:$0xff] }
 0xde8   :  { %v3663_v16 = vpop.eup %3662  ;;  %3672 = vrcp.f32 %v2978_v63  ;;  %v6028_v63 = vld [vmem:[#allocation23_spill] sm:$0xff] }
 0xde9   :  { %3025 = vperm.xlu0 %3585, %v3663_v16  }
 0xdea   :  { %v3665_v5 = vpop.eup %3664 }
 0xdeb   :  { %3015 = vperm.xlu1 %3583, %v3665_v5   ;;  %v3667_v0 = vpop.eup %3666 }
 0xdec   :  { %v2977_v2 = vadd.f32 1.0, %v3667_v0 }
 0xded   :  { %3586 = vset.pattern.permute.xlu0 %v3725_v32 }
 0xdee   :  { %3074 = vperm.xlu0 %3586, %v3663_v16   ;;  %v3669_v34 = vpop.eup %3668  ;;  %3674 = vrcp.f32 %v2977_v2 }
 0xdef   :  { %3587 = vset.pattern.permute.xlu1 %v3725_v32  ;;  %v3671_v53 = vpop.eup %3670 }
 0xdf0   :  { %3066 = vperm.xlu1 %3587, %v3665_v5   ;;  %v6029_v5 = vld [vmem:[#allocation25_spill] sm:$0xff] }
 0xdf2   :  { %3590 = vset.pattern.permute.xlu0 %v6016_v37 }
 0xdf3   :  { %3020 = vperm.xlu0 %3590, %v3669_v34  }
 0xdf4   :  { %3588 = vset.pattern.permute.xlu1 %v6016_v37 }
 0xdf5   :  { %3030 = vperm.xlu1 %3588, %v3671_v53   ;;  %v3673_v25 = vpop.eup %3672 }
 0xdf7   :  { %3005 = vperm.xlu0 %3590, %v3657_v22  }
 0xdf9   :  { %3589 = vset.pattern.permute.xlu1 %v3725_v32 }
 0xdfa   :  { %3078 = vperm.xlu1 %3589, %v3671_v53   ;;  %v6030_v53 = vld [vmem:[#allocation11_spill] sm:$0xff] }
 0xdfb   :  { %3000 = vperm.xlu0 %3590, %v3673_v25   ;;  %v3675_v33 = vpop.eup %3674 }
 0xdfe   :  { %3062 = vperm.xlu1 %3589, %v3659_v3   ;;  %v6026_v3 = vld [vmem:[#allocation27_spill] sm:$0xff] }
 0xdff   :  { %3123 = vperm.xlu0 %3590, %v3117_v11  }
 0xe02   :  { %3591 = vset.pattern.permute.xlu1 %v6016_v37 }
 0xe03   :  { %2995 = vperm.xlu1 %3591, %v3675_v33   ;;  %3133 = vperm.xlu0 %3590, %v3119_v59   ;;  %v3642_v59 = vld [vmem:[%s5897_s6] sm:$0xff]  }
 0xe07   :  { %3592 = vset.pattern.permute.xlu1 %v3725_v32 }
 0xe08   :  { %3070 = vperm.xlu1 %3592, %v3669_v34  }
 0xe0c   :  { %3050 = vperm.xlu1 %3592, %v3675_v33   ;;  %v6031_v33 = vld [vmem:[#allocation13_spill] sm:$0xff] }
 0xe10   :  { %3054 = vperm.xlu1 %3592, %v3673_v25  }
 0xe14   :  { %3593 = vset.pattern.permute.xlu1 %v6016_v37 }
 0xe15   :  { %3128 = vperm.xlu1 %3593, %v3118_v40  }
 0xe19   :  { %3138 = vperm.xlu1 %3593, %v3120_v20   ;;  %v6032_v20 = vld [vmem:[#allocation10_spill] sm:$0xff] }
 0xe5c   :  { %v5796_v23 = vpop.permute.xlu0 %3058 }
 0xe60   :  { %v3011_v49 = vpop.permute.xlu1 %3010 }
 0xe61   :  { %v3039_v43 = vmul.f32 %v3011_v49, %v6025_v15 }
 0xe64   :  { %v3026_v57 = vpop.permute.xlu0 %3025 }
 0xe65   :  { %v3045_v52 = vmul.f32 %v3026_v57, %v6017_v55  ;;  %v3046_v18 = vmul.f32 %v3026_v57, %v6018_v38  ;;  %v6033_v57 = vld [vmem:[#allocation12_spill] sm:$0xff]  ;;  %v6035_v55 = vld [vmem:[#allocation6_spill] sm:$0xff] }
 0xe66   :  { %v3016_v32 = vpop.permute.xlu1 %3015 }
 0xe67   :  { %v3042_v46 = vmul.f32 %v3016_v32, %v5149_v30  ;;  %v3041_v41 = vmul.f32 %v3016_v32, %v5140_v62  ;;  %v3040_v62 = vmul.f32 %v3011_v49, %v6004_v27 }
 0xe69   :  { %v3075_v61 = vpop.permute.xlu0 %3074 }
 0xe6a   :  { %v3093_v8 = vmul.f32 %v3075_v61, %v6021_v51  ;;  %v3094_v13 = vmul.f32 %v3075_v61, %v6022_v44  ;;  %v6034_v61 = vld [vmem:[#allocation14_spill] sm:$0xff] }
 0xe6b   :  { %v3067_v21 = vpop.permute.xlu1 %3066 }
 0xe6c   :  { %v3089_v25 = vmul.f32 %v3067_v21, %v6030_v53  ;;  %v3090_v40 = vmul.f32 %v3067_v21, %v6031_v33  ;;  %v6037_v21 = vld [vmem:[#allocation5_spill] sm:$0xff] }
 0xe6e   :  { %v3021_v4 = vpop.permute.xlu0 %3020 }
 0xe6f   :  { %v3044_v14 = vmul.f32 %v3021_v4, %v5354_v42  ;;  %v3043_v28 = vmul.f32 %v3021_v4, %v5346_v24 }
 0xe70   :  { %v3031_v54 = vpop.permute.xlu1 %3030 }
 0xe71   :  { %v3047_v6 = vmul.f32 %v3031_v54, %v6019_v45  ;;  %v3048_v35 = vmul.f32 %v3031_v54, %v6020_v10  ;;  %v3110_v7 = vpack.c.bf16 %v3044_v14, %v3042_v46  ;;  %v3109_v24 = vpack.c.bf16 %v3043_v28, %v3041_v41  ;;  %v3643_v46 = vld [vmem:[%s5897_s6 + $0x8] sm:$0xff]  }
 0xe72   :  { %v3006_v26 = vpop.permute.xlu0 %3005  ;;  %v3085_v10 = vmul.f32 %v5796_v23, %v6037_v21  ;;  %v6039_v28 = vld [vmem:[#allocation26_spill] sm:$0xff] }
 0xe73   :  { %v3113_v12 = vpack.c.bf16 %v3047_v6, %v3045_v52  ;;  %v3114_v19 = vpack.c.bf16 %v3048_v35, %v3046_v18  ;;  %v3038_v47 = vmul.f32 %v3006_v26, %v4719_v58  ;;  %v3037_v58 = vmul.f32 %v3006_v26, %v6007_v56  ;;  %v6036_v18 = vld [vmem:[#allocation9_spill] sm:$0xff] }
 0xe74   :  { %v3086_v52 = vmul.f32 %v5796_v23, %v6035_v55  ;;  %v3684_v23 = vld [vmem:[%s5891_s0] sm:$0xff] }
 0xe75   :  { %3165 = vmatprep.subr.bf16.mxu0 %v3114_v19  ;;  %v3079_v42 = vpop.permute.xlu1 %3078  ;;  %v3106_v48 = vpack.c.bf16 %v3040_v62, %v3038_v47  ;;  %v3105_v1 = vpack.c.bf16 %v3039_v43, %v3037_v58 }
 0xe76   :  { %v3095_v30 = vmul.f32 %v3079_v42, %v6023_v50  ;;  %v3096_v36 = vmul.f32 %v3079_v42, %v6024_v17  ;;  %3166 = vmatpush1.bf16.msra.mxu0 %v3113_v12  ;;  %v3001_v31 = vpop.permute.xlu0 %3000  ;;  %v6038_v12 = vld [vmem:[#allocation24_spill] sm:$0xff]  ;;  %v6041_v42 = vld [vmem:[#allocation30_spill] sm:$0xff] }
 0xe77   :  { %3167 = vmatprep.subr.bf16.mxu0 %v3110_v7  ;;  %v3035_v27 = vmul.f32 %v3001_v31, %v6026_v3  ;;  %v3036_v16 = vmul.f32 %v3001_v31, %v6027_v60  ;;  %v6040_v7 = vld [vmem:[#allocation28_spill] sm:$0xff]  ;;  %v3686_v3 = vld [vmem:[%s5891_s0 + $0x20] sm:$0xff] }
 0xe78   :  { %v3115_v29 = vpack.c.bf16 %v3095_v30, %v3093_v8  ;;  %v3116_v9 = vpack.c.bf16 %v3096_v36, %v3094_v13  ;;  %v3263_v13 = vunpack.c.l.bf16 %v3684_v23  ;;  %v3264_v36 = vunpack.c.h.bf16 %v3684_v23 }
 0xe79   :  { %v3063_v22 = vpop.permute.xlu1 %3062 }
 0xe7a   :  { %3168 = vmatpush1.bf16.msra.mxu0 %v3109_v24  ;;  %3218 = vmatprep.subr.bf16.mxu1 %v3116_v9  ;;  %v3088_v49 = vmul.f32 %v3063_v22, %v6032_v20  ;;  %v3087_v14 = vmul.f32 %v3063_v22, %v6036_v18  ;;  %v3124_v50 = vpop.permute.xlu0 %3123 }
 0xe7b   :  { %3169 = vmatprep.subr.bf16.mxu0 %v3106_v48  ;;  %3219 = vmatpush1.bf16.msra.mxu1 %v3115_v29 }
 0xe7c   :  { %v3108_v6 = vpack.c.bf16 %v3088_v49, %v3086_v52  ;;  %v3107_v35 = vpack.c.bf16 %v3087_v14, %v3085_v10  ;;  %v3688_v49 = vld [vmem:[%s5891_s0 + $0x8] sm:$0xff] }
 0xe7d   :  { %v3266_v18 = vunpack.c.h.bf16 %v3688_v49 }
 0xe7e   :  { %3170 = vmatpush1.bf16.msra.mxu0 %v3105_v1  ;;  %v2996_v39 = vpop.permute.xlu1 %2995 }
 0xe7f   :  { %v3033_v56 = vmul.f32 %v2996_v39, %v6028_v63  ;;  %v3034_v0 = vmul.f32 %v2996_v39, %v6029_v5  ;;  %v3134_v63 = vpop.permute.xlu0 %3133 }
 0xe81   :  { %v3101_v2 = vpack.c.bf16 %v3035_v27, %v3033_v56  ;;  %v3102_v34 = vpack.c.bf16 %v3036_v16, %v3034_v0  ;;  %v3271_v27 = vunpack.c.l.bf16 %v3686_v3  ;;  %v3272_v0 = vunpack.c.h.bf16 %v3686_v3 }
 0xe83   :  { %3171 = vmatprep.subr.bf16.mxu0 %v3102_v34  ;;  %v3071_v11 = vpop.permute.xlu1 %3070 }
 0xe84   :  { %v3091_v32 = vmul.f32 %v3071_v11, %v6033_v57  ;;  %v3092_v4 = vmul.f32 %v3071_v11, %v6034_v61  ;;  %3172 = vmatpush1.bf16.msra.mxu0 %v3101_v2  ;;  %v3265_v57 = vunpack.c.l.bf16 %v3688_v49 }
 0xe86   :  { %v3111_v54 = vpack.c.bf16 %v3091_v32, %v3089_v25  ;;  %v3112_v38 = vpack.c.bf16 %v3092_v4, %v3090_v40  ;;  %v3687_v40 = vld [vmem:[%s5891_s0 + $0x30] sm:$0xff] }
 0xe87   :  { %3450 = vmatmul.mubr.msk.bf16.vlgmr.msra.gmra.mxu0 %vm2750_vm12, %v3642_v59  ;;  %v3051_v45 = vpop.permute.xlu1 %3050  ;;  %v3275_v20 = vunpack.c.l.bf16 %v3687_v40  ;;  %v3276_v52 = vunpack.c.h.bf16 %v3687_v40 }
 0xe88   :  { %3220 = vmatprep.subr.bf16.mxu1 %v3112_v38  ;;  %3199 = vmatprep.mubr.bf16.mxu0 %v6016_v37  ;;  %v3081_v19 = vmul.f32 %v3051_v45, %v6038_v12  ;;  %v3082_v41 = vmul.f32 %v3051_v45, %v6039_v28 }
 0xe89   :  { %3221 = vmatpush1.bf16.msra.mxu1 %v3111_v54 }
 0xe8a   :  { %3222 = vmatprep.subr.bf16.mxu1 %v3108_v6 }
 0xe8b   :  { %v3055_v26 = vpop.permute.xlu1 %3054 }
 0xe8c   :  { %v3083_v47 = vmul.f32 %v3055_v26, %v6040_v7  ;;  %v3084_v51 = vmul.f32 %v3055_v26, %v6041_v42 }
 0xe8d   :  { %3223 = vmatpush1.bf16.msra.mxu1 %v3107_v35 }
 0xe8e   :  { %v3103_v8 = vpack.c.bf16 %v3083_v47, %v3081_v19  ;;  %v3104_v44 = vpack.c.bf16 %v3084_v51, %v3082_v41 }
 0xe8f   :  { %3451 = vmatmul.mubr.msk.bf16.gmra.mxu0 %vm2750_vm12, %v3643_v46 }
 0xe90   :  { %3224 = vmatprep.subr.bf16.mxu1 %v3104_v44  ;;  %v5855_v24 = vpop.permute.xlu1 %3128 }
 0xe91   :  { %3225 = vmatpush1.bf16.msra.mxu1 %v3103_v8 }
 0xe94   :  { %3452 = vmatmul.mubr.msk.bf16.vlgmr.msra.gmra.mxu1 %vm2750_vm12, %v3642_v59  ;;  %v5865_v25 = vpop.permute.xlu1 %3138 }
 0xe95   :  { %3252 = vmatprep.mubr.bf16.mxu1 %v6016_v37  ;;  %v3685_v37 = vld [vmem:[%s5891_s0 + $0x10] sm:$0xff] }
 0xe96   :  { %v3267_v9 = vunpack.c.l.bf16 %v3685_v37  ;;  %v3268_v43 = vunpack.c.h.bf16 %v3685_v37 }
 0xe9c   :  { %3453 = vmatmul.mubr.msk.bf16.gmra.mxu1 %vm2750_vm12, %v3643_v46  ;;  %v3689_v46 = vld [vmem:[%s5891_s0 + $0x18] sm:$0xff] }
 0xe9d   :  { %v3269_v12 = vunpack.c.l.bf16 %v3689_v46  ;;  %v3270_v42 = vunpack.c.h.bf16 %v3689_v46 }
 0xf47   :  { %v3191_v30 = vpop.f32.mrf.mxu0 }
 0xf48   :  { %v3192_v17 = vadd.f32 %v3191_v30, %v3124_v50 }
 0xf49   :  { %v3193_v62 = vpop.f32.mrf.mxu0 }
 0xf4a   :  { %v3279_v58 = vadd.f32 %v3263_v13, %v3192_v17  ;;  %v3194_v29 = vadd.f32 %v3193_v62, %v3124_v50  ;;  %v3690_v13 = vld [vmem:[%s5891_s0 + $0x28] sm:$0xff] }
 0xf4b   :  { %v3195_v48 = vpop.f32.mrf.mxu0 }
 0xf4c   :  { %v3295_v22 = vmax.f32 %v3279_v58, 0.0  ;;  %v3280_v15 = vadd.f32 %v3264_v36, %v3194_v29  ;;  %v3196_v1 = vadd.f32 %v3195_v48, %v5855_v24  ;;  %v3274_v58 = vunpack.c.h.bf16 %v3690_v13 }
 0xf4d   :  { %v3197_v31 = vpop.f32.mrf.mxu0 }
 0xf4e   :  { %3311 = vst [vmem:[#allocation2] sm:$0xff] %v3295_v22  ;;  %v3296_v39 = vmax.f32 %v3280_v15, 0.0  ;;  %v3198_v60 = vadd.f32 %v3197_v31, %v5855_v24  ;;  %v3283_v16 = vadd.f32 %v3267_v9, %v3196_v1 }
 0xf4f   :  { %v3201_v56 = vpop.f32.mrf.mxu0 }
 0xf50   :  { %3312 = vst [vmem:[#allocation2 + $0x8] sm:$0xff] %v3296_v39  ;;  %v3202_v5 = vadd.f32 %v3201_v56, %v3134_v63  ;;  %v3284_v2 = vadd.f32 %v3268_v43, %v3198_v60  ;;  %v3299_v34 = vmax.f32 %v3283_v16, 0.0  ;;  %v3691_v43 = vld [vmem:[%s5891_s0 + $0x38] sm:$0xff]  ;;  %s3692_s0 = scalar_lea.vmem %s3333_s11, 2048 }
 0xf51   :  { %v3203_v53 = vpop.f32.mrf.mxu0  ;;  %v3277_v1 = vunpack.c.l.bf16 %v3691_v43  ;;  %v3278_v3 = vunpack.c.h.bf16 %v3691_v43  ;;  %p3693_p0 = scmp.ne.s32.totalorder %s3333_s11, %s3692_s0  ;;  %p3698_p2 = scmp.lt.s32.totalorder %s3692_s0, %s3692_s0 }
 0xf52   :  { %v3287_v11 = vadd.f32 %v3271_v27, %v3202_v5  ;;  %v3204_v59 = vadd.f32 %v3203_v53, %v3134_v63  ;;  %v3300_v33 = vmax.f32 %v3284_v2, 0.0  ;;  %3315 = vst [vmem:[#allocation2 + $0x20] sm:$0xff] %v3299_v34 }
 0xf53   :  { %v3205_v32 = vpop.f32.mrf.mxu0  ;;  %p3699_p3 = por %p3698_p2, %p3697_p1 }
 0xf54   :  { %v3303_v61 = vmax.f32 %v3287_v11, 0.0  ;;  %v3288_v4 = vadd.f32 %v3272_v0, %v3204_v59  ;;  %v3244_v55 = vpop.f32.mrf.mxu1  ;;  %3316 = vst [vmem:[#allocation2 + $0x28] sm:$0xff] %v3300_v33  ;;  %v3206_v54 = vadd.f32 %v3205_v32, %v5865_v25 }
 0xf55   :  { %v3245_v38 = vadd.f32 %v3244_v55, %v3124_v50  ;;  %v3207_v14 = vpop.f32.mrf.mxu0  ;;  %p3700_p4 = pnand %p3699_p3, %p3693_p0 }
 0xf56   :  { %3319 = vst [vmem:[#allocation2 + $0x40] sm:$0xff] %v3303_v61  ;;  %v3304_v45 = vmax.f32 %v3288_v4, 0.0  ;;  %v3246_v6 = vpop.f32.mrf.mxu1  ;;  %v3208_v21 = vadd.f32 %v3207_v14, %v5865_v25  ;;  %v3291_v10 = vadd.f32 %v3275_v20, %v3206_v54 }
 0xf57   :  { %v3281_v35 = vadd.f32 %v3265_v57, %v3245_v38  ;;  %v3247_v26 = vadd.f32 %v3246_v6, %v3124_v50  ;;  %v3273_v50 = vunpack.c.l.bf16 %v3690_v13 }
 0xf58   :  { %3320 = vst [vmem:[#allocation2 + $0x48] sm:$0xff] %v3304_v45  ;;  %v3248_v19 = vpop.f32.mrf.mxu1  ;;  %v3292_v28 = vadd.f32 %v3276_v52, %v3208_v21  ;;  %v3307_v41 = vmax.f32 %v3291_v10, 0.0 }
 0xf59   :  { %v3297_v7 = vmax.f32 %v3281_v35, 0.0  ;;  %v3282_v47 = vadd.f32 %v3266_v18, %v3247_v26  ;;  %v3249_v51 = vadd.f32 %v3248_v19, %v5855_v24 }
 0xf5a   :  { %v3250_v8 = vpop.f32.mrf.mxu1  ;;  %v3308_v44 = vmax.f32 %v3292_v28, 0.0  ;;  %3323 = vst [vmem:[#allocation2 + $0x60] sm:$0xff] %v3307_v41 }
 0xf5b   :  { %3313 = vst [vmem:[#allocation2 + $0x10] sm:$0xff] %v3297_v7  ;;  %v3298_v23 = vmax.f32 %v3282_v47, 0.0  ;;  %v3251_v30 = vadd.f32 %v3250_v8, %v5855_v24  ;;  %v3285_v17 = vadd.f32 %v3269_v12, %v3249_v51 }
 0xf5c   :  { %v3254_v36 = vpop.f32.mrf.mxu1  ;;  %3324 = vst [vmem:[#allocation2 + $0x68] sm:$0xff] %v3308_v44 }
 0xf5d   :  { %3314 = vst [vmem:[#allocation2 + $0x18] sm:$0xff] %v3298_v23  ;;  %v3255_v62 = vadd.f32 %v3254_v36, %v3134_v63  ;;  %v3286_v29 = vadd.f32 %v3270_v42, %v3251_v30  ;;  %v3301_v37 = vmax.f32 %v3285_v17, 0.0 }
 0xf5e   :  { %v3256_v9 = vpop.f32.mrf.mxu1 }
 0xf5f   :  { %v3289_v48 = vadd.f32 %v3273_v50, %v3255_v62  ;;  %v3257_v22 = vadd.f32 %v3256_v9, %v3134_v63  ;;  %v3302_v15 = vmax.f32 %v3286_v29, 0.0  ;;  %3317 = vst [vmem:[#allocation2 + $0x30] sm:$0xff] %v3301_v37 }
 0xf60   :  { %v3258_v31 = vpop.f32.mrf.mxu1 }
 0xf61   :  { %v3305_v24 = vmax.f32 %v3289_v48, 0.0  ;;  %v3290_v39 = vadd.f32 %v3274_v58, %v3257_v22  ;;  %3318 = vst [vmem:[#allocation2 + $0x38] sm:$0xff] %v3302_v15  ;;  %v3259_v27 = vadd.f32 %v3258_v31, %v5865_v25 }
 0xf62   :  { %v3260_v60 = vpop.f32.mrf.mxu1 }
 0xf63   :  { %3321 = vst [vmem:[#allocation2 + $0x50] sm:$0xff] %v3305_v24  ;;  %v3306_v16 = vmax.f32 %v3290_v39, 0.0  ;;  %v3261_v56 = vadd.f32 %v3260_v60, %v5865_v25  ;;  %v3293_v63 = vadd.f32 %v3277_v1, %v3259_v27 }
 0xf65   :  { %3322 = vst [vmem:[#allocation2 + $0x58] sm:$0xff] %v3306_v16  ;;  %v3294_v5 = vadd.f32 %v3278_v3, %v3261_v56  ;;  %v3309_v0 = vmax.f32 %v3293_v63, 0.0 }
 0xf67   :  { %v3310_v2 = vmax.f32 %v3294_v5, 0.0  ;;  %3325 = vst [vmem:[#allocation2 + $0x70] sm:$0xff] %v3309_v0 }
 0xf69   :  { %3326 = vst [vmem:[#allocation2 + $0x78] sm:$0xff] %v3310_v2 }
 0xf6a   :  { %3703 = shalt.err (!%p3700_p4)
}
 0xf6b   :  { %s3727_s3 = smov 512   ;;  %s3728_s2 = smov 32  }
 0xf6c   :  { %3338 = dma.vmem_to_hbm [thread:$0]  %s3333_s11, 2048, %s5904_s13, [#allocation3], %s3727_s3, %s3727_s3, %s3728_s2  }
 0xf6d   :  { %3712 = dma.done.wait [#allocation3], 2048  }
 0xf6e   :  { %3713 = vsyncadd [#allocation3], 4294965248 }
 0xf6f   :  { %3342 = vsyncpa [#allocation3], 1 }

</bundles_post_ra>
